<compile_context>
chip_gen: v7x
topology: tpu7x:2x2x1
jax: 0.10.0
libtpu: 0.0.40
codegen_flags: <defaults>
</compile_context>

<pallas_src>
import functools
import math

import jax
import jax.numpy as jnp
from jax import lax
from jax.experimental import pallas as pl
from jax.experimental.pallas import tpu as pltpu


# ----------------------------------------------------------------------------
# In-kernel helpers
# ----------------------------------------------------------------------------
def _dot_t(x, w):
    """x: (S, Din) @ w: (Dout, Din) [PyTorch layout] -> (S, Dout)."""
    return lax.dot_general(x, w, (((1,), (1,)), ((), ())),
                           preferred_element_type=jnp.float32)


def _bdot(a, b):
    """Batched matmul: (n, S, K) @ (n, K, M) -> (n, S, M)."""
    return lax.dot_general(a, b, (((2,), (1,)), ((0,), (0,))),
                           preferred_element_type=jnp.float32)


def _bdot_kt(a, b):
    """Batched Q @ K^T: (n, Sq, hd) x (n, Sk, hd) -> (n, Sq, Sk)."""
    return lax.dot_general(a, b, (((2,), (2,)), ((0,), (0,))),
                           preferred_element_type=jnp.float32)


def _layernorm(v, g, b, eps=1e-5):
    mu = jnp.mean(v, axis=-1, keepdims=True)
    var = jnp.mean(jnp.square(v - mu), axis=-1, keepdims=True)
    return (v - mu) * lax.rsqrt(var + eps) * g + b


def _attend(q2d, k2d, v2d, *, batch, sq, sk, nhead, hd):
    """Scaled-dot-product attention on row-folded activations.

    q2d: (batch*sq, nhead*hd)   k2d / v2d: (batch*sk, nhead*hd)
    Returns the lane-concatenated per-head outputs (batch*sq, nhead*hd),
    ready for a single (H, H) output projection.
    """
    scale = 1.0 / math.sqrt(hd)

    def split_heads(x, s):
        # (batch*s, nhead*hd) -> (batch*nhead, s, hd): static slices + leading
        # stack only (no reshape/transpose relayouts).
        return jnp.stack(
            [x[b * s:(b + 1) * s, h * hd:(h + 1) * hd]
             for b in range(batch) for h in range(nhead)], axis=0)

    qh = split_heads(q2d, sq)                            # (B*nh, sq, hd)
    kh = split_heads(k2d, sk)                            # (B*nh, sk, hd)
    vh = split_heads(v2d, sk)

    s = _bdot_kt(qh, kh) * scale                         # (B*nh, sq, sk)
    s = s - jnp.max(s, axis=-1, keepdims=True)
    p = jnp.exp(s)
    p = p / jnp.sum(p, axis=-1, keepdims=True)           # exact divide
    ctx = _bdot(p, vh)                                   # (B*nh, sq, hd)

    # Merge heads: lanes = nhead*hd, rows = batch*sq (matches PyTorch concat).
    return jnp.concatenate(
        [jnp.concatenate([ctx[b * nhead + h] for h in range(nhead)], axis=-1)
         for b in range(batch)], axis=0)                 # (B*sq, nhead*hd)


# ----------------------------------------------------------------------------
# Fused QFormer kernel: whole forward, whole batch, single invocation.
# ----------------------------------------------------------------------------
def _qformer_kernel(img_ref, qtok_ref,
                    pw_ref, pb_ref,
                    sin_w_ref, sin_b_ref, sout_w_ref, sout_b_ref,
                    cq_w_ref, cq_b_ref, ckv_w_ref, ckv_b_ref,
                    cout_w_ref, cout_b_ref,
                    ln1_g_ref, ln1_b_ref, w1_ref, b1_ref,
                    w2_ref, b2_ref, ln2_g_ref, ln2_b_ref,
                    fc_w_ref, fc_b_ref,
                    o_ref, *, nhead, num_layers, batch):
    B = batch
    _, S, _ = img_ref.shape
    Q, H = qtok_ref.shape
    hd = H // nhead

    # Image projection: all batch rows folded into one (B*S, 768)@(768, H) matmul.
    img_rows = jnp.concatenate([img_ref[b] for b in range(B)], axis=0)
    img = _dot_t(img_rows, pw_ref[...]) + pb_ref[...]            # (B*S, H)

    # Query tokens replicated per batch element, row-folded: (B*Q, H).
    q = jnp.concatenate([qtok_ref[...]] * B, axis=0)

    for l in range(num_layers):                                  # static unroll
        # ---- self-attention: one wide QKV matmul, heads sliced afterwards ----
        qkv = _dot_t(q, sin_w_ref[l]) + sin_b_ref[l]             # (B*Q, 3H)
        ctx = _attend(qkv[:, :H], qkv[:, H:2 * H], qkv[:, 2 * H:],
                      batch=B, sq=Q, sk=Q, nhead=nhead, hd=hd)
        q = _dot_t(ctx, sout_w_ref[l]) + sout_b_ref[l]           # one out-proj

        # ---- cross-attention: Q-only / KV-only projections (no discarded work) ----
        qp = _dot_t(q, cq_w_ref[l]) + cq_b_ref[l]                # (B*Q, H)
        kv = _dot_t(img, ckv_w_ref[l]) + ckv_b_ref[l]            # (B*S, 2H)
        ctx = _attend(qp, kv[:, :H], kv[:, H:],
                      batch=B, sq=Q, sk=S, nhead=nhead, hd=hd)
        q = _dot_t(ctx, cout_w_ref[l]) + cout_b_ref[l]

        # ---- FFN: LN -> Linear(H,4H) -> GELU(erf) -> Linear(4H,H) -> LN ----
        xn = _layernorm(q, ln1_g_ref[l], ln1_b_ref[l])
        h = _dot_t(xn, w1_ref[l]) + b1_ref[l]
        h = 0.5 * h * (1.0 + lax.erf(h * (1.0 / math.sqrt(2.0))))
        y = _dot_t(h, w2_ref[l]) + b2_ref[l]
        q = _layernorm(y, ln2_g_ref[l], ln2_b_ref[l])

    out = _dot_t(q, fc_w_ref[...]) + fc_b_ref[...]               # (B*Q, H)
    # Lane-dense store: batches concatenated along lanes -> (Q, B*H). With
    # B*H a multiple of 128 this is a full (unmasked) vst.
    o_ref[...] = jnp.concatenate(
        [out[b * Q:(b + 1) * Q] for b in range(B)], axis=-1).astype(o_ref.dtype)


def qformer_forward(packed, image_embeds, *, nhead):
    B, S, IMG = image_embeds.shape
    Q, H = packed["query_tokens"].shape
    L = packed["w1"].shape[0]
    hd = H // nhead

    kern = functools.partial(_qformer_kernel, nhead=nhead, num_layers=L, batch=B)

    args = (image_embeds, packed["query_tokens"],
            packed["imgproj_w"], packed["imgproj_b"],
            packed["self_in_w"], packed["self_in_b"],
            packed["self_out_w"], packed["self_out_b"],
            packed["cross_q_w"], packed["cross_q_b"],
            packed["cross_kv_w"], packed["cross_kv_b"],
            packed["cross_out_w"], packed["cross_out_b"],
            packed["ln1_g"], packed["ln1_b"], packed["w1"], packed["b1"],
            packed["w2"], packed["b2"], packed["ln2_g"], packed["ln2_b"],
            packed["fc_w"], packed["fc_b"])

    # Whole problem fits in VMEM: no grid, every operand is one whole-array
    # VMEM block (nothing to pipeline at these shapes).
    vmem = pl.BlockSpec(memory_space=pltpu.MemorySpace.VMEM)

    # Advisory cost hint for XLA scheduling around the fused custom call.
    flops_layer = 2 * (B * Q * H * 3 * H              # self-attn QKV in-proj
                       + 2 * B * nhead * Q * Q * hd   # self-attn scores + ctx
                       + B * Q * H * H                # self-attn out-proj
                       + B * Q * H * H                # cross-attn Q proj
                       + B * S * H * 2 * H            # cross-attn KV proj
                       + 2 * B * nhead * Q * S * hd   # cross-attn scores + ctx
                       + B * Q * H * H                # cross-attn out-proj
                       + 2 * B * Q * H * 4 * H)       # FFN
    flops = 2 * B * S * IMG * H + L * flops_layer + 2 * B * Q * H * H
    transcendentals = L * (B * nhead * Q * (Q + S) + B * Q * 4 * H)
    bytes_accessed = int(sum(a.size * a.dtype.itemsize for a in args)
                         + Q * B * H * image_embeds.dtype.itemsize)

    out = pl.pallas_call(
        kern,
        out_shape=jax.ShapeDtypeStruct((Q, B * H), image_embeds.dtype),
        in_specs=[vmem] * len(args),
        out_specs=vmem,
        cost_estimate=pl.CostEstimate(flops=flops,
                                      transcendentals=transcendentals,
                                      bytes_accessed=bytes_accessed),
    )(*args)

    # (Q, B*H) -> (B, Q, H): cheap wrapper-side relayout; keeps the kernel
    # store lane-dense.
    return out.reshape(Q, B, H).transpose(1, 0, 2)


# ----------------------------------------------------------------------------
# One-time host-side weight packing (no per-forward transposes; weights stay
# in PyTorch (Dout, Din) layout and the kernel contracts dim 1 with dim 1).
# ----------------------------------------------------------------------------
def pack_params(params, nhead):
    H = params["fc_w"].shape[0]
    assert H % nhead == 0
    layers = params["layers"]

    def stack(fn, key):
        return jnp.stack([fn(lyr[key]) for lyr in layers])

    row = lambda b: b.reshape(1, -1)
    ident = lambda w: w

    return {
        "query_tokens": params["query_tokens"][0],              # (Q, H)
        "imgproj_w": params["imgproj_w"],                       # (H, 768)
        "imgproj_b": params["imgproj_b"].reshape(1, H),
        # Self-attention: fused [Q;K;V] slab, consumed in one wide matmul.
        "self_in_w": stack(ident, "self_in_w"),                 # (L, 3H, H)
        "self_in_b": stack(row, "self_in_b"),                   # (L, 1, 3H)
        "self_out_w": stack(ident, "self_out_w"),               # (L, H, H)
        "self_out_b": stack(row, "self_out_b"),                 # (L, 1, H)
        # Cross-attention: Q-only slab (queries) + KV-only slab (image embeds).
        "cross_q_w": stack(lambda w: w[:H], "cross_in_w"),      # (L, H, H)
        "cross_q_b": stack(lambda b: b[:H].reshape(1, H), "cross_in_b"),
        "cross_kv_w": stack(lambda w: w[H:], "cross_in_w"),     # (L, 2H, H)
        "cross_kv_b": stack(lambda b: b[H:].reshape(1, 2 * H), "cross_in_b"),
        "cross_out_w": stack(ident, "cross_out_w"),             # (L, H, H)
        "cross_out_b": stack(row, "cross_out_b"),               # (L, 1, H)
        "ln1_g": stack(row, "ln1_g"), "ln1_b": stack(row, "ln1_b"),
        "w1": stack(ident, "w1"), "b1": stack(row, "b1"),       # (L, 4H, H)
        "w2": stack(ident, "w2"), "b2": stack(row, "b2"),       # (L, H, 4H)
        "ln2_g": stack(row, "ln2_g"), "ln2_b": stack(row, "ln2_b"),
        "fc_w": params["fc_w"],                                 # (H, H)
        "fc_b": params["fc_b"].reshape(1, H),
    }


# ----------------------------------------------------------------------------
# Deterministic synthetic parameter init (PyTorch-like layouts)
# ----------------------------------------------------------------------------
def init_params(key, hidden_dim, num_query_tokens, num_layers, img_dim=768):
    def nrm(k, shape, scale=0.02):
        return scale * jax.random.normal(k, shape, jnp.float32)

    keys = iter(jax.random.split(key, 8 + 12 * num_layers))
    params = {
        "query_tokens": jax.random.normal(
            next(keys), (1, num_query_tokens, hidden_dim), jnp.float32),
        "imgproj_w": nrm(next(keys), (hidden_dim, img_dim)),
        "imgproj_b": nrm(next(keys), (hidden_dim,)),
        "fc_w": nrm(next(keys), (hidden_dim, hidden_dim)),
        "fc_b": nrm(next(keys), (hidden_dim,)),
        "layers": [],
    }
    for _ in range(num_layers):
        lyr = {}
        for name in ("self", "cross"):
            lyr[f"{name}_in_w"] = nrm(next(keys), (3 * hidden_dim, hidden_dim))
            lyr[f"{name}_in_b"] = nrm(next(keys), (3 * hidden_dim,))
            lyr[f"{name}_out_w"] = nrm(next(keys), (hidden_dim, hidden_dim))
            lyr[f"{name}_out_b"] = nrm(next(keys), (hidden_dim,))
        lyr["ln1_g"] = jnp.ones((hidden_dim,), jnp.float32)
        lyr["ln1_b"] = jnp.zeros((hidden_dim,), jnp.float32)
        lyr["w1"] = nrm(next(keys), (4 * hidden_dim, hidden_dim))
        lyr["b1"] = nrm(next(keys), (4 * hidden_dim,))
        lyr["w2"] = nrm(next(keys), (hidden_dim, 4 * hidden_dim))
        lyr["b2"] = nrm(next(keys), (hidden_dim,))
        lyr["ln2_g"] = jnp.ones((hidden_dim,), jnp.float32)
        lyr["ln2_b"] = jnp.zeros((hidden_dim,), jnp.float32)
        params["layers"].append(lyr)
    return params


if __name__ == "__main__":
    # Small, consistent shapes: hidden=64, 8 query tokens, 2 layers, 4 heads,
    # batch=2, 16 image patches of dim 768 (imgproj input dim fixed at 768).
    HIDDEN, NQUERY, NLAYERS, NHEAD = 64, 8, 2, 4
    B, S, IMG_DIM = 2, 16, 768

    key = jax.random.PRNGKey(0)
    pkey, xkey = jax.random.split(key)
    params = init_params(pkey, HIDDEN, NQUERY, NLAYERS, img_dim=IMG_DIM)
    packed = pack_params(params, NHEAD)          # one-time weight packing
    image_embeds = jax.random.normal(xkey, (B, S, IMG_DIM), jnp.float32)

    out = qformer_forward(packed, image_embeds, nhead=NHEAD)
    out = jax.block_until_ready(out)
    assert out.shape == (B, NQUERY, HIDDEN), out.shape
    assert bool(jnp.all(jnp.isfinite(out)))
    print("KERNEL_OK")
</pallas_src>

<mosaic_0001>
module attributes {stable_mosaic.version = 11 : i64} {
  func.func @_qformer_kernel(%arg0: memref<2x16x768xf32, #tpu.memory_space<vmem>>, %arg1: memref<8x64xf32, #tpu.memory_space<vmem>>, %arg2: memref<64x768xf32, #tpu.memory_space<vmem>>, %arg3: memref<1x64xf32, #tpu.memory_space<vmem>>, %arg4: memref<2x192x64xf32, #tpu.memory_space<vmem>>, %arg5: memref<2x1x192xf32, #tpu.memory_space<vmem>>, %arg6: memref<2x64x64xf32, #tpu.memory_space<vmem>>, %arg7: memref<2x1x64xf32, #tpu.memory_space<vmem>>, %arg8: memref<2x64x64xf32, #tpu.memory_space<vmem>>, %arg9: memref<2x1x64xf32, #tpu.memory_space<vmem>>, %arg10: memref<2x128x64xf32, #tpu.memory_space<vmem>>, %arg11: memref<2x1x128xf32, #tpu.memory_space<vmem>>, %arg12: memref<2x64x64xf32, #tpu.memory_space<vmem>>, %arg13: memref<2x1x64xf32, #tpu.memory_space<vmem>>, %arg14: memref<2x1x64xf32, #tpu.memory_space<vmem>>, %arg15: memref<2x1x64xf32, #tpu.memory_space<vmem>>, %arg16: memref<2x256x64xf32, #tpu.memory_space<vmem>>, %arg17: memref<2x1x256xf32, #tpu.memory_space<vmem>>, %arg18: memref<2x64x256xf32, #tpu.memory_space<vmem>>, %arg19: memref<2x1x64xf32, #tpu.memory_space<vmem>>, %arg20: memref<2x1x64xf32, #tpu.memory_space<vmem>>, %arg21: memref<2x1x64xf32, #tpu.memory_space<vmem>>, %arg22: memref<64x64xf32, #tpu.memory_space<vmem>>, %arg23: memref<1x64xf32, #tpu.memory_space<vmem>>, %arg24: memref<8x128xf32, #tpu.memory_space<vmem>>) attributes {dimension_semantics = [], scalar_prefetch = 0 : i64, scratch_operands = 0 : i64, tpu.core_type = #tpu.core_type<tc>} {
    %c0 = arith.constant 0 : index
    %c0_0 = arith.constant 0 : index
    %c0_1 = arith.constant 0 : index
    %0 = vector.load %arg0[%c0, %c0_0, %c0_1] : memref<2x16x768xf32, #tpu.memory_space<vmem>>, vector<1x16x768xf32>
    %1 = vector.shape_cast %0 : vector<1x16x768xf32> to vector<16x768xf32>
    %c1 = arith.constant 1 : index
    %c0_2 = arith.constant 0 : index
    %c0_3 = arith.constant 0 : index
    %2 = vector.load %arg0[%c1, %c0_2, %c0_3] : memref<2x16x768xf32, #tpu.memory_space<vmem>>, vector<1x16x768xf32>
    %3 = vector.shape_cast %2 : vector<1x16x768xf32> to vector<16x768xf32>
    %4 = tpu.concatenate %1, %3 in 0 : vector<16x768xf32>, vector<16x768xf32> -> vector<32x768xf32>
    %c0_4 = arith.constant 0 : index
    %c0_5 = arith.constant 0 : index
    %5 = vector.load %arg2[%c0_4, %c0_5] : memref<64x768xf32, #tpu.memory_space<vmem>>, vector<64x768xf32>
    %cst = arith.constant dense<0.000000e+00> : vector<32x64xf32>
    %6 = tpu.matmul %4, %5, %cst {dimension_numbers = #tpu.dot_dimension_numbers<[1], [1], [0], [0], [0, 0, 1, 0], [], []>} : vector<32x768xf32>, vector<64x768xf32>, vector<32x64xf32> -> vector<32x64xf32>
    %c0_6 = arith.constant 0 : index
    %c0_7 = arith.constant 0 : index
    %7 = vector.load %arg3[%c0_6, %c0_7] : memref<1x64xf32, #tpu.memory_space<vmem>>, vector<1x64xf32>
    %8 = vector.broadcast %7 : vector<1x64xf32> to vector<32x64xf32>
    %9 = arith.addf %6, %8 : vector<32x64xf32>
    %c0_8 = arith.constant 0 : index
    %c0_9 = arith.constant 0 : index
    %10 = vector.load %arg1[%c0_8, %c0_9] : memref<8x64xf32, #tpu.memory_space<vmem>>, vector<8x64xf32>
    %11 = tpu.concatenate %10, %10 in 0 : vector<8x64xf32>, vector<8x64xf32> -> vector<16x64xf32>
    %c0_10 = arith.constant 0 : index
    %c0_11 = arith.constant 0 : index
    %c0_12 = arith.constant 0 : index
    %12 = vector.load %arg4[%c0_10, %c0_11, %c0_12] : memref<2x192x64xf32, #tpu.memory_space<vmem>>, vector<1x192x64xf32>
    %13 = vector.shape_cast %12 : vector<1x192x64xf32> to vector<192x64xf32>
    %cst_13 = arith.constant dense<0.000000e+00> : vector<16x192xf32>
    %14 = tpu.matmul %11, %13, %cst_13 {dimension_numbers = #tpu.dot_dimension_numbers<[1], [1], [0], [0], [0, 0, 1, 0], [], []>} : vector<16x64xf32>, vector<192x64xf32>, vector<16x192xf32> -> vector<16x192xf32>
    %c0_14 = arith.constant 0 : index
    %c0_15 = arith.constant 0 : index
    %c0_16 = arith.constant 0 : index
    %15 = vector.load %arg5[%c0_14, %c0_15, %c0_16] : memref<2x1x192xf32, #tpu.memory_space<vmem>>, vector<1x1x192xf32>
    %16 = vector.shape_cast %15 : vector<1x1x192xf32> to vector<1x192xf32>
    %17 = vector.broadcast %16 : vector<1x192xf32> to vector<16x192xf32>
    %18 = arith.addf %14, %17 : vector<16x192xf32>
    %19 = vector.extract_strided_slice %18 {offsets = [0, 0], sizes = [16, 64], strides = [1, 1]} : vector<16x192xf32> to vector<16x64xf32>
    %20 = vector.extract_strided_slice %18 {offsets = [0, 64], sizes = [16, 64], strides = [1, 1]} : vector<16x192xf32> to vector<16x64xf32>
    %21 = vector.extract_strided_slice %18 {offsets = [0, 128], sizes = [16, 64], strides = [1, 1]} : vector<16x192xf32> to vector<16x64xf32>
    %22 = vector.extract_strided_slice %19 {offsets = [0, 0], sizes = [8, 16], strides = [1, 1]} : vector<16x64xf32> to vector<8x16xf32>
    %23 = vector.extract_strided_slice %19 {offsets = [0, 16], sizes = [8, 16], strides = [1, 1]} : vector<16x64xf32> to vector<8x16xf32>
    %24 = vector.extract_strided_slice %19 {offsets = [0, 32], sizes = [8, 16], strides = [1, 1]} : vector<16x64xf32> to vector<8x16xf32>
    %25 = vector.extract_strided_slice %19 {offsets = [0, 48], sizes = [8, 16], strides = [1, 1]} : vector<16x64xf32> to vector<8x16xf32>
    %26 = vector.extract_strided_slice %19 {offsets = [8, 0], sizes = [8, 16], strides = [1, 1]} : vector<16x64xf32> to vector<8x16xf32>
    %27 = vector.extract_strided_slice %19 {offsets = [8, 16], sizes = [8, 16], strides = [1, 1]} : vector<16x64xf32> to vector<8x16xf32>
    %28 = vector.extract_strided_slice %19 {offsets = [8, 32], sizes = [8, 16], strides = [1, 1]} : vector<16x64xf32> to vector<8x16xf32>
    %29 = vector.extract_strided_slice %19 {offsets = [8, 48], sizes = [8, 16], strides = [1, 1]} : vector<16x64xf32> to vector<8x16xf32>
    %30 = vector.shape_cast %22 : vector<8x16xf32> to vector<1x8x16xf32>
    %31 = vector.shape_cast %23 : vector<8x16xf32> to vector<1x8x16xf32>
    %32 = vector.shape_cast %24 : vector<8x16xf32> to vector<1x8x16xf32>
    %33 = vector.shape_cast %25 : vector<8x16xf32> to vector<1x8x16xf32>
    %34 = vector.shape_cast %26 : vector<8x16xf32> to vector<1x8x16xf32>
    %35 = vector.shape_cast %27 : vector<8x16xf32> to vector<1x8x16xf32>
    %36 = vector.shape_cast %28 : vector<8x16xf32> to vector<1x8x16xf32>
    %37 = vector.shape_cast %29 : vector<8x16xf32> to vector<1x8x16xf32>
    %38 = tpu.concatenate %30, %31, %32, %33, %34, %35, %36, %37 in 0 : vector<1x8x16xf32>, vector<1x8x16xf32>, vector<1x8x16xf32>, vector<1x8x16xf32>, vector<1x8x16xf32>, vector<1x8x16xf32>, vector<1x8x16xf32>, vector<1x8x16xf32> -> vector<8x8x16xf32>
    %39 = vector.extract_strided_slice %20 {offsets = [0, 0], sizes = [8, 16], strides = [1, 1]} : vector<16x64xf32> to vector<8x16xf32>
    %40 = vector.extract_strided_slice %20 {offsets = [0, 16], sizes = [8, 16], strides = [1, 1]} : vector<16x64xf32> to vector<8x16xf32>
    %41 = vector.extract_strided_slice %20 {offsets = [0, 32], sizes = [8, 16], strides = [1, 1]} : vector<16x64xf32> to vector<8x16xf32>
    %42 = vector.extract_strided_slice %20 {offsets = [0, 48], sizes = [8, 16], strides = [1, 1]} : vector<16x64xf32> to vector<8x16xf32>
    %43 = vector.extract_strided_slice %20 {offsets = [8, 0], sizes = [8, 16], strides = [1, 1]} : vector<16x64xf32> to vector<8x16xf32>
    %44 = vector.extract_strided_slice %20 {offsets = [8, 16], sizes = [8, 16], strides = [1, 1]} : vector<16x64xf32> to vector<8x16xf32>
    %45 = vector.extract_strided_slice %20 {offsets = [8, 32], sizes = [8, 16], strides = [1, 1]} : vector<16x64xf32> to vector<8x16xf32>
    %46 = vector.extract_strided_slice %20 {offsets = [8, 48], sizes = [8, 16], strides = [1, 1]} : vector<16x64xf32> to vector<8x16xf32>
    %47 = vector.shape_cast %39 : vector<8x16xf32> to vector<1x8x16xf32>
    %48 = vector.shape_cast %40 : vector<8x16xf32> to vector<1x8x16xf32>
    %49 = vector.shape_cast %41 : vector<8x16xf32> to vector<1x8x16xf32>
    %50 = vector.shape_cast %42 : vector<8x16xf32> to vector<1x8x16xf32>
    %51 = vector.shape_cast %43 : vector<8x16xf32> to vector<1x8x16xf32>
    %52 = vector.shape_cast %44 : vector<8x16xf32> to vector<1x8x16xf32>
    %53 = vector.shape_cast %45 : vector<8x16xf32> to vector<1x8x16xf32>
    %54 = vector.shape_cast %46 : vector<8x16xf32> to vector<1x8x16xf32>
    %55 = tpu.concatenate %47, %48, %49, %50, %51, %52, %53, %54 in 0 : vector<1x8x16xf32>, vector<1x8x16xf32>, vector<1x8x16xf32>, vector<1x8x16xf32>, vector<1x8x16xf32>, vector<1x8x16xf32>, vector<1x8x16xf32>, vector<1x8x16xf32> -> vector<8x8x16xf32>
    %56 = vector.extract_strided_slice %21 {offsets = [0, 0], sizes = [8, 16], strides = [1, 1]} : vector<16x64xf32> to vector<8x16xf32>
    %57 = vector.extract_strided_slice %21 {offsets = [0, 16], sizes = [8, 16], strides = [1, 1]} : vector<16x64xf32> to vector<8x16xf32>
    %58 = vector.extract_strided_slice %21 {offsets = [0, 32], sizes = [8, 16], strides = [1, 1]} : vector<16x64xf32> to vector<8x16xf32>
    %59 = vector.extract_strided_slice %21 {offsets = [0, 48], sizes = [8, 16], strides = [1, 1]} : vector<16x64xf32> to vector<8x16xf32>
    %60 = vector.extract_strided_slice %21 {offsets = [8, 0], sizes = [8, 16], strides = [1, 1]} : vector<16x64xf32> to vector<8x16xf32>
    %61 = vector.extract_strided_slice %21 {offsets = [8, 16], sizes = [8, 16], strides = [1, 1]} : vector<16x64xf32> to vector<8x16xf32>
    %62 = vector.extract_strided_slice %21 {offsets = [8, 32], sizes = [8, 16], strides = [1, 1]} : vector<16x64xf32> to vector<8x16xf32>
    %63 = vector.extract_strided_slice %21 {offsets = [8, 48], sizes = [8, 16], strides = [1, 1]} : vector<16x64xf32> to vector<8x16xf32>
    %64 = vector.shape_cast %56 : vector<8x16xf32> to vector<1x8x16xf32>
    %65 = vector.shape_cast %57 : vector<8x16xf32> to vector<1x8x16xf32>
    %66 = vector.shape_cast %58 : vector<8x16xf32> to vector<1x8x16xf32>
    %67 = vector.shape_cast %59 : vector<8x16xf32> to vector<1x8x16xf32>
    %68 = vector.shape_cast %60 : vector<8x16xf32> to vector<1x8x16xf32>
    %69 = vector.shape_cast %61 : vector<8x16xf32> to vector<1x8x16xf32>
    %70 = vector.shape_cast %62 : vector<8x16xf32> to vector<1x8x16xf32>
    %71 = vector.shape_cast %63 : vector<8x16xf32> to vector<1x8x16xf32>
    %72 = tpu.concatenate %64, %65, %66, %67, %68, %69, %70, %71 in 0 : vector<1x8x16xf32>, vector<1x8x16xf32>, vector<1x8x16xf32>, vector<1x8x16xf32>, vector<1x8x16xf32>, vector<1x8x16xf32>, vector<1x8x16xf32>, vector<1x8x16xf32> -> vector<8x8x16xf32>
    %cst_17 = arith.constant dense<0.000000e+00> : vector<8x8x8xf32>
    %73 = tpu.matmul %38, %55, %cst_17 {dimension_numbers = #tpu.dot_dimension_numbers<[2], [2], [1], [1], [0, 0, 0, 1, 1, 1], [0], [0]>} : vector<8x8x16xf32>, vector<8x8x16xf32>, vector<8x8x8xf32> -> vector<8x8x8xf32>
    %cst_18 = arith.constant 2.500000e-01 : f32
    %74 = vector.broadcast %cst_18 : f32 to vector<8x8x8xf32>
    %75 = arith.mulf %73, %74 : vector<8x8x8xf32>
    %cst_19 = arith.constant dense<0xFF800000> : vector<8x8xf32>
    %76 = vector.multi_reduction <maximumf>, %75, %cst_19 [2] : vector<8x8x8xf32> to vector<8x8xf32>
    %77 = vector.shape_cast %76 : vector<8x8xf32> to vector<8x8x1xf32>
    %78 = vector.broadcast %77 : vector<8x8x1xf32> to vector<8x8x8xf32>
    %79 = arith.subf %75, %78 : vector<8x8x8xf32>
    %80 = math.exp %79 : vector<8x8x8xf32>
    %cst_20 = arith.constant dense<0.000000e+00> : vector<8x8xf32>
    %81 = vector.multi_reduction <add>, %80, %cst_20 [2] : vector<8x8x8xf32> to vector<8x8xf32>
    %82 = vector.shape_cast %81 : vector<8x8xf32> to vector<8x8x1xf32>
    %83 = vector.broadcast %82 : vector<8x8x1xf32> to vector<8x8x8xf32>
    %84 = arith.divf %80, %83 : vector<8x8x8xf32>
    %cst_21 = arith.constant dense<0.000000e+00> : vector<8x8x16xf32>
    %85 = tpu.matmul %84, %72, %cst_21 {dimension_numbers = #tpu.dot_dimension_numbers<[2], [1], [1], [2], [0, 0, 0, 1, 1, 2], [0], [0]>} : vector<8x8x8xf32>, vector<8x8x16xf32>, vector<8x8x16xf32> -> vector<8x8x16xf32>
    %86 = vector.extract_strided_slice %85 {offsets = [0, 0, 0], sizes = [1, 8, 16], strides = [1, 1, 1]} : vector<8x8x16xf32> to vector<1x8x16xf32>
    %87 = vector.shape_cast %86 : vector<1x8x16xf32> to vector<8x16xf32>
    %88 = vector.extract_strided_slice %85 {offsets = [1, 0, 0], sizes = [1, 8, 16], strides = [1, 1, 1]} : vector<8x8x16xf32> to vector<1x8x16xf32>
    %89 = vector.shape_cast %88 : vector<1x8x16xf32> to vector<8x16xf32>
    %90 = vector.extract_strided_slice %85 {offsets = [2, 0, 0], sizes = [1, 8, 16], strides = [1, 1, 1]} : vector<8x8x16xf32> to vector<1x8x16xf32>
    %91 = vector.shape_cast %90 : vector<1x8x16xf32> to vector<8x16xf32>
    %92 = vector.extract_strided_slice %85 {offsets = [3, 0, 0], sizes = [1, 8, 16], strides = [1, 1, 1]} : vector<8x8x16xf32> to vector<1x8x16xf32>
    %93 = vector.shape_cast %92 : vector<1x8x16xf32> to vector<8x16xf32>
    %94 = tpu.concatenate %87, %89, %91, %93 in 1 : vector<8x16xf32>, vector<8x16xf32>, vector<8x16xf32>, vector<8x16xf32> -> vector<8x64xf32>
    %95 = vector.extract_strided_slice %85 {offsets = [4, 0, 0], sizes = [1, 8, 16], strides = [1, 1, 1]} : vector<8x8x16xf32> to vector<1x8x16xf32>
    %96 = vector.shape_cast %95 : vector<1x8x16xf32> to vector<8x16xf32>
    %97 = vector.extract_strided_slice %85 {offsets = [5, 0, 0], sizes = [1, 8, 16], strides = [1, 1, 1]} : vector<8x8x16xf32> to vector<1x8x16xf32>
    %98 = vector.shape_cast %97 : vector<1x8x16xf32> to vector<8x16xf32>
    %99 = vector.extract_strided_slice %85 {offsets = [6, 0, 0], sizes = [1, 8, 16], strides = [1, 1, 1]} : vector<8x8x16xf32> to vector<1x8x16xf32>
    %100 = vector.shape_cast %99 : vector<1x8x16xf32> to vector<8x16xf32>
    %101 = vector.extract_strided_slice %85 {offsets = [7, 0, 0], sizes = [1, 8, 16], strides = [1, 1, 1]} : vector<8x8x16xf32> to vector<1x8x16xf32>
    %102 = vector.shape_cast %101 : vector<1x8x16xf32> to vector<8x16xf32>
    %103 = tpu.concatenate %96, %98, %100, %102 in 1 : vector<8x16xf32>, vector<8x16xf32>, vector<8x16xf32>, vector<8x16xf32> -> vector<8x64xf32>
    %104 = tpu.concatenate %94, %103 in 0 : vector<8x64xf32>, vector<8x64xf32> -> vector<16x64xf32>
    %c0_22 = arith.constant 0 : index
    %c0_23 = arith.constant 0 : index
    %c0_24 = arith.constant 0 : index
    %105 = vector.load %arg6[%c0_22, %c0_23, %c0_24] : memref<2x64x64xf32, #tpu.memory_space<vmem>>, vector<1x64x64xf32>
    %106 = vector.shape_cast %105 : vector<1x64x64xf32> to vector<64x64xf32>
    %cst_25 = arith.constant dense<0.000000e+00> : vector<16x64xf32>
    %107 = tpu.matmul %104, %106, %cst_25 {dimension_numbers = #tpu.dot_dimension_numbers<[1], [1], [0], [0], [0, 0, 1, 0], [], []>} : vector<16x64xf32>, vector<64x64xf32>, vector<16x64xf32> -> vector<16x64xf32>
    %c0_26 = arith.constant 0 : index
    %c0_27 = arith.constant 0 : index
    %c0_28 = arith.constant 0 : index
    %108 = vector.load %arg7[%c0_26, %c0_27, %c0_28] : memref<2x1x64xf32, #tpu.memory_space<vmem>>, vector<1x1x64xf32>
    %109 = vector.shape_cast %108 : vector<1x1x64xf32> to vector<1x64xf32>
    %110 = vector.broadcast %109 : vector<1x64xf32> to vector<16x64xf32>
    %111 = arith.addf %107, %110 : vector<16x64xf32>
    %c0_29 = arith.constant 0 : index
    %c0_30 = arith.constant 0 : index
    %c0_31 = arith.constant 0 : index
    %112 = vector.load %arg8[%c0_29, %c0_30, %c0_31] : memref<2x64x64xf32, #tpu.memory_space<vmem>>, vector<1x64x64xf32>
    %113 = vector.shape_cast %112 : vector<1x64x64xf32> to vector<64x64xf32>
    %cst_32 = arith.constant dense<0.000000e+00> : vector<16x64xf32>
    %114 = tpu.matmul %111, %113, %cst_32 {dimension_numbers = #tpu.dot_dimension_numbers<[1], [1], [0], [0], [0, 0, 1, 0], [], []>} : vector<16x64xf32>, vector<64x64xf32>, vector<16x64xf32> -> vector<16x64xf32>
    %c0_33 = arith.constant 0 : index
    %c0_34 = arith.constant 0 : index
    %c0_35 = arith.constant 0 : index
    %115 = vector.load %arg9[%c0_33, %c0_34, %c0_35] : memref<2x1x64xf32, #tpu.memory_space<vmem>>, vector<1x1x64xf32>
    %116 = vector.shape_cast %115 : vector<1x1x64xf32> to vector<1x64xf32>
    %117 = vector.broadcast %116 : vector<1x64xf32> to vector<16x64xf32>
    %118 = arith.addf %114, %117 : vector<16x64xf32>
    %c0_36 = arith.constant 0 : index
    %c0_37 = arith.constant 0 : index
    %c0_38 = arith.constant 0 : index
    %119 = vector.load %arg10[%c0_36, %c0_37, %c0_38] : memref<2x128x64xf32, #tpu.memory_space<vmem>>, vector<1x128x64xf32>
    %120 = vector.shape_cast %119 : vector<1x128x64xf32> to vector<128x64xf32>
    %cst_39 = arith.constant dense<0.000000e+00> : vector<32x128xf32>
    %121 = tpu.matmul %9, %120, %cst_39 {dimension_numbers = #tpu.dot_dimension_numbers<[1], [1], [0], [0], [0, 0, 1, 0], [], []>} : vector<32x64xf32>, vector<128x64xf32>, vector<32x128xf32> -> vector<32x128xf32>
    %c0_40 = arith.constant 0 : index
    %c0_41 = arith.constant 0 : index
    %c0_42 = arith.constant 0 : index
    %122 = vector.load %arg11[%c0_40, %c0_41, %c0_42] : memref<2x1x128xf32, #tpu.memory_space<vmem>>, vector<1x1x128xf32>
    %123 = vector.shape_cast %122 : vector<1x1x128xf32> to vector<1x128xf32>
    %124 = vector.broadcast %123 : vector<1x128xf32> to vector<32x128xf32>
    %125 = arith.addf %121, %124 : vector<32x128xf32>
    %126 = vector.extract_strided_slice %125 {offsets = [0, 0], sizes = [32, 64], strides = [1, 1]} : vector<32x128xf32> to vector<32x64xf32>
    %127 = vector.extract_strided_slice %125 {offsets = [0, 64], sizes = [32, 64], strides = [1, 1]} : vector<32x128xf32> to vector<32x64xf32>
    %128 = vector.extract_strided_slice %118 {offsets = [0, 0], sizes = [8, 16], strides = [1, 1]} : vector<16x64xf32> to vector<8x16xf32>
    %129 = vector.extract_strided_slice %118 {offsets = [0, 16], sizes = [8, 16], strides = [1, 1]} : vector<16x64xf32> to vector<8x16xf32>
    %130 = vector.extract_strided_slice %118 {offsets = [0, 32], sizes = [8, 16], strides = [1, 1]} : vector<16x64xf32> to vector<8x16xf32>
    %131 = vector.extract_strided_slice %118 {offsets = [0, 48], sizes = [8, 16], strides = [1, 1]} : vector<16x64xf32> to vector<8x16xf32>
    %132 = vector.extract_strided_slice %118 {offsets = [8, 0], sizes = [8, 16], strides = [1, 1]} : vector<16x64xf32> to vector<8x16xf32>
    %133 = vector.extract_strided_slice %118 {offsets = [8, 16], sizes = [8, 16], strides = [1, 1]} : vector<16x64xf32> to vector<8x16xf32>
    %134 = vector.extract_strided_slice %118 {offsets = [8, 32], sizes = [8, 16], strides = [1, 1]} : vector<16x64xf32> to vector<8x16xf32>
    %135 = vector.extract_strided_slice %118 {offsets = [8, 48], sizes = [8, 16], strides = [1, 1]} : vector<16x64xf32> to vector<8x16xf32>
    %136 = vector.shape_cast %128 : vector<8x16xf32> to vector<1x8x16xf32>
    %137 = vector.shape_cast %129 : vector<8x16xf32> to vector<1x8x16xf32>
    %138 = vector.shape_cast %130 : vector<8x16xf32> to vector<1x8x16xf32>
    %139 = vector.shape_cast %131 : vector<8x16xf32> to vector<1x8x16xf32>
    %140 = vector.shape_cast %132 : vector<8x16xf32> to vector<1x8x16xf32>
    %141 = vector.shape_cast %133 : vector<8x16xf32> to vector<1x8x16xf32>
    %142 = vector.shape_cast %134 : vector<8x16xf32> to vector<1x8x16xf32>
    %143 = vector.shape_cast %135 : vector<8x16xf32> to vector<1x8x16xf32>
    %144 = tpu.concatenate %136, %137, %138, %139, %140, %141, %142, %143 in 0 : vector<1x8x16xf32>, vector<1x8x16xf32>, vector<1x8x16xf32>, vector<1x8x16xf32>, vector<1x8x16xf32>, vector<1x8x16xf32>, vector<1x8x16xf32>, vector<1x8x16xf32> -> vector<8x8x16xf32>
    %145 = vector.extract_strided_slice %126 {offsets = [0, 0], sizes = [16, 16], strides = [1, 1]} : vector<32x64xf32> to vector<16x16xf32>
    %146 = vector.extract_strided_slice %126 {offsets = [0, 16], sizes = [16, 16], strides = [1, 1]} : vector<32x64xf32> to vector<16x16xf32>
    %147 = vector.extract_strided_slice %126 {offsets = [0, 32], sizes = [16, 16], strides = [1, 1]} : vector<32x64xf32> to vector<16x16xf32>
    %148 = vector.extract_strided_slice %126 {offsets = [0, 48], sizes = [16, 16], strides = [1, 1]} : vector<32x64xf32> to vector<16x16xf32>
    %149 = vector.extract_strided_slice %126 {offsets = [16, 0], sizes = [16, 16], strides = [1, 1]} : vector<32x64xf32> to vector<16x16xf32>
    %150 = vector.extract_strided_slice %126 {offsets = [16, 16], sizes = [16, 16], strides = [1, 1]} : vector<32x64xf32> to vector<16x16xf32>
    %151 = vector.extract_strided_slice %126 {offsets = [16, 32], sizes = [16, 16], strides = [1, 1]} : vector<32x64xf32> to vector<16x16xf32>
    %152 = vector.extract_strided_slice %126 {offsets = [16, 48], sizes = [16, 16], strides = [1, 1]} : vector<32x64xf32> to vector<16x16xf32>
    %153 = vector.shape_cast %145 : vector<16x16xf32> to vector<1x16x16xf32>
    %154 = vector.shape_cast %146 : vector<16x16xf32> to vector<1x16x16xf32>
    %155 = vector.shape_cast %147 : vector<16x16xf32> to vector<1x16x16xf32>
    %156 = vector.shape_cast %148 : vector<16x16xf32> to vector<1x16x16xf32>
    %157 = vector.shape_cast %149 : vector<16x16xf32> to vector<1x16x16xf32>
    %158 = vector.shape_cast %150 : vector<16x16xf32> to vector<1x16x16xf32>
    %159 = vector.shape_cast %151 : vector<16x16xf32> to vector<1x16x16xf32>
    %160 = vector.shape_cast %152 : vector<16x16xf32> to vector<1x16x16xf32>
    %161 = tpu.concatenate %153, %154, %155, %156, %157, %158, %159, %160 in 0 : vector<1x16x16xf32>, vector<1x16x16xf32>, vector<1x16x16xf32>, vector<1x16x16xf32>, vector<1x16x16xf32>, vector<1x16x16xf32>, vector<1x16x16xf32>, vector<1x16x16xf32> -> vector<8x16x16xf32>
    %162 = vector.extract_strided_slice %127 {offsets = [0, 0], sizes = [16, 16], strides = [1, 1]} : vector<32x64xf32> to vector<16x16xf32>
    %163 = vector.extract_strided_slice %127 {offsets = [0, 16], sizes = [16, 16], strides = [1, 1]} : vector<32x64xf32> to vector<16x16xf32>
    %164 = vector.extract_strided_slice %127 {offsets = [0, 32], sizes = [16, 16], strides = [1, 1]} : vector<32x64xf32> to vector<16x16xf32>
    %165 = vector.extract_strided_slice %127 {offsets = [0, 48], sizes = [16, 16], strides = [1, 1]} : vector<32x64xf32> to vector<16x16xf32>
    %166 = vector.extract_strided_slice %127 {offsets = [16, 0], sizes = [16, 16], strides = [1, 1]} : vector<32x64xf32> to vector<16x16xf32>
    %167 = vector.extract_strided_slice %127 {offsets = [16, 16], sizes = [16, 16], strides = [1, 1]} : vector<32x64xf32> to vector<16x16xf32>
    %168 = vector.extract_strided_slice %127 {offsets = [16, 32], sizes = [16, 16], strides = [1, 1]} : vector<32x64xf32> to vector<16x16xf32>
    %169 = vector.extract_strided_slice %127 {offsets = [16, 48], sizes = [16, 16], strides = [1, 1]} : vector<32x64xf32> to vector<16x16xf32>
    %170 = vector.shape_cast %162 : vector<16x16xf32> to vector<1x16x16xf32>
    %171 = vector.shape_cast %163 : vector<16x16xf32> to vector<1x16x16xf32>
    %172 = vector.shape_cast %164 : vector<16x16xf32> to vector<1x16x16xf32>
    %173 = vector.shape_cast %165 : vector<16x16xf32> to vector<1x16x16xf32>
    %174 = vector.shape_cast %166 : vector<16x16xf32> to vector<1x16x16xf32>
    %175 = vector.shape_cast %167 : vector<16x16xf32> to vector<1x16x16xf32>
    %176 = vector.shape_cast %168 : vector<16x16xf32> to vector<1x16x16xf32>
    %177 = vector.shape_cast %169 : vector<16x16xf32> to vector<1x16x16xf32>
    %178 = tpu.concatenate %170, %171, %172, %173, %174, %175, %176, %177 in 0 : vector<1x16x16xf32>, vector<1x16x16xf32>, vector<1x16x16xf32>, vector<1x16x16xf32>, vector<1x16x16xf32>, vector<1x16x16xf32>, vector<1x16x16xf32>, vector<1x16x16xf32> -> vector<8x16x16xf32>
    %cst_43 = arith.constant dense<0.000000e+00> : vector<8x8x16xf32>
    %179 = tpu.matmul %144, %161, %cst_43 {dimension_numbers = #tpu.dot_dimension_numbers<[2], [2], [1], [1], [0, 0, 0, 1, 1, 1], [0], [0]>} : vector<8x8x16xf32>, vector<8x16x16xf32>, vector<8x8x16xf32> -> vector<8x8x16xf32>
    %cst_44 = arith.constant 2.500000e-01 : f32
    %180 = vector.broadcast %cst_44 : f32 to vector<8x8x16xf32>
    %181 = arith.mulf %179, %180 : vector<8x8x16xf32>
    %cst_45 = arith.constant dense<0xFF800000> : vector<8x8xf32>
    %182 = vector.multi_reduction <maximumf>, %181, %cst_45 [2] : vector<8x8x16xf32> to vector<8x8xf32>
    %183 = vector.shape_cast %182 : vector<8x8xf32> to vector<8x8x1xf32>
    %184 = vector.broadcast %183 : vector<8x8x1xf32> to vector<8x8x16xf32>
    %185 = arith.subf %181, %184 : vector<8x8x16xf32>
    %186 = math.exp %185 : vector<8x8x16xf32>
    %cst_46 = arith.constant dense<0.000000e+00> : vector<8x8xf32>
    %187 = vector.multi_reduction <add>, %186, %cst_46 [2] : vector<8x8x16xf32> to vector<8x8xf32>
    %188 = vector.shape_cast %187 : vector<8x8xf32> to vector<8x8x1xf32>
    %189 = vector.broadcast %188 : vector<8x8x1xf32> to vector<8x8x16xf32>
    %190 = arith.divf %186, %189 : vector<8x8x16xf32>
    %cst_47 = arith.constant dense<0.000000e+00> : vector<8x8x16xf32>
    %191 = tpu.matmul %190, %178, %cst_47 {dimension_numbers = #tpu.dot_dimension_numbers<[2], [1], [1], [2], [0, 0, 0, 1, 1, 2], [0], [0]>} : vector<8x8x16xf32>, vector<8x16x16xf32>, vector<8x8x16xf32> -> vector<8x8x16xf32>
    %192 = vector.extract_strided_slice %191 {offsets = [0, 0, 0], sizes = [1, 8, 16], strides = [1, 1, 1]} : vector<8x8x16xf32> to vector<1x8x16xf32>
    %193 = vector.shape_cast %192 : vector<1x8x16xf32> to vector<8x16xf32>
    %194 = vector.extract_strided_slice %191 {offsets = [1, 0, 0], sizes = [1, 8, 16], strides = [1, 1, 1]} : vector<8x8x16xf32> to vector<1x8x16xf32>
    %195 = vector.shape_cast %194 : vector<1x8x16xf32> to vector<8x16xf32>
    %196 = vector.extract_strided_slice %191 {offsets = [2, 0, 0], sizes = [1, 8, 16], strides = [1, 1, 1]} : vector<8x8x16xf32> to vector<1x8x16xf32>
    %197 = vector.shape_cast %196 : vector<1x8x16xf32> to vector<8x16xf32>
    %198 = vector.extract_strided_slice %191 {offsets = [3, 0, 0], sizes = [1, 8, 16], strides = [1, 1, 1]} : vector<8x8x16xf32> to vector<1x8x16xf32>
    %199 = vector.shape_cast %198 : vector<1x8x16xf32> to vector<8x16xf32>
    %200 = tpu.concatenate %193, %195, %197, %199 in 1 : vector<8x16xf32>, vector<8x16xf32>, vector<8x16xf32>, vector<8x16xf32> -> vector<8x64xf32>
    %201 = vector.extract_strided_slice %191 {offsets = [4, 0, 0], sizes = [1, 8, 16], strides = [1, 1, 1]} : vector<8x8x16xf32> to vector<1x8x16xf32>
    %202 = vector.shape_cast %201 : vector<1x8x16xf32> to vector<8x16xf32>
    %203 = vector.extract_strided_slice %191 {offsets = [5, 0, 0], sizes = [1, 8, 16], strides = [1, 1, 1]} : vector<8x8x16xf32> to vector<1x8x16xf32>
    %204 = vector.shape_cast %203 : vector<1x8x16xf32> to vector<8x16xf32>
    %205 = vector.extract_strided_slice %191 {offsets = [6, 0, 0], sizes = [1, 8, 16], strides = [1, 1, 1]} : vector<8x8x16xf32> to vector<1x8x16xf32>
    %206 = vector.shape_cast %205 : vector<1x8x16xf32> to vector<8x16xf32>
    %207 = vector.extract_strided_slice %191 {offsets = [7, 0, 0], sizes = [1, 8, 16], strides = [1, 1, 1]} : vector<8x8x16xf32> to vector<1x8x16xf32>
    %208 = vector.shape_cast %207 : vector<1x8x16xf32> to vector<8x16xf32>
    %209 = tpu.concatenate %202, %204, %206, %208 in 1 : vector<8x16xf32>, vector<8x16xf32>, vector<8x16xf32>, vector<8x16xf32> -> vector<8x64xf32>
    %210 = tpu.concatenate %200, %209 in 0 : vector<8x64xf32>, vector<8x64xf32> -> vector<16x64xf32>
    %c0_48 = arith.constant 0 : index
    %c0_49 = arith.constant 0 : index
    %c0_50 = arith.constant 0 : index
    %211 = vector.load %arg12[%c0_48, %c0_49, %c0_50] : memref<2x64x64xf32, #tpu.memory_space<vmem>>, vector<1x64x64xf32>
    %212 = vector.shape_cast %211 : vector<1x64x64xf32> to vector<64x64xf32>
    %cst_51 = arith.constant dense<0.000000e+00> : vector<16x64xf32>
    %213 = tpu.matmul %210, %212, %cst_51 {dimension_numbers = #tpu.dot_dimension_numbers<[1], [1], [0], [0], [0, 0, 1, 0], [], []>} : vector<16x64xf32>, vector<64x64xf32>, vector<16x64xf32> -> vector<16x64xf32>
    %c0_52 = arith.constant 0 : index
    %c0_53 = arith.constant 0 : index
    %c0_54 = arith.constant 0 : index
    %214 = vector.load %arg13[%c0_52, %c0_53, %c0_54] : memref<2x1x64xf32, #tpu.memory_space<vmem>>, vector<1x1x64xf32>
    %215 = vector.shape_cast %214 : vector<1x1x64xf32> to vector<1x64xf32>
    %216 = vector.broadcast %215 : vector<1x64xf32> to vector<16x64xf32>
    %217 = arith.addf %213, %216 : vector<16x64xf32>
    %c0_55 = arith.constant 0 : index
    %c0_56 = arith.constant 0 : index
    %c0_57 = arith.constant 0 : index
    %218 = vector.load %arg14[%c0_55, %c0_56, %c0_57] : memref<2x1x64xf32, #tpu.memory_space<vmem>>, vector<1x1x64xf32>
    %219 = vector.shape_cast %218 : vector<1x1x64xf32> to vector<1x64xf32>
    %c0_58 = arith.constant 0 : index
    %c0_59 = arith.constant 0 : index
    %c0_60 = arith.constant 0 : index
    %220 = vector.load %arg15[%c0_58, %c0_59, %c0_60] : memref<2x1x64xf32, #tpu.memory_space<vmem>>, vector<1x1x64xf32>
    %221 = vector.shape_cast %220 : vector<1x1x64xf32> to vector<1x64xf32>
    %cst_61 = arith.constant dense<0.000000e+00> : vector<16xf32>
    %222 = vector.multi_reduction <add>, %217, %cst_61 [1] : vector<16x64xf32> to vector<16xf32>
    %223 = vector.shape_cast %222 : vector<16xf32> to vector<16x1xf32>
    %cst_62 = arith.constant 6.400000e+01 : f32
    %224 = vector.broadcast %cst_62 : f32 to vector<16x1xf32>
    %225 = arith.divf %223, %224 : vector<16x1xf32>
    %226 = vector.broadcast %225 : vector<16x1xf32> to vector<16x64xf32>
    %227 = arith.subf %217, %226 : vector<16x64xf32>
    %228 = arith.mulf %227, %227 : vector<16x64xf32>
    %cst_63 = arith.constant dense<0.000000e+00> : vector<16xf32>
    %229 = vector.multi_reduction <add>, %228, %cst_63 [1] : vector<16x64xf32> to vector<16xf32>
    %230 = vector.shape_cast %229 : vector<16xf32> to vector<16x1xf32>
    %cst_64 = arith.constant 6.400000e+01 : f32
    %231 = vector.broadcast %cst_64 : f32 to vector<16x1xf32>
    %232 = arith.divf %230, %231 : vector<16x1xf32>
    %233 = vector.broadcast %225 : vector<16x1xf32> to vector<16x64xf32>
    %234 = arith.subf %217, %233 : vector<16x64xf32>
    %cst_65 = arith.constant 9.99999974E-6 : f32
    %235 = vector.broadcast %cst_65 : f32 to vector<16x1xf32>
    %236 = arith.addf %232, %235 : vector<16x1xf32>
    %237 = math.rsqrt %236 : vector<16x1xf32>
    %238 = vector.broadcast %237 : vector<16x1xf32> to vector<16x64xf32>
    %239 = arith.mulf %234, %238 : vector<16x64xf32>
    %240 = vector.broadcast %219 : vector<1x64xf32> to vector<16x64xf32>
    %241 = arith.mulf %239, %240 : vector<16x64xf32>
    %242 = vector.broadcast %221 : vector<1x64xf32> to vector<16x64xf32>
    %243 = arith.addf %241, %242 : vector<16x64xf32>
    %c0_66 = arith.constant 0 : index
    %c0_67 = arith.constant 0 : index
    %c0_68 = arith.constant 0 : index
    %244 = vector.load %arg16[%c0_66, %c0_67, %c0_68] : memref<2x256x64xf32, #tpu.memory_space<vmem>>, vector<1x256x64xf32>
    %245 = vector.shape_cast %244 : vector<1x256x64xf32> to vector<256x64xf32>
    %cst_69 = arith.constant dense<0.000000e+00> : vector<16x256xf32>
    %246 = tpu.matmul %243, %245, %cst_69 {dimension_numbers = #tpu.dot_dimension_numbers<[1], [1], [0], [0], [0, 0, 1, 0], [], []>} : vector<16x64xf32>, vector<256x64xf32>, vector<16x256xf32> -> vector<16x256xf32>
    %c0_70 = arith.constant 0 : index
    %c0_71 = arith.constant 0 : index
    %c0_72 = arith.constant 0 : index
    %247 = vector.load %arg17[%c0_70, %c0_71, %c0_72] : memref<2x1x256xf32, #tpu.memory_space<vmem>>, vector<1x1x256xf32>
    %248 = vector.shape_cast %247 : vector<1x1x256xf32> to vector<1x256xf32>
    %249 = vector.broadcast %248 : vector<1x256xf32> to vector<16x256xf32>
    %250 = arith.addf %246, %249 : vector<16x256xf32>
    %cst_73 = arith.constant 5.000000e-01 : f32
    %251 = vector.broadcast %cst_73 : f32 to vector<16x256xf32>
    %252 = arith.mulf %251, %250 : vector<16x256xf32>
    %cst_74 = arith.constant 0.707106769 : f32
    %253 = vector.broadcast %cst_74 : f32 to vector<16x256xf32>
    %254 = arith.mulf %250, %253 : vector<16x256xf32>
    %255 = math.erf %254 : vector<16x256xf32>
    %cst_75 = arith.constant 1.000000e+00 : f32
    %256 = vector.broadcast %cst_75 : f32 to vector<16x256xf32>
    %257 = arith.addf %256, %255 : vector<16x256xf32>
    %258 = arith.mulf %252, %257 : vector<16x256xf32>
    %c0_76 = arith.constant 0 : index
    %c0_77 = arith.constant 0 : index
    %c0_78 = arith.constant 0 : index
    %259 = vector.load %arg18[%c0_76, %c0_77, %c0_78] : memref<2x64x256xf32, #tpu.memory_space<vmem>>, vector<1x64x256xf32>
    %260 = vector.shape_cast %259 : vector<1x64x256xf32> to vector<64x256xf32>
    %cst_79 = arith.constant dense<0.000000e+00> : vector<16x64xf32>
    %261 = tpu.matmul %258, %260, %cst_79 {dimension_numbers = #tpu.dot_dimension_numbers<[1], [1], [0], [0], [0, 0, 1, 0], [], []>} : vector<16x256xf32>, vector<64x256xf32>, vector<16x64xf32> -> vector<16x64xf32>
    %c0_80 = arith.constant 0 : index
    %c0_81 = arith.constant 0 : index
    %c0_82 = arith.constant 0 : index
    %262 = vector.load %arg19[%c0_80, %c0_81, %c0_82] : memref<2x1x64xf32, #tpu.memory_space<vmem>>, vector<1x1x64xf32>
    %263 = vector.shape_cast %262 : vector<1x1x64xf32> to vector<1x64xf32>
    %264 = vector.broadcast %263 : vector<1x64xf32> to vector<16x64xf32>
    %265 = arith.addf %261, %264 : vector<16x64xf32>
    %c0_83 = arith.constant 0 : index
    %c0_84 = arith.constant 0 : index
    %c0_85 = arith.constant 0 : index
    %266 = vector.load %arg20[%c0_83, %c0_84, %c0_85] : memref<2x1x64xf32, #tpu.memory_space<vmem>>, vector<1x1x64xf32>
    %267 = vector.shape_cast %266 : vector<1x1x64xf32> to vector<1x64xf32>
    %c0_86 = arith.constant 0 : index
    %c0_87 = arith.constant 0 : index
    %c0_88 = arith.constant 0 : index
    %268 = vector.load %arg21[%c0_86, %c0_87, %c0_88] : memref<2x1x64xf32, #tpu.memory_space<vmem>>, vector<1x1x64xf32>
    %269 = vector.shape_cast %268 : vector<1x1x64xf32> to vector<1x64xf32>
    %cst_89 = arith.constant dense<0.000000e+00> : vector<16xf32>
    %270 = vector.multi_reduction <add>, %265, %cst_89 [1] : vector<16x64xf32> to vector<16xf32>
    %271 = vector.shape_cast %270 : vector<16xf32> to vector<16x1xf32>
    %cst_90 = arith.constant 6.400000e+01 : f32
    %272 = vector.broadcast %cst_90 : f32 to vector<16x1xf32>
    %273 = arith.divf %271, %272 : vector<16x1xf32>
    %274 = vector.broadcast %273 : vector<16x1xf32> to vector<16x64xf32>
    %275 = arith.subf %265, %274 : vector<16x64xf32>
    %276 = arith.mulf %275, %275 : vector<16x64xf32>
    %cst_91 = arith.constant dense<0.000000e+00> : vector<16xf32>
    %277 = vector.multi_reduction <add>, %276, %cst_91 [1] : vector<16x64xf32> to vector<16xf32>
    %278 = vector.shape_cast %277 : vector<16xf32> to vector<16x1xf32>
    %cst_92 = arith.constant 6.400000e+01 : f32
    %279 = vector.broadcast %cst_92 : f32 to vector<16x1xf32>
    %280 = arith.divf %278, %279 : vector<16x1xf32>
    %281 = vector.broadcast %273 : vector<16x1xf32> to vector<16x64xf32>
    %282 = arith.subf %265, %281 : vector<16x64xf32>
    %cst_93 = arith.constant 9.99999974E-6 : f32
    %283 = vector.broadcast %cst_93 : f32 to vector<16x1xf32>
    %284 = arith.addf %280, %283 : vector<16x1xf32>
    %285 = math.rsqrt %284 : vector<16x1xf32>
    %286 = vector.broadcast %285 : vector<16x1xf32> to vector<16x64xf32>
    %287 = arith.mulf %282, %286 : vector<16x64xf32>
    %288 = vector.broadcast %267 : vector<1x64xf32> to vector<16x64xf32>
    %289 = arith.mulf %287, %288 : vector<16x64xf32>
    %290 = vector.broadcast %269 : vector<1x64xf32> to vector<16x64xf32>
    %291 = arith.addf %289, %290 : vector<16x64xf32>
    %c1_94 = arith.constant 1 : index
    %c0_95 = arith.constant 0 : index
    %c0_96 = arith.constant 0 : index
    %292 = vector.load %arg4[%c1_94, %c0_95, %c0_96] : memref<2x192x64xf32, #tpu.memory_space<vmem>>, vector<1x192x64xf32>
    %293 = vector.shape_cast %292 : vector<1x192x64xf32> to vector<192x64xf32>
    %cst_97 = arith.constant dense<0.000000e+00> : vector<16x192xf32>
    %294 = tpu.matmul %291, %293, %cst_97 {dimension_numbers = #tpu.dot_dimension_numbers<[1], [1], [0], [0], [0, 0, 1, 0], [], []>} : vector<16x64xf32>, vector<192x64xf32>, vector<16x192xf32> -> vector<16x192xf32>
    %c1_98 = arith.constant 1 : index
    %c0_99 = arith.constant 0 : index
    %c0_100 = arith.constant 0 : index
    %295 = vector.load %arg5[%c1_98, %c0_99, %c0_100] : memref<2x1x192xf32, #tpu.memory_space<vmem>>, vector<1x1x192xf32>
    %296 = vector.shape_cast %295 : vector<1x1x192xf32> to vector<1x192xf32>
    %297 = vector.broadcast %296 : vector<1x192xf32> to vector<16x192xf32>
    %298 = arith.addf %294, %297 : vector<16x192xf32>
    %299 = vector.extract_strided_slice %298 {offsets = [0, 0], sizes = [16, 64], strides = [1, 1]} : vector<16x192xf32> to vector<16x64xf32>
    %300 = vector.extract_strided_slice %298 {offsets = [0, 64], sizes = [16, 64], strides = [1, 1]} : vector<16x192xf32> to vector<16x64xf32>
    %301 = vector.extract_strided_slice %298 {offsets = [0, 128], sizes = [16, 64], strides = [1, 1]} : vector<16x192xf32> to vector<16x64xf32>
    %302 = vector.extract_strided_slice %299 {offsets = [0, 0], sizes = [8, 16], strides = [1, 1]} : vector<16x64xf32> to vector<8x16xf32>
    %303 = vector.extract_strided_slice %299 {offsets = [0, 16], sizes = [8, 16], strides = [1, 1]} : vector<16x64xf32> to vector<8x16xf32>
    %304 = vector.extract_strided_slice %299 {offsets = [0, 32], sizes = [8, 16], strides = [1, 1]} : vector<16x64xf32> to vector<8x16xf32>
    %305 = vector.extract_strided_slice %299 {offsets = [0, 48], sizes = [8, 16], strides = [1, 1]} : vector<16x64xf32> to vector<8x16xf32>
    %306 = vector.extract_strided_slice %299 {offsets = [8, 0], sizes = [8, 16], strides = [1, 1]} : vector<16x64xf32> to vector<8x16xf32>
    %307 = vector.extract_strided_slice %299 {offsets = [8, 16], sizes = [8, 16], strides = [1, 1]} : vector<16x64xf32> to vector<8x16xf32>
    %308 = vector.extract_strided_slice %299 {offsets = [8, 32], sizes = [8, 16], strides = [1, 1]} : vector<16x64xf32> to vector<8x16xf32>
    %309 = vector.extract_strided_slice %299 {offsets = [8, 48], sizes = [8, 16], strides = [1, 1]} : vector<16x64xf32> to vector<8x16xf32>
    %310 = vector.shape_cast %302 : vector<8x16xf32> to vector<1x8x16xf32>
    %311 = vector.shape_cast %303 : vector<8x16xf32> to vector<1x8x16xf32>
    %312 = vector.shape_cast %304 : vector<8x16xf32> to vector<1x8x16xf32>
    %313 = vector.shape_cast %305 : vector<8x16xf32> to vector<1x8x16xf32>
    %314 = vector.shape_cast %306 : vector<8x16xf32> to vector<1x8x16xf32>
    %315 = vector.shape_cast %307 : vector<8x16xf32> to vector<1x8x16xf32>
    %316 = vector.shape_cast %308 : vector<8x16xf32> to vector<1x8x16xf32>
    %317 = vector.shape_cast %309 : vector<8x16xf32> to vector<1x8x16xf32>
    %318 = tpu.concatenate %310, %311, %312, %313, %314, %315, %316, %317 in 0 : vector<1x8x16xf32>, vector<1x8x16xf32>, vector<1x8x16xf32>, vector<1x8x16xf32>, vector<1x8x16xf32>, vector<1x8x16xf32>, vector<1x8x16xf32>, vector<1x8x16xf32> -> vector<8x8x16xf32>
    %319 = vector.extract_strided_slice %300 {offsets = [0, 0], sizes = [8, 16], strides = [1, 1]} : vector<16x64xf32> to vector<8x16xf32>
    %320 = vector.extract_strided_slice %300 {offsets = [0, 16], sizes = [8, 16], strides = [1, 1]} : vector<16x64xf32> to vector<8x16xf32>
    %321 = vector.extract_strided_slice %300 {offsets = [0, 32], sizes = [8, 16], strides = [1, 1]} : vector<16x64xf32> to vector<8x16xf32>
    %322 = vector.extract_strided_slice %300 {offsets = [0, 48], sizes = [8, 16], strides = [1, 1]} : vector<16x64xf32> to vector<8x16xf32>
    %323 = vector.extract_strided_slice %300 {offsets = [8, 0], sizes = [8, 16], strides = [1, 1]} : vector<16x64xf32> to vector<8x16xf32>
    %324 = vector.extract_strided_slice %300 {offsets = [8, 16], sizes = [8, 16], strides = [1, 1]} : vector<16x64xf32> to vector<8x16xf32>
    %325 = vector.extract_strided_slice %300 {offsets = [8, 32], sizes = [8, 16], strides = [1, 1]} : vector<16x64xf32> to vector<8x16xf32>
    %326 = vector.extract_strided_slice %300 {offsets = [8, 48], sizes = [8, 16], strides = [1, 1]} : vector<16x64xf32> to vector<8x16xf32>
    %327 = vector.shape_cast %319 : vector<8x16xf32> to vector<1x8x16xf32>
    %328 = vector.shape_cast %320 : vector<8x16xf32> to vector<1x8x16xf32>
    %329 = vector.shape_cast %321 : vector<8x16xf32> to vector<1x8x16xf32>
    %330 = vector.shape_cast %322 : vector<8x16xf32> to vector<1x8x16xf32>
    %331 = vector.shape_cast %323 : vector<8x16xf32> to vector<1x8x16xf32>
    %332 = vector.shape_cast %324 : vector<8x16xf32> to vector<1x8x16xf32>
    %333 = vector.shape_cast %325 : vector<8x16xf32> to vector<1x8x16xf32>
    %334 = vector.shape_cast %326 : vector<8x16xf32> to vector<1x8x16xf32>
    %335 = tpu.concatenate %327, %328, %329, %330, %331, %332, %333, %334 in 0 : vector<1x8x16xf32>, vector<1x8x16xf32>, vector<1x8x16xf32>, vector<1x8x16xf32>, vector<1x8x16xf32>, vector<1x8x16xf32>, vector<1x8x16xf32>, vector<1x8x16xf32> -> vector<8x8x16xf32>
    %336 = vector.extract_strided_slice %301 {offsets = [0, 0], sizes = [8, 16], strides = [1, 1]} : vector<16x64xf32> to vector<8x16xf32>
    %337 = vector.extract_strided_slice %301 {offsets = [0, 16], sizes = [8, 16], strides = [1, 1]} : vector<16x64xf32> to vector<8x16xf32>
    %338 = vector.extract_strided_slice %301 {offsets = [0, 32], sizes = [8, 16], strides = [1, 1]} : vector<16x64xf32> to vector<8x16xf32>
    %339 = vector.extract_strided_slice %301 {offsets = [0, 48], sizes = [8, 16], strides = [1, 1]} : vector<16x64xf32> to vector<8x16xf32>
    %340 = vector.extract_strided_slice %301 {offsets = [8, 0], sizes = [8, 16], strides = [1, 1]} : vector<16x64xf32> to vector<8x16xf32>
    %341 = vector.extract_strided_slice %301 {offsets = [8, 16], sizes = [8, 16], strides = [1, 1]} : vector<16x64xf32> to vector<8x16xf32>
    %342 = vector.extract_strided_slice %301 {offsets = [8, 32], sizes = [8, 16], strides = [1, 1]} : vector<16x64xf32> to vector<8x16xf32>
    %343 = vector.extract_strided_slice %301 {offsets = [8, 48], sizes = [8, 16], strides = [1, 1]} : vector<16x64xf32> to vector<8x16xf32>
    %344 = vector.shape_cast %336 : vector<8x16xf32> to vector<1x8x16xf32>
    %345 = vector.shape_cast %337 : vector<8x16xf32> to vector<1x8x16xf32>
    %346 = vector.shape_cast %338 : vector<8x16xf32> to vector<1x8x16xf32>
    %347 = vector.shape_cast %339 : vector<8x16xf32> to vector<1x8x16xf32>
    %348 = vector.shape_cast %340 : vector<8x16xf32> to vector<1x8x16xf32>
    %349 = vector.shape_cast %341 : vector<8x16xf32> to vector<1x8x16xf32>
    %350 = vector.shape_cast %342 : vector<8x16xf32> to vector<1x8x16xf32>
    %351 = vector.shape_cast %343 : vector<8x16xf32> to vector<1x8x16xf32>
    %352 = tpu.concatenate %344, %345, %346, %347, %348, %349, %350, %351 in 0 : vector<1x8x16xf32>, vector<1x8x16xf32>, vector<1x8x16xf32>, vector<1x8x16xf32>, vector<1x8x16xf32>, vector<1x8x16xf32>, vector<1x8x16xf32>, vector<1x8x16xf32> -> vector<8x8x16xf32>
    %cst_101 = arith.constant dense<0.000000e+00> : vector<8x8x8xf32>
    %353 = tpu.matmul %318, %335, %cst_101 {dimension_numbers = #tpu.dot_dimension_numbers<[2], [2], [1], [1], [0, 0, 0, 1, 1, 1], [0], [0]>} : vector<8x8x16xf32>, vector<8x8x16xf32>, vector<8x8x8xf32> -> vector<8x8x8xf32>
    %cst_102 = arith.constant 2.500000e-01 : f32
    %354 = vector.broadcast %cst_102 : f32 to vector<8x8x8xf32>
    %355 = arith.mulf %353, %354 : vector<8x8x8xf32>
    %cst_103 = arith.constant dense<0xFF800000> : vector<8x8xf32>
    %356 = vector.multi_reduction <maximumf>, %355, %cst_103 [2] : vector<8x8x8xf32> to vector<8x8xf32>
    %357 = vector.shape_cast %356 : vector<8x8xf32> to vector<8x8x1xf32>
    %358 = vector.broadcast %357 : vector<8x8x1xf32> to vector<8x8x8xf32>
    %359 = arith.subf %355, %358 : vector<8x8x8xf32>
    %360 = math.exp %359 : vector<8x8x8xf32>
    %cst_104 = arith.constant dense<0.000000e+00> : vector<8x8xf32>
    %361 = vector.multi_reduction <add>, %360, %cst_104 [2] : vector<8x8x8xf32> to vector<8x8xf32>
    %362 = vector.shape_cast %361 : vector<8x8xf32> to vector<8x8x1xf32>
    %363 = vector.broadcast %362 : vector<8x8x1xf32> to vector<8x8x8xf32>
    %364 = arith.divf %360, %363 : vector<8x8x8xf32>
    %cst_105 = arith.constant dense<0.000000e+00> : vector<8x8x16xf32>
    %365 = tpu.matmul %364, %352, %cst_105 {dimension_numbers = #tpu.dot_dimension_numbers<[2], [1], [1], [2], [0, 0, 0, 1, 1, 2], [0], [0]>} : vector<8x8x8xf32>, vector<8x8x16xf32>, vector<8x8x16xf32> -> vector<8x8x16xf32>
    %366 = vector.extract_strided_slice %365 {offsets = [0, 0, 0], sizes = [1, 8, 16], strides = [1, 1, 1]} : vector<8x8x16xf32> to vector<1x8x16xf32>
    %367 = vector.shape_cast %366 : vector<1x8x16xf32> to vector<8x16xf32>
    %368 = vector.extract_strided_slice %365 {offsets = [1, 0, 0], sizes = [1, 8, 16], strides = [1, 1, 1]} : vector<8x8x16xf32> to vector<1x8x16xf32>
    %369 = vector.shape_cast %368 : vector<1x8x16xf32> to vector<8x16xf32>
    %370 = vector.extract_strided_slice %365 {offsets = [2, 0, 0], sizes = [1, 8, 16], strides = [1, 1, 1]} : vector<8x8x16xf32> to vector<1x8x16xf32>
    %371 = vector.shape_cast %370 : vector<1x8x16xf32> to vector<8x16xf32>
    %372 = vector.extract_strided_slice %365 {offsets = [3, 0, 0], sizes = [1, 8, 16], strides = [1, 1, 1]} : vector<8x8x16xf32> to vector<1x8x16xf32>
    %373 = vector.shape_cast %372 : vector<1x8x16xf32> to vector<8x16xf32>
    %374 = tpu.concatenate %367, %369, %371, %373 in 1 : vector<8x16xf32>, vector<8x16xf32>, vector<8x16xf32>, vector<8x16xf32> -> vector<8x64xf32>
    %375 = vector.extract_strided_slice %365 {offsets = [4, 0, 0], sizes = [1, 8, 16], strides = [1, 1, 1]} : vector<8x8x16xf32> to vector<1x8x16xf32>
    %376 = vector.shape_cast %375 : vector<1x8x16xf32> to vector<8x16xf32>
    %377 = vector.extract_strided_slice %365 {offsets = [5, 0, 0], sizes = [1, 8, 16], strides = [1, 1, 1]} : vector<8x8x16xf32> to vector<1x8x16xf32>
    %378 = vector.shape_cast %377 : vector<1x8x16xf32> to vector<8x16xf32>
    %379 = vector.extract_strided_slice %365 {offsets = [6, 0, 0], sizes = [1, 8, 16], strides = [1, 1, 1]} : vector<8x8x16xf32> to vector<1x8x16xf32>
    %380 = vector.shape_cast %379 : vector<1x8x16xf32> to vector<8x16xf32>
    %381 = vector.extract_strided_slice %365 {offsets = [7, 0, 0], sizes = [1, 8, 16], strides = [1, 1, 1]} : vector<8x8x16xf32> to vector<1x8x16xf32>
    %382 = vector.shape_cast %381 : vector<1x8x16xf32> to vector<8x16xf32>
    %383 = tpu.concatenate %376, %378, %380, %382 in 1 : vector<8x16xf32>, vector<8x16xf32>, vector<8x16xf32>, vector<8x16xf32> -> vector<8x64xf32>
    %384 = tpu.concatenate %374, %383 in 0 : vector<8x64xf32>, vector<8x64xf32> -> vector<16x64xf32>
    %c1_106 = arith.constant 1 : index
    %c0_107 = arith.constant 0 : index
    %c0_108 = arith.constant 0 : index
    %385 = vector.load %arg6[%c1_106, %c0_107, %c0_108] : memref<2x64x64xf32, #tpu.memory_space<vmem>>, vector<1x64x64xf32>
    %386 = vector.shape_cast %385 : vector<1x64x64xf32> to vector<64x64xf32>
    %cst_109 = arith.constant dense<0.000000e+00> : vector<16x64xf32>
    %387 = tpu.matmul %384, %386, %cst_109 {dimension_numbers = #tpu.dot_dimension_numbers<[1], [1], [0], [0], [0, 0, 1, 0], [], []>} : vector<16x64xf32>, vector<64x64xf32>, vector<16x64xf32> -> vector<16x64xf32>
    %c1_110 = arith.constant 1 : index
    %c0_111 = arith.constant 0 : index
    %c0_112 = arith.constant 0 : index
    %388 = vector.load %arg7[%c1_110, %c0_111, %c0_112] : memref<2x1x64xf32, #tpu.memory_space<vmem>>, vector<1x1x64xf32>
    %389 = vector.shape_cast %388 : vector<1x1x64xf32> to vector<1x64xf32>
    %390 = vector.broadcast %389 : vector<1x64xf32> to vector<16x64xf32>
    %391 = arith.addf %387, %390 : vector<16x64xf32>
    %c1_113 = arith.constant 1 : index
    %c0_114 = arith.constant 0 : index
    %c0_115 = arith.constant 0 : index
    %392 = vector.load %arg8[%c1_113, %c0_114, %c0_115] : memref<2x64x64xf32, #tpu.memory_space<vmem>>, vector<1x64x64xf32>
    %393 = vector.shape_cast %392 : vector<1x64x64xf32> to vector<64x64xf32>
    %cst_116 = arith.constant dense<0.000000e+00> : vector<16x64xf32>
    %394 = tpu.matmul %391, %393, %cst_116 {dimension_numbers = #tpu.dot_dimension_numbers<[1], [1], [0], [0], [0, 0, 1, 0], [], []>} : vector<16x64xf32>, vector<64x64xf32>, vector<16x64xf32> -> vector<16x64xf32>
    %c1_117 = arith.constant 1 : index
    %c0_118 = arith.constant 0 : index
    %c0_119 = arith.constant 0 : index
    %395 = vector.load %arg9[%c1_117, %c0_118, %c0_119] : memref<2x1x64xf32, #tpu.memory_space<vmem>>, vector<1x1x64xf32>
    %396 = vector.shape_cast %395 : vector<1x1x64xf32> to vector<1x64xf32>
    %397 = vector.broadcast %396 : vector<1x64xf32> to vector<16x64xf32>
    %398 = arith.addf %394, %397 : vector<16x64xf32>
    %c1_120 = arith.constant 1 : index
    %c0_121 = arith.constant 0 : index
    %c0_122 = arith.constant 0 : index
    %399 = vector.load %arg10[%c1_120, %c0_121, %c0_122] : memref<2x128x64xf32, #tpu.memory_space<vmem>>, vector<1x128x64xf32>
    %400 = vector.shape_cast %399 : vector<1x128x64xf32> to vector<128x64xf32>
    %cst_123 = arith.constant dense<0.000000e+00> : vector<32x128xf32>
    %401 = tpu.matmul %9, %400, %cst_123 {dimension_numbers = #tpu.dot_dimension_numbers<[1], [1], [0], [0], [0, 0, 1, 0], [], []>} : vector<32x64xf32>, vector<128x64xf32>, vector<32x128xf32> -> vector<32x128xf32>
    %c1_124 = arith.constant 1 : index
    %c0_125 = arith.constant 0 : index
    %c0_126 = arith.constant 0 : index
    %402 = vector.load %arg11[%c1_124, %c0_125, %c0_126] : memref<2x1x128xf32, #tpu.memory_space<vmem>>, vector<1x1x128xf32>
    %403 = vector.shape_cast %402 : vector<1x1x128xf32> to vector<1x128xf32>
    %404 = vector.broadcast %403 : vector<1x128xf32> to vector<32x128xf32>
    %405 = arith.addf %401, %404 : vector<32x128xf32>
    %406 = vector.extract_strided_slice %405 {offsets = [0, 0], sizes = [32, 64], strides = [1, 1]} : vector<32x128xf32> to vector<32x64xf32>
    %407 = vector.extract_strided_slice %405 {offsets = [0, 64], sizes = [32, 64], strides = [1, 1]} : vector<32x128xf32> to vector<32x64xf32>
    %408 = vector.extract_strided_slice %398 {offsets = [0, 0], sizes = [8, 16], strides = [1, 1]} : vector<16x64xf32> to vector<8x16xf32>
    %409 = vector.extract_strided_slice %398 {offsets = [0, 16], sizes = [8, 16], strides = [1, 1]} : vector<16x64xf32> to vector<8x16xf32>
    %410 = vector.extract_strided_slice %398 {offsets = [0, 32], sizes = [8, 16], strides = [1, 1]} : vector<16x64xf32> to vector<8x16xf32>
    %411 = vector.extract_strided_slice %398 {offsets = [0, 48], sizes = [8, 16], strides = [1, 1]} : vector<16x64xf32> to vector<8x16xf32>
    %412 = vector.extract_strided_slice %398 {offsets = [8, 0], sizes = [8, 16], strides = [1, 1]} : vector<16x64xf32> to vector<8x16xf32>
    %413 = vector.extract_strided_slice %398 {offsets = [8, 16], sizes = [8, 16], strides = [1, 1]} : vector<16x64xf32> to vector<8x16xf32>
    %414 = vector.extract_strided_slice %398 {offsets = [8, 32], sizes = [8, 16], strides = [1, 1]} : vector<16x64xf32> to vector<8x16xf32>
    %415 = vector.extract_strided_slice %398 {offsets = [8, 48], sizes = [8, 16], strides = [1, 1]} : vector<16x64xf32> to vector<8x16xf32>
    %416 = vector.shape_cast %408 : vector<8x16xf32> to vector<1x8x16xf32>
    %417 = vector.shape_cast %409 : vector<8x16xf32> to vector<1x8x16xf32>
    %418 = vector.shape_cast %410 : vector<8x16xf32> to vector<1x8x16xf32>
    %419 = vector.shape_cast %411 : vector<8x16xf32> to vector<1x8x16xf32>
    %420 = vector.shape_cast %412 : vector<8x16xf32> to vector<1x8x16xf32>
    %421 = vector.shape_cast %413 : vector<8x16xf32> to vector<1x8x16xf32>
    %422 = vector.shape_cast %414 : vector<8x16xf32> to vector<1x8x16xf32>
    %423 = vector.shape_cast %415 : vector<8x16xf32> to vector<1x8x16xf32>
    %424 = tpu.concatenate %416, %417, %418, %419, %420, %421, %422, %423 in 0 : vector<1x8x16xf32>, vector<1x8x16xf32>, vector<1x8x16xf32>, vector<1x8x16xf32>, vector<1x8x16xf32>, vector<1x8x16xf32>, vector<1x8x16xf32>, vector<1x8x16xf32> -> vector<8x8x16xf32>
    %425 = vector.extract_strided_slice %406 {offsets = [0, 0], sizes = [16, 16], strides = [1, 1]} : vector<32x64xf32> to vector<16x16xf32>
    %426 = vector.extract_strided_slice %406 {offsets = [0, 16], sizes = [16, 16], strides = [1, 1]} : vector<32x64xf32> to vector<16x16xf32>
    %427 = vector.extract_strided_slice %406 {offsets = [0, 32], sizes = [16, 16], strides = [1, 1]} : vector<32x64xf32> to vector<16x16xf32>
    %428 = vector.extract_strided_slice %406 {offsets = [0, 48], sizes = [16, 16], strides = [1, 1]} : vector<32x64xf32> to vector<16x16xf32>
    %429 = vector.extract_strided_slice %406 {offsets = [16, 0], sizes = [16, 16], strides = [1, 1]} : vector<32x64xf32> to vector<16x16xf32>
    %430 = vector.extract_strided_slice %406 {offsets = [16, 16], sizes = [16, 16], strides = [1, 1]} : vector<32x64xf32> to vector<16x16xf32>
    %431 = vector.extract_strided_slice %406 {offsets = [16, 32], sizes = [16, 16], strides = [1, 1]} : vector<32x64xf32> to vector<16x16xf32>
    %432 = vector.extract_strided_slice %406 {offsets = [16, 48], sizes = [16, 16], strides = [1, 1]} : vector<32x64xf32> to vector<16x16xf32>
    %433 = vector.shape_cast %425 : vector<16x16xf32> to vector<1x16x16xf32>
    %434 = vector.shape_cast %426 : vector<16x16xf32> to vector<1x16x16xf32>
    %435 = vector.shape_cast %427 : vector<16x16xf32> to vector<1x16x16xf32>
    %436 = vector.shape_cast %428 : vector<16x16xf32> to vector<1x16x16xf32>
    %437 = vector.shape_cast %429 : vector<16x16xf32> to vector<1x16x16xf32>
    %438 = vector.shape_cast %430 : vector<16x16xf32> to vector<1x16x16xf32>
    %439 = vector.shape_cast %431 : vector<16x16xf32> to vector<1x16x16xf32>
    %440 = vector.shape_cast %432 : vector<16x16xf32> to vector<1x16x16xf32>
    %441 = tpu.concatenate %433, %434, %435, %436, %437, %438, %439, %440 in 0 : vector<1x16x16xf32>, vector<1x16x16xf32>, vector<1x16x16xf32>, vector<1x16x16xf32>, vector<1x16x16xf32>, vector<1x16x16xf32>, vector<1x16x16xf32>, vector<1x16x16xf32> -> vector<8x16x16xf32>
    %442 = vector.extract_strided_slice %407 {offsets = [0, 0], sizes = [16, 16], strides = [1, 1]} : vector<32x64xf32> to vector<16x16xf32>
    %443 = vector.extract_strided_slice %407 {offsets = [0, 16], sizes = [16, 16], strides = [1, 1]} : vector<32x64xf32> to vector<16x16xf32>
    %444 = vector.extract_strided_slice %407 {offsets = [0, 32], sizes = [16, 16], strides = [1, 1]} : vector<32x64xf32> to vector<16x16xf32>
    %445 = vector.extract_strided_slice %407 {offsets = [0, 48], sizes = [16, 16], strides = [1, 1]} : vector<32x64xf32> to vector<16x16xf32>
    %446 = vector.extract_strided_slice %407 {offsets = [16, 0], sizes = [16, 16], strides = [1, 1]} : vector<32x64xf32> to vector<16x16xf32>
    %447 = vector.extract_strided_slice %407 {offsets = [16, 16], sizes = [16, 16], strides = [1, 1]} : vector<32x64xf32> to vector<16x16xf32>
    %448 = vector.extract_strided_slice %407 {offsets = [16, 32], sizes = [16, 16], strides = [1, 1]} : vector<32x64xf32> to vector<16x16xf32>
    %449 = vector.extract_strided_slice %407 {offsets = [16, 48], sizes = [16, 16], strides = [1, 1]} : vector<32x64xf32> to vector<16x16xf32>
    %450 = vector.shape_cast %442 : vector<16x16xf32> to vector<1x16x16xf32>
    %451 = vector.shape_cast %443 : vector<16x16xf32> to vector<1x16x16xf32>
    %452 = vector.shape_cast %444 : vector<16x16xf32> to vector<1x16x16xf32>
    %453 = vector.shape_cast %445 : vector<16x16xf32> to vector<1x16x16xf32>
    %454 = vector.shape_cast %446 : vector<16x16xf32> to vector<1x16x16xf32>
    %455 = vector.shape_cast %447 : vector<16x16xf32> to vector<1x16x16xf32>
    %456 = vector.shape_cast %448 : vector<16x16xf32> to vector<1x16x16xf32>
    %457 = vector.shape_cast %449 : vector<16x16xf32> to vector<1x16x16xf32>
    %458 = tpu.concatenate %450, %451, %452, %453, %454, %455, %456, %457 in 0 : vector<1x16x16xf32>, vector<1x16x16xf32>, vector<1x16x16xf32>, vector<1x16x16xf32>, vector<1x16x16xf32>, vector<1x16x16xf32>, vector<1x16x16xf32>, vector<1x16x16xf32> -> vector<8x16x16xf32>
    %cst_127 = arith.constant dense<0.000000e+00> : vector<8x8x16xf32>
    %459 = tpu.matmul %424, %441, %cst_127 {dimension_numbers = #tpu.dot_dimension_numbers<[2], [2], [1], [1], [0, 0, 0, 1, 1, 1], [0], [0]>} : vector<8x8x16xf32>, vector<8x16x16xf32>, vector<8x8x16xf32> -> vector<8x8x16xf32>
    %cst_128 = arith.constant 2.500000e-01 : f32
    %460 = vector.broadcast %cst_128 : f32 to vector<8x8x16xf32>
    %461 = arith.mulf %459, %460 : vector<8x8x16xf32>
    %cst_129 = arith.constant dense<0xFF800000> : vector<8x8xf32>
    %462 = vector.multi_reduction <maximumf>, %461, %cst_129 [2] : vector<8x8x16xf32> to vector<8x8xf32>
    %463 = vector.shape_cast %462 : vector<8x8xf32> to vector<8x8x1xf32>
    %464 = vector.broadcast %463 : vector<8x8x1xf32> to vector<8x8x16xf32>
    %465 = arith.subf %461, %464 : vector<8x8x16xf32>
    %466 = math.exp %465 : vector<8x8x16xf32>
    %cst_130 = arith.constant dense<0.000000e+00> : vector<8x8xf32>
    %467 = vector.multi_reduction <add>, %466, %cst_130 [2] : vector<8x8x16xf32> to vector<8x8xf32>
    %468 = vector.shape_cast %467 : vector<8x8xf32> to vector<8x8x1xf32>
    %469 = vector.broadcast %468 : vector<8x8x1xf32> to vector<8x8x16xf32>
    %470 = arith.divf %466, %469 : vector<8x8x16xf32>
    %cst_131 = arith.constant dense<0.000000e+00> : vector<8x8x16xf32>
    %471 = tpu.matmul %470, %458, %cst_131 {dimension_numbers = #tpu.dot_dimension_numbers<[2], [1], [1], [2], [0, 0, 0, 1, 1, 2], [0], [0]>} : vector<8x8x16xf32>, vector<8x16x16xf32>, vector<8x8x16xf32> -> vector<8x8x16xf32>
    %472 = vector.extract_strided_slice %471 {offsets = [0, 0, 0], sizes = [1, 8, 16], strides = [1, 1, 1]} : vector<8x8x16xf32> to vector<1x8x16xf32>
    %473 = vector.shape_cast %472 : vector<1x8x16xf32> to vector<8x16xf32>
    %474 = vector.extract_strided_slice %471 {offsets = [1, 0, 0], sizes = [1, 8, 16], strides = [1, 1, 1]} : vector<8x8x16xf32> to vector<1x8x16xf32>
    %475 = vector.shape_cast %474 : vector<1x8x16xf32> to vector<8x16xf32>
    %476 = vector.extract_strided_slice %471 {offsets = [2, 0, 0], sizes = [1, 8, 16], strides = [1, 1, 1]} : vector<8x8x16xf32> to vector<1x8x16xf32>
    %477 = vector.shape_cast %476 : vector<1x8x16xf32> to vector<8x16xf32>
    %478 = vector.extract_strided_slice %471 {offsets = [3, 0, 0], sizes = [1, 8, 16], strides = [1, 1, 1]} : vector<8x8x16xf32> to vector<1x8x16xf32>
    %479 = vector.shape_cast %478 : vector<1x8x16xf32> to vector<8x16xf32>
    %480 = tpu.concatenate %473, %475, %477, %479 in 1 : vector<8x16xf32>, vector<8x16xf32>, vector<8x16xf32>, vector<8x16xf32> -> vector<8x64xf32>
    %481 = vector.extract_strided_slice %471 {offsets = [4, 0, 0], sizes = [1, 8, 16], strides = [1, 1, 1]} : vector<8x8x16xf32> to vector<1x8x16xf32>
    %482 = vector.shape_cast %481 : vector<1x8x16xf32> to vector<8x16xf32>
    %483 = vector.extract_strided_slice %471 {offsets = [5, 0, 0], sizes = [1, 8, 16], strides = [1, 1, 1]} : vector<8x8x16xf32> to vector<1x8x16xf32>
    %484 = vector.shape_cast %483 : vector<1x8x16xf32> to vector<8x16xf32>
    %485 = vector.extract_strided_slice %471 {offsets = [6, 0, 0], sizes = [1, 8, 16], strides = [1, 1, 1]} : vector<8x8x16xf32> to vector<1x8x16xf32>
    %486 = vector.shape_cast %485 : vector<1x8x16xf32> to vector<8x16xf32>
    %487 = vector.extract_strided_slice %471 {offsets = [7, 0, 0], sizes = [1, 8, 16], strides = [1, 1, 1]} : vector<8x8x16xf32> to vector<1x8x16xf32>
    %488 = vector.shape_cast %487 : vector<1x8x16xf32> to vector<8x16xf32>
    %489 = tpu.concatenate %482, %484, %486, %488 in 1 : vector<8x16xf32>, vector<8x16xf32>, vector<8x16xf32>, vector<8x16xf32> -> vector<8x64xf32>
    %490 = tpu.concatenate %480, %489 in 0 : vector<8x64xf32>, vector<8x64xf32> -> vector<16x64xf32>
    %c1_132 = arith.constant 1 : index
    %c0_133 = arith.constant 0 : index
    %c0_134 = arith.constant 0 : index
    %491 = vector.load %arg12[%c1_132, %c0_133, %c0_134] : memref<2x64x64xf32, #tpu.memory_space<vmem>>, vector<1x64x64xf32>
    %492 = vector.shape_cast %491 : vector<1x64x64xf32> to vector<64x64xf32>
    %cst_135 = arith.constant dense<0.000000e+00> : vector<16x64xf32>
    %493 = tpu.matmul %490, %492, %cst_135 {dimension_numbers = #tpu.dot_dimension_numbers<[1], [1], [0], [0], [0, 0, 1, 0], [], []>} : vector<16x64xf32>, vector<64x64xf32>, vector<16x64xf32> -> vector<16x64xf32>
    %c1_136 = arith.constant 1 : index
    %c0_137 = arith.constant 0 : index
    %c0_138 = arith.constant 0 : index
    %494 = vector.load %arg13[%c1_136, %c0_137, %c0_138] : memref<2x1x64xf32, #tpu.memory_space<vmem>>, vector<1x1x64xf32>
    %495 = vector.shape_cast %494 : vector<1x1x64xf32> to vector<1x64xf32>
    %496 = vector.broadcast %495 : vector<1x64xf32> to vector<16x64xf32>
    %497 = arith.addf %493, %496 : vector<16x64xf32>
    %c1_139 = arith.constant 1 : index
    %c0_140 = arith.constant 0 : index
    %c0_141 = arith.constant 0 : index
    %498 = vector.load %arg14[%c1_139, %c0_140, %c0_141] : memref<2x1x64xf32, #tpu.memory_space<vmem>>, vector<1x1x64xf32>
    %499 = vector.shape_cast %498 : vector<1x1x64xf32> to vector<1x64xf32>
    %c1_142 = arith.constant 1 : index
    %c0_143 = arith.constant 0 : index
    %c0_144 = arith.constant 0 : index
    %500 = vector.load %arg15[%c1_142, %c0_143, %c0_144] : memref<2x1x64xf32, #tpu.memory_space<vmem>>, vector<1x1x64xf32>
    %501 = vector.shape_cast %500 : vector<1x1x64xf32> to vector<1x64xf32>
    %cst_145 = arith.constant dense<0.000000e+00> : vector<16xf32>
    %502 = vector.multi_reduction <add>, %497, %cst_145 [1] : vector<16x64xf32> to vector<16xf32>
    %503 = vector.shape_cast %502 : vector<16xf32> to vector<16x1xf32>
    %cst_146 = arith.constant 6.400000e+01 : f32
    %504 = vector.broadcast %cst_146 : f32 to vector<16x1xf32>
    %505 = arith.divf %503, %504 : vector<16x1xf32>
    %506 = vector.broadcast %505 : vector<16x1xf32> to vector<16x64xf32>
    %507 = arith.subf %497, %506 : vector<16x64xf32>
    %508 = arith.mulf %507, %507 : vector<16x64xf32>
    %cst_147 = arith.constant dense<0.000000e+00> : vector<16xf32>
    %509 = vector.multi_reduction <add>, %508, %cst_147 [1] : vector<16x64xf32> to vector<16xf32>
    %510 = vector.shape_cast %509 : vector<16xf32> to vector<16x1xf32>
    %cst_148 = arith.constant 6.400000e+01 : f32
    %511 = vector.broadcast %cst_148 : f32 to vector<16x1xf32>
    %512 = arith.divf %510, %511 : vector<16x1xf32>
    %513 = vector.broadcast %505 : vector<16x1xf32> to vector<16x64xf32>
    %514 = arith.subf %497, %513 : vector<16x64xf32>
    %cst_149 = arith.constant 9.99999974E-6 : f32
    %515 = vector.broadcast %cst_149 : f32 to vector<16x1xf32>
    %516 = arith.addf %512, %515 : vector<16x1xf32>
    %517 = math.rsqrt %516 : vector<16x1xf32>
    %518 = vector.broadcast %517 : vector<16x1xf32> to vector<16x64xf32>
    %519 = arith.mulf %514, %518 : vector<16x64xf32>
    %520 = vector.broadcast %499 : vector<1x64xf32> to vector<16x64xf32>
    %521 = arith.mulf %519, %520 : vector<16x64xf32>
    %522 = vector.broadcast %501 : vector<1x64xf32> to vector<16x64xf32>
    %523 = arith.addf %521, %522 : vector<16x64xf32>
    %c1_150 = arith.constant 1 : index
    %c0_151 = arith.constant 0 : index
    %c0_152 = arith.constant 0 : index
    %524 = vector.load %arg16[%c1_150, %c0_151, %c0_152] : memref<2x256x64xf32, #tpu.memory_space<vmem>>, vector<1x256x64xf32>
    %525 = vector.shape_cast %524 : vector<1x256x64xf32> to vector<256x64xf32>
    %cst_153 = arith.constant dense<0.000000e+00> : vector<16x256xf32>
    %526 = tpu.matmul %523, %525, %cst_153 {dimension_numbers = #tpu.dot_dimension_numbers<[1], [1], [0], [0], [0, 0, 1, 0], [], []>} : vector<16x64xf32>, vector<256x64xf32>, vector<16x256xf32> -> vector<16x256xf32>
    %c1_154 = arith.constant 1 : index
    %c0_155 = arith.constant 0 : index
    %c0_156 = arith.constant 0 : index
    %527 = vector.load %arg17[%c1_154, %c0_155, %c0_156] : memref<2x1x256xf32, #tpu.memory_space<vmem>>, vector<1x1x256xf32>
    %528 = vector.shape_cast %527 : vector<1x1x256xf32> to vector<1x256xf32>
    %529 = vector.broadcast %528 : vector<1x256xf32> to vector<16x256xf32>
    %530 = arith.addf %526, %529 : vector<16x256xf32>
    %cst_157 = arith.constant 5.000000e-01 : f32
    %531 = vector.broadcast %cst_157 : f32 to vector<16x256xf32>
    %532 = arith.mulf %531, %530 : vector<16x256xf32>
    %cst_158 = arith.constant 0.707106769 : f32
    %533 = vector.broadcast %cst_158 : f32 to vector<16x256xf32>
    %534 = arith.mulf %530, %533 : vector<16x256xf32>
    %535 = math.erf %534 : vector<16x256xf32>
    %cst_159 = arith.constant 1.000000e+00 : f32
    %536 = vector.broadcast %cst_159 : f32 to vector<16x256xf32>
    %537 = arith.addf %536, %535 : vector<16x256xf32>
    %538 = arith.mulf %532, %537 : vector<16x256xf32>
    %c1_160 = arith.constant 1 : index
    %c0_161 = arith.constant 0 : index
    %c0_162 = arith.constant 0 : index
    %539 = vector.load %arg18[%c1_160, %c0_161, %c0_162] : memref<2x64x256xf32, #tpu.memory_space<vmem>>, vector<1x64x256xf32>
    %540 = vector.shape_cast %539 : vector<1x64x256xf32> to vector<64x256xf32>
    %cst_163 = arith.constant dense<0.000000e+00> : vector<16x64xf32>
    %541 = tpu.matmul %538, %540, %cst_163 {dimension_numbers = #tpu.dot_dimension_numbers<[1], [1], [0], [0], [0, 0, 1, 0], [], []>} : vector<16x256xf32>, vector<64x256xf32>, vector<16x64xf32> -> vector<16x64xf32>
    %c1_164 = arith.constant 1 : index
    %c0_165 = arith.constant 0 : index
    %c0_166 = arith.constant 0 : index
    %542 = vector.load %arg19[%c1_164, %c0_165, %c0_166] : memref<2x1x64xf32, #tpu.memory_space<vmem>>, vector<1x1x64xf32>
    %543 = vector.shape_cast %542 : vector<1x1x64xf32> to vector<1x64xf32>
    %544 = vector.broadcast %543 : vector<1x64xf32> to vector<16x64xf32>
    %545 = arith.addf %541, %544 : vector<16x64xf32>
    %c1_167 = arith.constant 1 : index
    %c0_168 = arith.constant 0 : index
    %c0_169 = arith.constant 0 : index
    %546 = vector.load %arg20[%c1_167, %c0_168, %c0_169] : memref<2x1x64xf32, #tpu.memory_space<vmem>>, vector<1x1x64xf32>
    %547 = vector.shape_cast %546 : vector<1x1x64xf32> to vector<1x64xf32>
    %c1_170 = arith.constant 1 : index
    %c0_171 = arith.constant 0 : index
    %c0_172 = arith.constant 0 : index
    %548 = vector.load %arg21[%c1_170, %c0_171, %c0_172] : memref<2x1x64xf32, #tpu.memory_space<vmem>>, vector<1x1x64xf32>
    %549 = vector.shape_cast %548 : vector<1x1x64xf32> to vector<1x64xf32>
    %cst_173 = arith.constant dense<0.000000e+00> : vector<16xf32>
    %550 = vector.multi_reduction <add>, %545, %cst_173 [1] : vector<16x64xf32> to vector<16xf32>
    %551 = vector.shape_cast %550 : vector<16xf32> to vector<16x1xf32>
    %cst_174 = arith.constant 6.400000e+01 : f32
    %552 = vector.broadcast %cst_174 : f32 to vector<16x1xf32>
    %553 = arith.divf %551, %552 : vector<16x1xf32>
    %554 = vector.broadcast %553 : vector<16x1xf32> to vector<16x64xf32>
    %555 = arith.subf %545, %554 : vector<16x64xf32>
    %556 = arith.mulf %555, %555 : vector<16x64xf32>
    %cst_175 = arith.constant dense<0.000000e+00> : vector<16xf32>
    %557 = vector.multi_reduction <add>, %556, %cst_175 [1] : vector<16x64xf32> to vector<16xf32>
    %558 = vector.shape_cast %557 : vector<16xf32> to vector<16x1xf32>
    %cst_176 = arith.constant 6.400000e+01 : f32
    %559 = vector.broadcast %cst_176 : f32 to vector<16x1xf32>
    %560 = arith.divf %558, %559 : vector<16x1xf32>
    %561 = vector.broadcast %553 : vector<16x1xf32> to vector<16x64xf32>
    %562 = arith.subf %545, %561 : vector<16x64xf32>
    %cst_177 = arith.constant 9.99999974E-6 : f32
    %563 = vector.broadcast %cst_177 : f32 to vector<16x1xf32>
    %564 = arith.addf %560, %563 : vector<16x1xf32>
    %565 = math.rsqrt %564 : vector<16x1xf32>
    %566 = vector.broadcast %565 : vector<16x1xf32> to vector<16x64xf32>
    %567 = arith.mulf %562, %566 : vector<16x64xf32>
    %568 = vector.broadcast %547 : vector<1x64xf32> to vector<16x64xf32>
    %569 = arith.mulf %567, %568 : vector<16x64xf32>
    %570 = vector.broadcast %549 : vector<1x64xf32> to vector<16x64xf32>
    %571 = arith.addf %569, %570 : vector<16x64xf32>
    %c0_178 = arith.constant 0 : index
    %c0_179 = arith.constant 0 : index
    %572 = vector.load %arg22[%c0_178, %c0_179] : memref<64x64xf32, #tpu.memory_space<vmem>>, vector<64x64xf32>
    %cst_180 = arith.constant dense<0.000000e+00> : vector<16x64xf32>
    %573 = tpu.matmul %571, %572, %cst_180 {dimension_numbers = #tpu.dot_dimension_numbers<[1], [1], [0], [0], [0, 0, 1, 0], [], []>} : vector<16x64xf32>, vector<64x64xf32>, vector<16x64xf32> -> vector<16x64xf32>
    %c0_181 = arith.constant 0 : index
    %c0_182 = arith.constant 0 : index
    %574 = vector.load %arg23[%c0_181, %c0_182] : memref<1x64xf32, #tpu.memory_space<vmem>>, vector<1x64xf32>
    %575 = vector.broadcast %574 : vector<1x64xf32> to vector<16x64xf32>
    %576 = arith.addf %573, %575 : vector<16x64xf32>
    %577 = vector.extract_strided_slice %576 {offsets = [0, 0], sizes = [8, 64], strides = [1, 1]} : vector<16x64xf32> to vector<8x64xf32>
    %578 = vector.extract_strided_slice %576 {offsets = [8, 0], sizes = [8, 64], strides = [1, 1]} : vector<16x64xf32> to vector<8x64xf32>
    %579 = tpu.concatenate %577, %578 in 1 : vector<8x64xf32>, vector<8x64xf32> -> vector<8x128xf32>
    %c0_183 = arith.constant 0 : index
    %c0_184 = arith.constant 0 : index
    %580 = vector.load %arg24[%c0_183, %c0_184] : memref<8x128xf32, #tpu.memory_space<vmem>>, vector<8x128xf32>
    tpu.vector_store %arg24[%c0_183, %c0_184], %579 {strides = array<i32>} : memref<8x128xf32, #tpu.memory_space<vmem>>, vector<8x128xf32>,
    return
  }
}

</mosaic_0001>

<bundles_post_ra>
// kernel: tpu_custom_call.1
= control target key start
LH: loop header
LB: loop body
LE: loop exit
PB: predicated region body
PF: predicated region fallthrough
CT: control target
= control target key end

     0   :  { %s13212_s0 = inlined_call_operand.vmem [shape: f32[2,16,768], index: 0, kind: input, shape index: {}]   ;;  %s13213_s1 = inlined_call_operand.vmem [shape: f32[8,64], index: 1, kind: input, shape index: {}]   ;;  %s13214_s2 = inlined_call_operand.vmem [shape: f32[64,768], index: 2, kind: input, shape index: {}]   ;;  %s13215_s3 = inlined_call_operand.hbm [shape: f32[1,64], index: 3, kind: input, shape index: {}]   ;;  %s13216_s4 = inlined_call_operand.vmem [shape: f32[2,192,64], index: 4, kind: input, shape index: {}]   ;;  %s13217_s5 = inlined_call_operand.vmem [shape: f32[2,1,192], index: 5, kind: input, shape index: {}]   ;;  %s13218_s6 = inlined_call_operand.vmem [shape: f32[2,64,64], index: 6, kind: input, shape index: {}]   ;;  %s13219_s7 = inlined_call_operand.vmem [shape: f32[2,1,64], index: 7, kind: input, shape index: {}]   ;;  %s13220_s8 = inlined_call_operand.vmem [shape: f32[2,64,64], index: 8, kind: input, shape index: {}]   ;;  %s13221_s9 = inlined_call_operand.hbm [shape: f32[2,1,64], index: 9, kind: input, shape index: {}]   ;;  %s13222_s10 = inlined_call_operand.vmem [shape: f32[2,128,64], index: 10, kind: input, shape index: {}]   ;;  %s13223_s11 = inlined_call_operand.vmem [shape: f32[2,1,128], index: 11, kind: input, shape index: {}]   ;;  %s13224_s12 = inlined_call_operand.vmem [shape: f32[2,64,64], index: 12, kind: input, shape index: {}]   ;;  %s13225_s13 = inlined_call_operand.vmem [shape: f32[2,1,64], index: 13, kind: input, shape index: {}]   ;;  %s13226_s14 = inlined_call_operand.vmem [shape: f32[2,1,64], index: 14, kind: input, shape index: {}]   ;;  %s13227_s15 = inlined_call_operand.vmem [shape: f32[2,1,64], index: 15, kind: input, shape index: {}]   ;;  %s13228_s16 = inlined_call_operand.vmem [shape: f32[2,256,64], index: 16, kind: input, shape index: {}]   ;;  %s13229_s17 = inlined_call_operand.vmem [shape: f32[2,1,256], index: 17, kind: input, shape index: {}]   ;;  %s13230_s18 = inlined_call_operand.vmem [shape: f32[2,64,256], index: 18, kind: input, shape index: {}]   ;;  %s13231_s19 = inlined_call_operand.vmem [shape: f32[2,1,64], index: 19, kind: input, shape index: {}]   ;;  %s13232_s20 = inlined_call_operand.vmem [shape: f32[2,1,64], index: 20, kind: input, shape index: {}]   ;;  %s13233_s21 = inlined_call_operand.vmem [shape: f32[2,1,64], index: 21, kind: input, shape index: {}]   ;;  %s13234_s22 = inlined_call_operand.vmem [shape: f32[64,64], index: 22, kind: input, shape index: {}]   ;;  %s13235_s23 = inlined_call_operand.vmem [shape: f32[1,64], index: 23, kind: input, shape index: {}]   ;;  %s13236_s24 = inlined_call_operand.hbm [shape: f32[8,128], index: 24, kind: output, shape index: {}]  }
   0x1   :  { %13265 = sst [smem:[#allocation11_spill]] %s13212_s0 }
   0x2   :  { %13266 = sst [smem:[#allocation12_spill]] %s13213_s1 }
   0x3   :  { %13267 = sst [smem:[#allocation13_spill]] %s13214_s2 }
   0x4   :  { %13268 = sst [smem:[#allocation14_spill]] %s13215_s3 }
   0x5   :  { %13269 = sst [smem:[#allocation15_spill]] %s13216_s4 }
   0x6   :  { %13270 = sst [smem:[#allocation16_spill]] %s13217_s5 }
   0x7   :  { %13271 = sst [smem:[#allocation17_spill]] %s13218_s6 }
   0x8   :  { %13272 = sst [smem:[#allocation18_spill]] %s13219_s7 }
   0x9   :  { %13273 = sst [smem:[#allocation19_spill]] %s13220_s8 }
   0xa   :  { %13274 = sst [smem:[#allocation20_spill]] %s13223_s11 }
   0xb   :  { %13275 = sst [smem:[#allocation21_spill]] %s13224_s12 }
   0xc   :  { %13276 = sst [smem:[#allocation22_spill]] %s13225_s13 }
   0xd   :  { %13277 = sst [smem:[#allocation23_spill]] %s13234_s22 }
   0xe   :  { %13278 = sst [smem:[#allocation24_spill]] %s13235_s23 }
   0xf   :  { %13279 = sst [smem:[#allocation25_spill]] %s13236_s24 }
  0x10   :  { %29 = vsyncpa [#allocation3], 0 }
  0x11   :  { %30 = vsyncpa [#allocation6], 0 }
  0x12   :  { %31 = vsyncpa [#allocation4], 0  ;;  %s10892_s5 = smov [#allocation2]   ;;  %s10893_s27 = smov [#allocation5]  }
  0x13   :  { %s44_s26 = sshll.u32 %s10892_s5, 4  ;;  %s63_s28 = sshll.u32 %s10893_s27, 4  ;;  %s45_s26 = int_to_ptr.vmem [resolvable:$true] %s44_s26  ;;  %s11031_s28 = int_to_ptr.vmem [resolvable:$true] %s63_s28 }
  0x14   :  { %s13280_s29 = sld [smem:[#allocation14_spill]] }
  0x1a   :  { %s10820_s0 = scalar_lea.hbm %s13280_s29, 16 }
  0x1b   :  { %p10821_p0 = scmp.ne.s32.totalorder %s13280_s29, %s10820_s0  ;;  %p10824_p1 = scmp.lt.u32.totalorder %s10820_s0, %s13280_s29 }
  0x1d   :  { %p10826_p2 = pnand %p10824_p1, %p10821_p0 }
  0x1f   :  { %10829 = shalt.err (!%p10826_p2)
}
  0x20   :  { %s10830_s8 = scalar_lea.vmem %s45_s26, 16  ;;  %s10834_s4 = scalar_lea.vmem %s45_s26, 32 }
  0x21   :  { %p10831_p3 = scmp.ne.s32.totalorder %s45_s26, %s10830_s8  ;;  %p10835_p4 = scmp.lt.s32.totalorder %s45_s26, %s45_s26 }
  0x22   :  { %p10836_p5 = scmp.lt.s32.totalorder %s10834_s4, %s10830_s8 }
  0x24   :  { %p10837_p6 = por %p10836_p5, %p10835_p4 }
  0x26   :  { %p10838_p7 = pnand %p10837_p6, %p10831_p3 }
  0x28   :  { %10841 = shalt.err (!%p10838_p7)
}
  0x29   :  { %47 = dma.hbm_to_vmem [thread:$0]  %s13280_s29, 16, %s45_s26, [#allocation3]  }
  0x2a   :  { %s10842_s2 = scalar_lea.hbm %s13221_s9, 32 }
  0x2b   :  { %p10843_p8 = scmp.ne.s32.totalorder %s13221_s9, %s10842_s2  ;;  %p10846_p9 = scmp.lt.u32.totalorder %s10842_s2, %s13221_s9 }
  0x2d   :  { %p10848_p10 = pnand %p10846_p9, %p10843_p8 }
  0x2f   :  { %10851 = shalt.err (!%p10848_p10)
}
  0x30   :  { %s10852_s25 = scalar_lea.vmem %s11031_s28, 32  ;;  %p10857_p12 = scmp.lt.s32.totalorder %s11031_s28, %s11031_s28 }
  0x31   :  { %p10853_p11 = scmp.ne.s32.totalorder %s11031_s28, %s10852_s25  ;;  %p10858_p13 = scmp.lt.s32.totalorder %s10852_s25, %s10852_s25 }
  0x33   :  { %p10859_p0 = por %p10858_p13, %p10857_p12 }
  0x35   :  { %p10860_p1 = pnand %p10859_p0, %p10853_p11 }
  0x37   :  { %10863 = shalt.err (!%p10860_p1)
}
  0x38   :  { %s13245_s26 = smov 16   ;;  %s10895_s29 = smov 1  }
  0x39   :  { %69 = dma.hbm_to_vmem [thread:$0]  %s13221_s9, 32, %s11031_s28, [#allocation6], %s13245_s26, %s13245_s26, %s10895_s29  }
  0x3a   :  { %10886 = dma.done.wait [#allocation3], 16  }
  0x3b   :  { %10887 = vsyncadd [#allocation3], 4294967280 }
  0x3c   :  { %10888 = dma.done.wait [#allocation6], 32  }
  0x3d   :  { %10889 = vsyncadd [#allocation6], 4294967264  ;;  %v10896_v0 = vmov 0.0|0.0   ;;  %v10897_v1 = vmov 0.0   ;;  %vm476_vm0 = vcmask 523264   ;;  %s13281_s27 = sld [smem:[#allocation15_spill]] }
  0x3e   :  { %9886 = vmatprep.subr.bf16.mxu1 %v10896_v0  ;;  %616 = vmatprep.mubr.f32.mxu1 %v10897_v1  ;;  %vm11074_vm1 = vmpackc.low %vm476_vm0, %vm476_vm0  ;;  %s13284_s30 = sld [smem:[#allocation12_spill]]  ;;  %s13285_s29 = sld [smem:[#allocation13_spill]]  ;;  %vm10900_vm2 = vmmov 0   ;;  %vm665_vm3 = vcmask 130048   ;;  %vm1280_vm4 = vcmask 64512   ;;  %vm1966_vm5 = vcmask 261120  }
  0x3f   :  { %s13286_s5 = sld [smem:[#allocation11_spill]]  ;;  %s13287_s7 = sld [smem:[#allocation16_spill]]  ;;  %vm1968_vm6 = vcmask 392192   ;;  %vm11782_vm7 = vmpackc.low %vm665_vm3, %vm665_vm3 }
  0x40   :  { %s13247_s9 = smov 80   ;;  %s13251_s28 = smov 112  }
  0x41   :  { %s13288_s8 = smov 80   ;;  %s13253_s6 = smov 64  }
  0x42   :  { %s13291_s3 = sld [smem:[#allocation17_spill]]  ;;  %s13258_s25 = smov 32  }
  0x43   :  { %v440_v2 = vld [vmem:[%s13281_s27] sm:$0xff]  ;;  %v441_v3 = vld [vmem:[%s13281_s27 + $0x8] sm:$0xff]  ;;  %v442_v6 = vld [vmem:[%s13281_s27 + $0x10] sm:$0xff]  ;;  %s13256_s4 = smov 48   ;;  %s13293_s26 = sld [smem:[#allocation19_spill]] }
  0x44   :  { %v9887_v5 = vpack.c.bf16 %v441_v3, %v440_v2  ;;  %v443_v7 = vld [vmem:[%s13281_s27 + $0x18] sm:$0xff]  ;;  %v444_v9 = vld [vmem:[%s13281_s27 + $0x20] sm:$0xff]  ;;  %v445_v10 = vld [vmem:[%s13281_s27 + $0x28] sm:$0xff]  ;;  %s13294_s0 = sld [smem:[#allocation18_spill]]  ;;  %s13304_s24 = sld [smem:[#allocation23_spill]] }
  0x45   :  { %v9891_v8 = vpack.c.bf16 %v443_v7, %v442_v6  ;;  %v9895_v11 = vpack.c.bf16 %v445_v10, %v444_v9  ;;  %v446_v12 = vld [vmem:[%s13281_s27 + $0x30] sm:$0xff]  ;;  %v447_v13 = vld [vmem:[%s13281_s27 + $0x38] sm:$0xff]  ;;  %v448_v15 = vld [vmem:[%s13281_s27 + $0x40] sm:$0xff]  ;;  %s13305_s23 = sld [smem:[#allocation24_spill]] }
  0x46   :  { %9889 = vmatpush1.bf16.xpose.msk.msra.mxu1 %vm11074_vm1, %v9887_v5  ;;  %v9899_v14 = vpack.c.bf16 %v447_v13, %v446_v12  ;;  %v449_v16 = vld [vmem:[%s13281_s27 + $0x48] sm:$0xff]  ;;  %v450_v18 = vld [vmem:[%s13281_s27 + $0x50] sm:$0xff]  ;;  %v451_v19 = vld [vmem:[%s13281_s27 + $0x58] sm:$0xff] }
  0x47   :  { %9890 = vmatprep.subr.bf16.mxu1 %v10896_v0  ;;  %v9903_v17 = vpack.c.bf16 %v449_v16, %v448_v15  ;;  %v9907_v20 = vpack.c.bf16 %v451_v19, %v450_v18  ;;  %v452_v21 = vld [vmem:[%s13281_s27 + $0x60] sm:$0xff]  ;;  %v453_v22 = vld [vmem:[%s13281_s27 + $0x68] sm:$0xff]  ;;  %v454_v24 = vld [vmem:[%s13281_s27 + $0x70] sm:$0xff] }
  0x48   :  { %v9911_v23 = vpack.c.bf16 %v453_v22, %v452_v21  ;;  %v455_v25 = vld [vmem:[%s13281_s27 + $0x78] sm:$0xff]  ;;  %v456_v27 = vld [vmem:[%s13281_s27 + $0x80] sm:$0xff]  ;;  %v457_v28 = vld [vmem:[%s13281_s27 + $0x88] sm:$0xff] }
  0x49   :  { %v9915_v26 = vpack.c.bf16 %v455_v25, %v454_v24  ;;  %v9919_v29 = vpack.c.bf16 %v457_v28, %v456_v27  ;;  %v458_v30 = vld [vmem:[%s13281_s27 + $0x90] sm:$0xff]  ;;  %v459_v31 = vld [vmem:[%s13281_s27 + $0x98] sm:$0xff]  ;;  %v460_v33 = vld [vmem:[%s13281_s27 + $0xa0] sm:$0xff] }
  0x4a   :  { %v9923_v32 = vpack.c.bf16 %v459_v31, %v458_v30  ;;  %v461_v34 = vld [vmem:[%s13281_s27 + $0xa8] sm:$0xff]  ;;  %v462_v36 = vld [vmem:[%s13281_s27 + $0xb0] sm:$0xff]  ;;  %v463_v37 = vld [vmem:[%s13281_s27 + $0xb8] sm:$0xff] }
  0x4b   :  { %v9927_v35 = vpack.c.bf16 %v461_v34, %v460_v33  ;;  %v9931_v38 = vpack.c.bf16 %v463_v37, %v462_v36  ;;  %v439_v39 = vld [vmem:[%s13284_s30] sm:$0xff]  ;;  %v130_v40 = vld [vmem:[%s13285_s29 + $0x8] sm:$0xff]  ;;  %v136_v41 = vld [vmem:[%s13285_s29 + $0x38] sm:$0xff]  ;;  %s13249_s30 = smov 96  }
  0x4c   :  { %v129_v42 = vld [vmem:[%s13285_s29] sm:$0xff]  ;;  %v9838_v43 = vpack.c.bf16 %v136_v41, %v130_v40  ;;  %v135_v44 = vld [vmem:[%s13285_s29 + $0x30] sm:$0xff]  ;;  %v142_v45 = vld [vmem:[%s13285_s29 + $0x68] sm:$0xff] }
  0x4d   :  { %v148_v46 = vld [vmem:[%s13285_s29 + $0x98] sm:$0xff]  ;;  %v9840_v47 = vpack.c.bf16 %v135_v44, %v129_v42  ;;  %v141_v49 = vld [vmem:[%s13285_s29 + $0x60] sm:$0xff]  ;;  %v147_v50 = vld [vmem:[%s13285_s29 + $0x90] sm:$0xff] }
  0x4e   :  { %9893 = vmatpush1.bf16.xpose.msk.msra.mxu1 %vm11074_vm1, %v9891_v8  ;;  %v9842_v48 = vpack.c.bf16 %v148_v46, %v142_v45  ;;  %9839 = vmatprep.subr.bf16.mxu0 %v9838_v43  ;;  %v105_v51 = vld [vmem:[%s13286_s5 + $0x8] sm:$0xff]  ;;  %v160_v53 = vld [vmem:[%s13285_s29 + $0xf8] sm:$0xff]  ;;  %v9844_v54 = vpack.c.bf16 %v147_v50, %v141_v49  ;;  %v153_v56 = vld [vmem:[%s13285_s29 + $0xc0] sm:$0xff] }
  0x4f   :  { %9894 = vmatprep.subr.bf16.mxu1 %v10896_v0  ;;  %9841 = vmatpush1.bf16.xpose.msra.mxu0 %v9840_v47  ;;  %v154_v52 = vld [vmem:[%s13285_s29 + $0xc8] sm:$0xff]  ;;  %v159_v57 = vld [vmem:[%s13285_s29 + $0xf0] sm:$0xff]  ;;  %v172_v59 = vld [vmem:[%s13285_s29 + $0x158] sm:$0xff] }
  0x50   :  { %9843 = vmatprep.subr.bf16.mxu0 %v9842_v48  ;;  %248 = vmatprep.mubr.f32.mxu0 %v105_v51  ;;  %v9846_v55 = vpack.c.bf16 %v160_v53, %v154_v52  ;;  %v166_v58 = vld [vmem:[%s13285_s29 + $0x128] sm:$0xff]  ;;  %v9848_v60 = vpack.c.bf16 %v159_v57, %v153_v56  ;;  %v165_v62 = vld [vmem:[%s13285_s29 + $0x120] sm:$0xff]  ;;  %v171_v63 = vld [vmem:[%s13285_s29 + $0x150] sm:$0xff] }
  0x51   :  { %v9850_v61 = vpack.c.bf16 %v172_v59, %v166_v58  ;;  %v132_v2 = vld [vmem:[%s13285_s29 + $0x18] sm:$0xff]  ;;  %v138_v3 = vld [vmem:[%s13285_s29 + $0x48] sm:$0xff]  ;;  %v9852_v5 = vpack.c.bf16 %v171_v63, %v165_v62  ;;  %v131_v7 = vld [vmem:[%s13285_s29 + $0x10] sm:$0xff] }
  0x52   :  { %v9854_v6 = vpack.c.bf16 %v138_v3, %v132_v2  ;;  %v137_v8 = vld [vmem:[%s13285_s29 + $0x40] sm:$0xff]  ;;  %v150_v12 = vld [vmem:[%s13285_s29 + $0xa8] sm:$0xff]  ;;  %v156_v18 = vld [vmem:[%s13285_s29 + $0xd8] sm:$0xff] }
  0x53   :  { %v104_v9 = vld [vmem:[%s13286_s5] sm:$0xff]  ;;  %v9856_v10 = vpack.c.bf16 %v137_v8, %v131_v7  ;;  %v162_v19 = vld [vmem:[%s13285_s29 + $0x108] sm:$0xff]  ;;  %v155_v21 = vld [vmem:[%s13285_s29 + $0xd0] sm:$0xff] }
  0x54   :  { %v149_v15 = vld [vmem:[%s13285_s29 + $0xa0] sm:$0xff]  ;;  %v111_v25 = vld [vmem:[%s13286_s5 + $0x38] sm:$0xff]  ;;  %v8408_v34 = vld [vmem:[%s13286_s5 + $0x68] sm:$0xff] }
  0x55   :  { %v161_v22 = vld [vmem:[%s13285_s29 + $0x100] sm:$0xff]  ;;  %v168_v28 = vld [vmem:[%s13285_s29 + $0x138] sm:$0xff]  ;;  %v8413_v41 = vld [vmem:[%s13286_s5 + $0x90] sm:$0xff] }
  0x56   :  { %9897 = vmatpush1.bf16.xpose.msk.msra.mxu1 %vm11074_vm1, %v9895_v11  ;;  %v144_v11 = vld [vmem:[%s13285_s29 + $0x78] sm:$0xff]  ;;  %v464_v30 = vld [vmem:[%s13287_s7] sm:$0x3]  ;;  %v134_v44 = vld [vmem:[%s13285_s29 + $0x28] sm:$0xff] }
  0x57   :  { %9898 = vmatprep.subr.bf16.mxu1 %v10896_v0  ;;  %9845 = vmatpush1.bf16.xpose.msra.mxu0 %v9844_v54  ;;  %v9858_v13 = vpack.c.bf16 %v150_v12, %v144_v11  ;;  %v173_v33 = vld [vmem:[%s13285_s29 + $0x160] sm:$0xff]  ;;  %v140_v45 = vld [vmem:[%s13285_s29 + $0x58] sm:$0xff]  ;;  %v139_v48 = vld [vmem:[%s13285_s29 + $0x50] sm:$0xff] }
  0x58   :  { %9847 = vmatprep.subr.bf16.mxu0 %v9846_v55  ;;  %v8407_v36 = vld [vmem:[%s13286_s5 + $0x60] sm:$0xff]  ;;  %v9870_v46 = vpack.c.bf16 %v140_v45, %v134_v44  ;;  %v107_v49 = vld [vmem:[%s13286_s5 + $0x18] sm:$0xff]  ;;  %v106_v53 = vld [vmem:[%s13286_s5 + $0x10] sm:$0xff] }
  0x59   :  { %v133_v47 = vld [vmem:[%s13285_s29 + $0x20] sm:$0xff]  ;;  %v146_v56 = vld [vmem:[%s13285_s29 + $0x88] sm:$0xff]  ;;  %v152_v57 = vld [vmem:[%s13285_s29 + $0xb8] sm:$0xff] }
  0x5a   :  { %v9872_v50 = vpack.c.bf16 %v139_v48, %v133_v47  ;;  %v9874_v59 = vpack.c.bf16 %v152_v57, %v146_v56  ;;  %v158_v62 = vld [vmem:[%s13285_s29 + $0xe8] sm:$0xff]  ;;  %v164_v63 = vld [vmem:[%s13285_s29 + $0x118] sm:$0xff]  ;;  %v112_v3 = vld [vmem:[%s13286_s5 + $0x40] sm:$0xff] }
  0x5b   :  { %v113_v2 = vld [vmem:[%s13286_s5 + $0x48] sm:$0xff]  ;;  %v9878_v7 = vpack.c.bf16 %v164_v63, %v158_v62  ;;  %v8409_v8 = vld [vmem:[%s13286_s5 + $0x70] sm:$0xff] }
  0x5c   :  { %v163_v11 = vld [vmem:[%s13285_s29 + $0x110] sm:$0xff]  ;;  %v170_v12 = vld [vmem:[%s13285_s29 + $0x148] sm:$0xff] }
  0x5e   :  { %9901 = vmatpush1.bf16.xpose.msk.msra.mxu1 %vm11074_vm1, %v9899_v14  ;;  %v143_v14 = vld [vmem:[%s13285_s29 + $0x70] sm:$0xff] }
  0x5f   :  { %9902 = vmatprep.subr.bf16.mxu1 %v10896_v0  ;;  %9849 = vmatpush1.bf16.xpose.msra.mxu0 %v9848_v60  ;;  %v9860_v16 = vpack.c.bf16 %v149_v15, %v143_v14  ;;  %v145_v60 = vld [vmem:[%s13285_s29 + $0x80] sm:$0xff] }
  0x60   :  { %9851 = vmatprep.subr.bf16.mxu0 %v9850_v61  ;;  %v151_v61 = vld [vmem:[%s13285_s29 + $0xb0] sm:$0xff]  ;;  %v8415_v14 = vld [vmem:[%s13286_s5 + $0xa0] sm:$0xff] }
  0x66   :  { %9905 = vmatpush1.bf16.xpose.msk.msra.mxu1 %vm11074_vm1, %v9903_v17  ;;  %v466_v17 = vlaneseq }
  0x67   :  { %9906 = vmatprep.subr.bf16.mxu1 %v10896_v0  ;;  %9853 = vmatpush1.bf16.xpose.msra.mxu0 %v9852_v5  ;;  %v8410_v5 = vld [vmem:[%s13286_s5 + $0x78] sm:$0xff] }
  0x68   :  { %9855 = vmatprep.subr.bf16.mxu0 %v9854_v6  ;;  %v467_v24 = vshrl.u32 %v466_v17, 7  ;;  %v9876_v6 = vpack.c.bf16 %v151_v61, %v145_v60 }
  0x6a   :  { %v11282_v27 = vsub.s32 0, %v467_v24  ;;  %v11309_v40 = vsub.s32 1, %v467_v24  ;;  %v8412_v24 = vld [vmem:[%s13286_s5 + $0x88] sm:$0xff] }
  0x6c   :  { %v469_v37 = vrot.slane %v464_v30, %v11282_v27  ;;  %v11338_v51 = vrot.slane %v464_v30, %v11309_v40 }
  0x6e   :  { %9909 = vmatpush1.bf16.xpose.msk.msra.mxu1 %vm11074_vm1, %v9907_v20  ;;  %249 = vmatmul.mubr.f32.vlgmr.msra.gmra.mrb[0].mxu0 %v104_v9  ;;  %v9862_v20 = vpack.c.bf16 %v162_v19, %v156_v18  ;;  %v8416_v9 = vld [vmem:[%s13286_s5 + $0xa8] sm:$0xff]  ;;  %v169_v18 = vld [vmem:[%s13285_s29 + $0x140] sm:$0xff]  ;;  %v175_v19 = vld [vmem:[%s13285_s29 + $0x170] sm:$0xff] }
  0x6f   :  { %9910 = vmatprep.subr.bf16.mxu1 %v10896_v0  ;;  %9857 = vmatpush1.bf16.xpose.msra.mxu0 %v9856_v10  ;;  %v157_v10 = vld [vmem:[%s13285_s29 + $0xe0] sm:$0xff] }
  0x70   :  { %9859 = vmatprep.subr.bf16.mxu0 %v9858_v13  ;;  %253 = vmatprep.mubr.f32.mxu0 %v111_v25  ;;  %v176_v13 = vld [vmem:[%s13285_s29 + $0x178] sm:$0xff]  ;;  %v9880_v15 = vpack.c.bf16 %v163_v11, %v157_v10  ;;  %v8411_v25 = vld [vmem:[%s13286_s5 + $0x80] sm:$0xff] }
  0x71   :  { %v9882_v17 = vpack.c.bf16 %v176_v13, %v170_v12 }
  0x76   :  { %9913 = vmatpush1.bf16.xpose.msk.msra.mxu1 %vm11074_vm1, %v9911_v23  ;;  %v9864_v23 = vpack.c.bf16 %v161_v22, %v155_v21  ;;  %v108_v21 = vld [vmem:[%s13286_s5 + $0x20] sm:$0xff]  ;;  %v115_v22 = vld [vmem:[%s13286_s5 + $0x58] sm:$0xff] }
  0x77   :  { %9914 = vmatprep.subr.bf16.mxu1 %v10896_v0  ;;  %9861 = vmatpush1.bf16.xpose.msra.mxu0 %v9860_v16  ;;  %v109_v16 = vld [vmem:[%s13286_s5 + $0x28] sm:$0xff] }
  0x78   :  { %9863 = vmatprep.subr.bf16.mxu0 %v9862_v20  ;;  %v9884_v20 = vpack.c.bf16 %v175_v19, %v169_v18 }
  0x7e   :  { %9917 = vmatpush1.bf16.xpose.msk.msra.mxu1 %vm11074_vm1, %v9915_v26  ;;  %v110_v26 = vld [vmem:[%s13286_s5 + $0x30] sm:$0xff] }
  0x7f   :  { %9918 = vmatprep.subr.bf16.mxu1 %v10896_v0  ;;  %9865 = vmatpush1.bf16.xpose.msra.mxu0 %v9864_v23  ;;  %v114_v23 = vld [vmem:[%s13286_s5 + $0x50] sm:$0xff] }
  0x80   :  { %254 = vmatmul.mubr.f32.gmra.mrb[2].mxu0 %v110_v26  ;;  %v8418_v26 = vld [vmem:[%s13286_s5 + $0xb8] sm:$0xff] }
  0x81   :  { %258 = vmatprep.mubr.f32.mxu0 %v8408_v34 }
  0x84   :  { %259 = vmatmul.mubr.f32.gmra.mrb[4].mxu0 %v8407_v36 }
  0x86   :  { %9921 = vmatpush1.bf16.xpose.msk.msra.mxu1 %vm11074_vm1, %v9919_v29  ;;  %v174_v29 = vld [vmem:[%s13285_s29 + $0x168] sm:$0xff] }
  0x87   :  { %9922 = vmatprep.subr.bf16.mxu1 %v10896_v0  ;;  %v9866_v31 = vpack.c.bf16 %v174_v29, %v168_v28  ;;  %v8417_v28 = vld [vmem:[%s13286_s5 + $0xb0] sm:$0xff] }
  0x89   :  { %9867 = vmatprep.subr.bf16.mxu0 %v9866_v31 }
  0x8e   :  { %9925 = vmatpush1.bf16.xpose.msk.msra.mxu1 %vm11074_vm1, %v9923_v32  ;;  %v167_v32 = vld [vmem:[%s13285_s29 + $0x130] sm:$0xff] }
  0x8f   :  { %9926 = vmatprep.subr.bf16.mxu1 %v10896_v0 }
  0x96   :  { %9929 = vmatpush1.bf16.xpose.msk.msra.mxu1 %vm11074_vm1, %v9927_v35  ;;  %v9868_v35 = vpack.c.bf16 %v173_v33, %v167_v32 }
  0x97   :  { %9930 = vmatprep.subr.bf16.mxu1 %v10896_v0 }
  0x98   :  { %9869 = vmatpush1.bf16.xpose.msra.mxu0 %v9868_v35 }
  0x99   :  { %9871 = vmatprep.subr.bf16.mxu0 %v9870_v46 }
  0x9e   :  { %9933 = vmatpush1.bf16.xpose.msk.msra.mxu1 %vm11074_vm1, %v9931_v38  ;;  %v8414_v38 = vld [vmem:[%s13286_s5 + $0x98] sm:$0xff]  ;;  %s13289_s5 = smov 112  }
  0x9f   :  { %9245 = vmatprep.subr.mxu1 %v10897_v1  ;;  %263 = vmatprep.mubr.f32.mxu0 %v8414_v38 }
  0xa0   :  { %264 = vmatmul.mubr.f32.gmra.mrb[6].mxu0 %v8413_v41 }
  0xa1   :  { %333 = vmatprep.mubr.f32.mxu0 %v107_v49  ;;  %v11501_v49 = vld [vmem:[#allocation2] ss:$0 sm:$0xff] }
  0xa4   :  { %334 = vmatmul.mubr.f32.vlgmr.msra.gmra.mrb[0].mxu0 %v106_v53 }
  0xa5   :  { %8444 = vmatmul.mubr.msk.f32.vlgmr.msra.gmra.mrb[0].mxu1 %vm476_vm0, %v439_v39  ;;  %9873 = vmatpush1.bf16.xpose.msra.mxu0 %v9872_v50 }
  0xa6   :  { %622 = vmatprep.mubr.f32.mxu1 %v10897_v1  ;;  %9875 = vmatprep.subr.bf16.mxu0 %v9874_v59 }
  0xa7   :  { %338 = vmatprep.mubr.f32.mxu0 %v113_v2 }
  0xa8   :  { %339 = vmatmul.mubr.f32.gmra.mrb[2].mxu0 %v112_v3 }
  0xa9   :  { %8445 = vmatmul.mubr.msk.f32.gmra.mrb[2].mxu1 %vm476_vm0, %v439_v39  ;;  %343 = vmatprep.mubr.f32.mxu0 %v8410_v5 }
  0xaa   :  { %9247 = vmatprep.mubr.msk.f32.mxu1 %vm10900_vm2, %v10897_v1 }
  0xac   :  { %344 = vmatmul.mubr.f32.gmra.mrb[4].mxu0 %v8409_v8 }
  0xad   :  { %9877 = vmatpush1.bf16.xpose.msra.mxu0 %v9876_v6  ;;  %348 = vmatprep.mubr.f32.mxu0 %v8416_v9 }
  0xae   :  { %9879 = vmatprep.subr.bf16.mxu0 %v9878_v7 }
  0xb0   :  { %349 = vmatmul.mubr.f32.gmra.mrb[6].mxu0 %v8415_v14 }
  0xb1   :  { %418 = vmatprep.mubr.f32.mxu0 %v109_v16 }
  0xb5   :  { %9881 = vmatpush1.bf16.xpose.msra.mxu0 %v9880_v15 }
  0xb6   :  { %9883 = vmatprep.subr.bf16.mxu0 %v9882_v17 }
  0xbd   :  { %9885 = vmatpush1.bf16.xpose.msra.mxu0 %v9884_v20 }
  0xbe   :  { %9265 = vmatprep.subr.mxu0 %v10897_v1 }
  0xc4   :  { %419 = vmatmul.mubr.f32.vlgmr.msra.gmra.mrb[0].mxu0 %v108_v21 }
  0xc5   :  { %423 = vmatprep.mubr.f32.mxu0 %v115_v22 }
  0xc8   :  { %424 = vmatmul.mubr.f32.gmra.mrb[2].mxu0 %v114_v23 }
  0xc9   :  { %428 = vmatprep.mubr.f32.mxu0 %v8412_v24 }
  0xcc   :  { %429 = vmatmul.mubr.f32.gmra.mrb[4].mxu0 %v8411_v25 }
  0xcd   :  { %433 = vmatprep.mubr.f32.mxu0 %v8418_v26 }
  0xd0   :  { %434 = vmatmul.mubr.f32.gmra.mrb[6].mxu0 %v8417_v28 }
  0xd1   :  { %9267 = vmatprep.mubr.msk.f32.mxu0 %vm10900_vm2, %v10897_v1 }
 0x178   :  { %v618_v39 = vpop.f32.mrb[0].mxu1 }
 0x179   :  { %v11314_v42 = vadd.f32 %v618_v39, %v469_v37  ;;  %v11316_v43 = vpop.f32.mrb[1].mxu1 }
 0x17a   :  { %v11480_v45 = vadd.f32 %v11316_v43, %v11338_v51 }
 0x17b   :  { %634 = vrot.lane.b32.xlu1 %v11314_v42, %s13247_s9  ;;  %630 = vrot.lane.b32.xlu0 %v11314_v42, %s13251_s28  ;;  %s13290_s9 = smov 96  }
 0x17c   :  { %v624_v52 = vpop.f32.mrb[2].mxu1 }
 0x17d   :  { %v11345_v54 = vadd.f32 %v624_v52, %v469_v37  ;;  %v626_v55 = vpop.f32.mrb[3].mxu1 }
 0x17e   :  { %v11354_v58 = vadd.f32 %v626_v55, %v11338_v51 }
 0x17f   :  { %632 = vrot.lane.b32.xlu0 %v11314_v42, %s13249_s30  ;;  %637 = vrot.lane.b32.xlu1 %v11345_v54, %s13251_s28  ;;  %s13297_s28 = smov 64  }
 0x183   :  { %639 = vrot.lane.b32.xlu0 %v11345_v54, %s13249_s30  ;;  %641 = vrot.lane.b32.xlu1 %v11345_v54, %s13288_s8  ;;  %s13292_s30 = smov 16  }
 0x187   :  { %663 = vrot.lane.b32.xlu0 %v11314_v42, %s13253_s6 }
 0x197   :  { %v11486_v46 = vpop.f32.mrb[0].mxu0 }
 0x198   :  { %v422_v47 = vpop.f32.mrb[1].mxu0 }
 0x19b   :  { %v11497_v43 = vpop.f32.mrb[2].mxu0 }
 0x19c   :  { %v427_v48 = vpop.f32.mrb[3].mxu0 }
 0x19f   :  { %v430_v50 = vpop.f32.mrb[4].mxu0 }
 0x1a0   :  { %v11504_v51 = vadd.f32 %v11501_v49, %v430_v50  ;;  %v432_v52 = vpop.f32.mrb[5].mxu0 }
 0x1a3   :  { %v435_v53 = vpop.f32.mrb[6].mxu0 }
 0x1a4   :  { %v437_v55 = vpop.f32.mrb[7].mxu0 }
 0x1ed   :  { %v631_v29 = vpop.permute.xlu0 %630  ;;  %v635_v30 = vpop.permute.xlu1 %634 }
 0x1ee   :  { %740 = vrot.lane.b32.xlu1 %v631_v29, %s13253_s6 }
 0x1f1   :  { %v633_v31 = vpop.permute.xlu0 %632  ;;  %v638_v32 = vpop.permute.xlu1 %637 }
 0x1f2   :  { %892 = vrot.lane.b32.xlu1 %v635_v30, %s13253_s6  ;;  %816 = vrot.lane.b32.xlu0 %v633_v31, %s13253_s6 }
 0x1f5   :  { %v640_v33 = vpop.permute.xlu0 %639  ;;  %v642_v34 = vpop.permute.xlu1 %641 }
 0x1f6   :  { %968 = vrot.lane.b32.xlu0 %v11345_v54, %s13253_s6  ;;  %1044 = vrot.lane.b32.xlu1 %v638_v32, %s13253_s6 }
 0x1f9   :  { %v664_v35 = vpop.permute.xlu0 %663 }
 0x1fa   :  { %1120 = vrot.lane.b32.xlu0 %v640_v33, %s13253_s6  ;;  %9246 = vmatpush3.xpose.msk.msra.mxu1 %vm665_vm3, %v664_v35 }
 0x1fb   :  { %1196 = vrot.lane.b32.xlu1 %v642_v34, %s13253_s6  ;;  %9250 = vmatprep.subr.mxu1 %v10897_v1  ;;  %s13298_s6 = smov 32  }
 0x1fd   :  { %9248 = vmatmul.mubr.msk.f32.vlgmr.msra.gmra.mrb[4].mxu1 %vm665_vm3, %v11314_v42 }
 0x1fe   :  { %9252 = vmatprep.mubr.msk.f32.mxu1 %vm10900_vm2, %v10897_v1 }
 0x260   :  { %v741_v36 = vpop.permute.xlu1 %740 }
 0x261   :  { %9251 = vmatpush3.xpose.msk.msra.mxu1 %vm665_vm3, %v741_v36 }
 0x262   :  { %9255 = vmatprep.subr.mxu1 %v10897_v1 }
 0x264   :  { %v893_v37 = vpop.permute.xlu1 %892  ;;  %9253 = vmatmul.mubr.msk.f32.vlgmr.msra.gmra.mrb[6].mxu1 %vm665_vm3, %v631_v29  ;;  %v817_v38 = vpop.permute.xlu0 %816 }
 0x265   :  { %9256 = vmatpush3.xpose.msk.msra.mxu1 %vm665_vm3, %v817_v38  ;;  %9257 = vmatprep.mubr.msk.f32.mxu1 %vm10900_vm2, %v10897_v1 }
 0x266   :  { %9260 = vmatprep.subr.mxu1 %v10897_v1 }
 0x268   :  { %9258 = vmatmul.mubr.msk.f32.vlgmr.msra.gmra.mrb[8].mxu1 %vm665_vm3, %v633_v31  ;;  %v969_v39 = vpop.permute.xlu0 %968  ;;  %v1045_v41 = vpop.permute.xlu1 %1044 }
 0x269   :  { %9261 = vmatpush3.xpose.msk.msra.mxu1 %vm665_vm3, %v893_v37  ;;  %9266 = vmatpush3.xpose.msk.msra.mxu0 %vm665_vm3, %v969_v39 }
 0x26a   :  { %9262 = vmatprep.mubr.msk.f32.mxu1 %vm10900_vm2, %v10897_v1  ;;  %9270 = vmatprep.subr.mxu1 %v10897_v1 }
 0x26b   :  { %9275 = vmatprep.subr.mxu0 %v10897_v1 }
 0x26c   :  { %9263 = vmatmul.mubr.msk.f32.vlgmr.msra.gmra.mrb[10].mxu1 %vm665_vm3, %v635_v30  ;;  %v1121_v42 = vpop.permute.xlu0 %1120  ;;  %9268 = vmatmul.mubr.msk.f32.vlgmr.msra.gmra.mrb[8].mxu0 %vm665_vm3, %v11345_v54  ;;  %v11507_v54 = vadd.f32 %v11501_v49, %v435_v53 }
 0x26d   :  { %9271 = vmatpush3.xpose.msk.msra.mxu1 %vm665_vm3, %v1045_v41  ;;  %9276 = vmatpush3.xpose.msk.msra.mxu0 %vm665_vm3, %v1121_v42  ;;  %v1197_v44 = vpop.permute.xlu1 %1196 }
 0x26e   :  { %9272 = vmatprep.mubr.msk.f32.mxu1 %vm10900_vm2, %v10897_v1  ;;  %9277 = vmatprep.mubr.msk.f32.mxu0 %vm10900_vm2, %v10897_v1 }
 0x26f   :  { %9280 = vmatprep.subr.mxu1 %v10897_v1  ;;  %9285 = vmatprep.subr.mxu0 %v10897_v1 }
 0x270   :  { %9273 = vmatmul.mubr.msk.f32.vlgmr.msra.gmra.mrb[12].mxu1 %vm665_vm3, %v638_v32  ;;  %9278 = vmatmul.mubr.msk.f32.vlgmr.msra.gmra.mrb[10].mxu0 %vm665_vm3, %v640_v33 }
 0x271   :  { %9281 = vmatpush3.xpose.msk.msra.mxu1 %vm665_vm3, %v1197_v44  ;;  %9286 = vmatpush3.msra.mxu0 %v11480_v45 }
 0x272   :  { %9282 = vmatprep.mubr.msk.f32.mxu1 %vm10900_vm2, %v10897_v1  ;;  %9290 = vmatprep.subr.mxu1 %v10897_v1 }
 0x273   :  { %9287 = vmatprep.mubr.msk.f32.mxu0 %vm10900_vm2, %v10897_v1  ;;  %9295 = vmatprep.subr.mxu0 %v10897_v1 }
 0x274   :  { %9283 = vmatmul.mubr.msk.f32.vlgmr.msra.gmra.mrb[14].mxu1 %vm665_vm3, %v642_v34 }
 0x275   :  { %9292 = vmatprep.mubr.msk.f32.mxu1 %vm10900_vm2, %v10897_v1 }
 0x2d0   :  { %v736_v56 = vpop.f32.mrb[4].mxu1 }
 0x2d1   :  { %v1272_v57 = vmul.f32 0.25, %v736_v56  ;;  %v9249_v59 = vpop.f32.mrb[5].mxu1 }
 0x2d3   :  { %v1281_v60 = vsel %vm1280_vm4, %v1272_v57, -inf }
 0x2d4   :  { %1282 = vmax.xlane.f32.xlu0 %v1281_v60 }
 0x337   :  { %v812_v61 = vpop.f32.mrb[6].mxu1 }
 0x338   :  { %v1273_v62 = vmul.f32 0.25, %v812_v61  ;;  %v9254_v63 = vpop.f32.mrb[7].mxu1 }
 0x33a   :  { %v1284_v2 = vsel %vm1280_vm4, %v1273_v62, -inf }
 0x33b   :  { %1285 = vmax.xlane.f32.xlu1 %v1284_v2  ;;  %v888_v3 = vpop.f32.mrb[8].mxu1 }
 0x33c   :  { %v1274_v5 = vmul.f32 0.25, %v888_v3  ;;  %v9259_v6 = vpop.f32.mrb[9].mxu1 }
 0x33e   :  { %v1287_v7 = vsel %vm1280_vm4, %v1274_v5, -inf }
 0x33f   :  { %1288 = vmax.xlane.f32.xlu0 %v1287_v7  ;;  %v964_v8 = vpop.f32.mrb[10].mxu1  ;;  %v1040_v9 = vpop.f32.mrb[8].mxu0 }
 0x340   :  { %v1275_v10 = vmul.f32 0.25, %v964_v8  ;;  %v1276_v11 = vmul.f32 0.25, %v1040_v9  ;;  %v9264_v12 = vpop.f32.mrb[11].mxu1  ;;  %v9269_v13 = vpop.f32.mrb[9].mxu0 }
 0x342   :  { %v1290_v14 = vsel %vm1280_vm4, %v1275_v10, -inf  ;;  %v1293_v15 = vsel %vm1280_vm4, %v1276_v11, -inf }
 0x343   :  { %1291 = vmax.xlane.f32.xlu0 %v1290_v14  ;;  %v1116_v16 = vpop.f32.mrb[12].mxu1  ;;  %1294 = vmax.xlane.f32.xlu1 %v1293_v15  ;;  %v1192_v17 = vpop.f32.mrb[10].mxu0 }
 0x344   :  { %v1277_v18 = vmul.f32 0.25, %v1116_v16  ;;  %v1278_v19 = vmul.f32 0.25, %v1192_v17  ;;  %v9274_v20 = vpop.f32.mrb[13].mxu1  ;;  %v9279_v21 = vpop.f32.mrb[11].mxu0 }
 0x346   :  { %v1296_v22 = vsel %vm1280_vm4, %v1277_v18, -inf  ;;  %v1299_v23 = vsel %vm1280_vm4, %v1278_v19, -inf }
 0x347   :  { %1297 = vmax.xlane.f32.xlu0 %v1296_v22  ;;  %v1268_v24 = vpop.f32.mrb[14].mxu1  ;;  %1300 = vmax.xlane.f32.xlu1 %v1299_v23 }
 0x348   :  { %v1279_v25 = vmul.f32 0.25, %v1268_v24  ;;  %v9284_v26 = vpop.f32.mrb[15].mxu1 }
 0x34a   :  { %v1302_v28 = vsel %vm1280_vm4, %v1279_v25, -inf }
 0x34b   :  { %1303 = vmax.xlane.f32.xlu0 %v1302_v28 }
 0x358   :  { %644 = vrot.lane.b32.xlu1 %v11480_v45, %s13289_s5 }
 0x35c   :  { %650 = vrot.lane.b32.xlu1 %v11480_v45, %s13288_s8 }
 0x360   :  { %654 = vrot.lane.b32.xlu1 %v11354_v58, %s13289_s5 }
 0x361   :  { %647 = vrot.lane.b32.xlu0 %v11480_v45, %s13290_s9  ;;  %v1283_v29 = vpop.xlane.xlu0 %1282 }
 0x362   :  { %v1305_v30 = vsub.f32 %v1272_v57, %v1283_v29 }
 0x364   :  { %v1313_v31 = vmul.f32 1.442695, %v1305_v30 }
 0x366   :  { %10660 = vpow2.f32 %v1313_v31 }
 0x370   :  { %v10661_v32 = vpop.eup %10660 }
 0x371   :  { %v1329_v33 = vsel %vm1280_vm4, %v10661_v32, 0.0 }
 0x384   :  { %1330 = vadd.xlane.f32.xlu1 %v1329_v33 }
 0x3c8   :  { %v1286_v34 = vpop.xlane.xlu1 %1285 }
 0x3c9   :  { %v1306_v35 = vsub.f32 %v1273_v62, %v1286_v34 }
 0x3cb   :  { %v1315_v36 = vmul.f32 1.442695, %v1306_v35 }
 0x3cc   :  { %v1289_v37 = vpop.xlane.xlu0 %1288 }
 0x3cd   :  { %10662 = vpow2.f32 %v1315_v36  ;;  %v1307_v38 = vsub.f32 %v1274_v5, %v1289_v37 }
 0x3cf   :  { %v1317_v48 = vmul.f32 1.442695, %v1307_v38 }
 0x3d0   :  { %v1292_v39 = vpop.xlane.xlu0 %1291  ;;  %v1295_v41 = vpop.xlane.xlu1 %1294 }
 0x3d1   :  { %v1308_v42 = vsub.f32 %v1275_v10, %v1292_v39  ;;  %v1309_v44 = vsub.f32 %v1276_v11, %v1295_v41 }
 0x3d3   :  { %v1319_v47 = vmul.f32 1.442695, %v1308_v42  ;;  %v1321_v45 = vmul.f32 1.442695, %v1309_v44 }
 0x3d4   :  { %v1298_v50 = vpop.xlane.xlu0 %1297  ;;  %v1301_v52 = vpop.xlane.xlu1 %1300 }
 0x3d5   :  { %10664 = vpow2.f32 %v1319_v47  ;;  %v1310_v53 = vsub.f32 %v1277_v18, %v1298_v50  ;;  %v1311_v55 = vsub.f32 %v1278_v19, %v1301_v52  ;;  %v1986_v50 = vld [vmem:[%s13291_s3 + $0x8] sm:$0xff]  ;;  %v1987_v52 = vld [vmem:[%s13291_s3 + $0x10] sm:$0xff] }
 0x3d6   :  { %10666 = vpow2.f32 %v1321_v45 }
 0x3d7   :  { %v10663_v56 = vpop.eup %10662  ;;  %v1323_v57 = vmul.f32 1.442695, %v1310_v53  ;;  %10668 = vpow2.f32 %v1317_v48  ;;  %v1325_v59 = vmul.f32 1.442695, %v1311_v55  ;;  %v1985_v48 = vld [vmem:[%s13291_s3] sm:$0xff]  ;;  %v1988_v55 = vld [vmem:[%s13291_s3 + $0x18] sm:$0xff] }
 0x3d8   :  { %v1304_v60 = vpop.xlane.xlu0 %1303  ;;  %v645_v61 = vpop.permute.xlu1 %644  ;;  %v1332_v62 = vsel %vm1280_vm4, %v10663_v56, 0.0  ;;  %v9934_v53 = vpack.c.bf16 %v1986_v50, %v1985_v48 }
 0x3d9   :  { %10670 = vpow2.f32 %v1323_v57  ;;  %v1312_v63 = vsub.f32 %v1279_v25, %v1304_v60  ;;  %1333 = vadd.xlane.f32.xlu0 %v1332_v62  ;;  %9291 = vmatpush3.msra.mxu1 %v645_v61  ;;  %v1989_v60 = vld [vmem:[%s13291_s3 + $0x20] sm:$0xff]  ;;  %v1990_v61 = vld [vmem:[%s13291_s3 + $0x28] sm:$0xff] }
 0x3da   :  { %9300 = vmatprep.subr.mxu1 %v10897_v1  ;;  %10672 = vpow2.f32 %v1325_v59  ;;  %v9946_v62 = vpack.c.bf16 %v1990_v61, %v1989_v60  ;;  %v2232_v60 = vld [vmem:[%s13222_s10 + $0x38] sm:$0xff] }
 0x3db   :  { %v1327_v2 = vmul.f32 1.442695, %v1312_v63 }
 0x3dc   :  { %v651_v16 = vpop.permute.xlu1 %650  ;;  %v648_v21 = vpop.permute.xlu0 %647 }
 0x3dd   :  { %10674 = vpow2.f32 %v1327_v2  ;;  %v1991_v2 = vld [vmem:[%s13291_s3 + $0x30] sm:$0xff] }
 0x3df   :  { %v10665_v3 = vpop.eup %10664 }
 0x3e0   :  { %v11528_v5 = vpop.eup %10666  ;;  %v1338_v6 = vsel %vm1280_vm4, %v10665_v3, 0.0  ;;  %v655_v17 = vpop.permute.xlu1 %654 }
 0x3e1   :  { %1339 = vadd.xlane.f32.xlu0 %v1338_v6  ;;  %v1341_v7 = vsel %vm1280_vm4, %v11528_v5, 0.0  ;;  %v10669_v8 = vpop.eup %10668 }
 0x3e2   :  { %1342 = vadd.xlane.f32.xlu1 %v1341_v7  ;;  %v1335_v11 = vsel %vm1280_vm4, %v10669_v8, 0.0 }
 0x3e3   :  { %v10671_v9 = vpop.eup %10670 }
 0x3e4   :  { %v1344_v10 = vsel %vm1280_vm4, %v10671_v9, 0.0  ;;  %v11535_v12 = vpop.eup %10672 }
 0x3e5   :  { %1345 = vadd.xlane.f32.xlu0 %v1344_v10  ;;  %v1347_v15 = vsel %vm1280_vm4, %v11535_v12, 0.0 }
 0x3e6   :  { %1336 = vadd.xlane.f32.xlu1 %v1335_v11 }
 0x3e7   :  { %v10675_v13 = vpop.eup %10674 }
 0x3e8   :  { %v1350_v14 = vsel %vm1280_vm4, %v10675_v13, 0.0 }
 0x3e9   :  { %1351 = vadd.xlane.f32.xlu0 %v1350_v14 }
 0x3ea   :  { %1348 = vadd.xlane.f32.xlu1 %v1347_v15 }
 0x3fb   :  { %660 = vrot.lane.b32.xlu1 %v11354_v58, %s13288_s8 }
 0x3ff   :  { %657 = vrot.lane.b32.xlu0 %v11354_v58, %s13290_s9 }
 0x411   :  { %v1331_v18 = vpop.xlane.xlu1 %1330 }
 0x412   :  { %10676 = vrcp.f32 %v1331_v18 }
 0x41c   :  { %v10677_v19 = vpop.eup %10676 }
 0x41d   :  { %v1354_v20 = vmul.f32 %v10677_v19, %v10661_v32 }
 0x41f   :  { %9288 = vmatmul.mubr.msk.f32.vlgmr.msra.gmra.mrb[12].mxu0 %vm1280_vm4, %v1354_v20 }
 0x420   :  { %9296 = vmatpush3.msra.mxu0 %v648_v21  ;;  %9297 = vmatprep.mubr.msk.f32.mxu0 %vm10900_vm2, %v10897_v1 }
 0x421   :  { %9305 = vmatprep.subr.mxu0 %v10897_v1 }
 0x466   :  { %v1334_v22 = vpop.xlane.xlu0 %1333 }
 0x467   :  { %10678 = vrcp.f32 %v1334_v22  ;;  %v2105_v22 = vld [vmem:[%s13293_s26] sm:$0xff] }
 0x46e   :  { %v1340_v23 = vpop.xlane.xlu0 %1339 }
 0x46f   :  { %10680 = vrcp.f32 %v1340_v23  ;;  %v1343_v24 = vpop.xlane.xlu1 %1342  ;;  %v2106_v23 = vld [vmem:[%s13293_s26 + $0x8] sm:$0xff] }
 0x471   :  { %v10679_v25 = vpop.eup %10678 }
 0x472   :  { %v1346_v26 = vpop.xlane.xlu0 %1345  ;;  %v1356_v28 = vmul.f32 %v10679_v25, %v10663_v56  ;;  %v9940_v56 = vpack.c.bf16 %v1988_v55, %v1987_v52  ;;  %v9958_v25 = vpack.c.bf16 %v2106_v23, %v2105_v22 }
 0x473   :  { %10682 = vrcp.f32 %v1346_v26  ;;  %v1337_v29 = vpop.xlane.xlu1 %1336  ;;  %v2108_v26 = vld [vmem:[%s13293_s26 + $0x18] sm:$0xff] }
 0x474   :  { %10684 = vrcp.f32 %v1337_v29  ;;  %9293 = vmatmul.mubr.msk.f32.vlgmr.msra.gmra.mrb[16].mxu1 %vm1280_vm4, %v1356_v28  ;;  %v2109_v29 = vld [vmem:[%s13293_s26 + $0x20] sm:$0xff] }
 0x475   :  { %9301 = vmatpush3.msra.mxu1 %v651_v16  ;;  %9302 = vmatprep.mubr.msk.f32.mxu1 %vm10900_vm2, %v10897_v1  ;;  %10686 = vrcp.f32 %v1343_v24  ;;  %v2107_v24 = vld [vmem:[%s13293_s26 + $0x10] sm:$0xff] }
 0x476   :  { %v1352_v30 = vpop.xlane.xlu0 %1351  ;;  %9310 = vmatprep.subr.mxu1 %v10897_v1  ;;  %v9964_v28 = vpack.c.bf16 %v2108_v26, %v2107_v24 }
 0x477   :  { %10688 = vrcp.f32 %v1352_v30  ;;  %v1349_v31 = vpop.xlane.xlu1 %1348  ;;  %v2110_v30 = vld [vmem:[%s13293_s26 + $0x28] sm:$0xff] }
 0x478   :  { %10690 = vrcp.f32 %v1349_v31  ;;  %v9970_v31 = vpack.c.bf16 %v2110_v30, %v2109_v29 }
 0x479   :  { %v10681_v32 = vpop.eup %10680 }
 0x47a   :  { %v1360_v33 = vmul.f32 %v10681_v32, %v10665_v3  ;;  %v658_v45 = vpop.permute.xlu0 %657  ;;  %v1992_v3 = vld [vmem:[%s13291_s3 + $0x38] sm:$0xff]  ;;  %v2111_v32 = vld [vmem:[%s13293_s26 + $0x30] sm:$0xff] }
 0x47b   :  { %v661_v39 = vpop.permute.xlu1 %660  ;;  %v9952_v6 = vpack.c.bf16 %v1992_v3, %v1991_v2  ;;  %v2235_v3 = vld [vmem:[%s13222_s10 + $0x50] sm:$0xff] }
 0x47c   :  { %9303 = vmatmul.mubr.msk.f32.vlgmr.msra.gmra.mrb[18].mxu1 %vm1280_vm4, %v1360_v33  ;;  %v2112_v33 = vld [vmem:[%s13293_s26 + $0x38] sm:$0xff] }
 0x47d   :  { %v10683_v34 = vpop.eup %10682  ;;  %9311 = vmatpush3.msra.mxu1 %v655_v17  ;;  %9312 = vmatprep.mubr.msk.f32.mxu1 %vm10900_vm2, %v10897_v1 }
 0x47e   :  { %v10685_v35 = vpop.eup %10684  ;;  %9320 = vmatprep.subr.mxu1 %v10897_v1  ;;  %v1364_v36 = vmul.f32 %v10683_v34, %v10671_v9  ;;  %v2226_v9 = vld [vmem:[%s13222_s10 + $0x8] sm:$0xff]  ;;  %v9976_v34 = vpack.c.bf16 %v2112_v33, %v2111_v32 }
 0x47f   :  { %v1358_v37 = vmul.f32 %v10685_v35, %v10669_v8  ;;  %v10687_v38 = vpop.eup %10686  ;;  %v2225_v8 = vld [vmem:[%s13222_s10] sm:$0xff] }
 0x480   :  { %9313 = vmatmul.mubr.msk.f32.vlgmr.msra.gmra.mrb[20].mxu1 %vm1280_vm4, %v1364_v36  ;;  %v1362_v44 = vmul.f32 %v10687_v38, %v11528_v5  ;;  %v9982_v11 = vpack.c.bf16 %v2226_v9, %v2225_v8  ;;  %v2238_v8 = vld [vmem:[%s13222_s10 + $0x68] sm:$0xff] }
 0x481   :  { %v10689_v41 = vpop.eup %10688  ;;  %9298 = vmatmul.mubr.msk.f32.vlgmr.msra.gmra.mrb[14].mxu0 %vm1280_vm4, %v1358_v37  ;;  %9321 = vmatpush3.msra.mxu1 %v661_v39 }
 0x482   :  { %9306 = vmatpush3.msra.mxu0 %v11354_v58  ;;  %9307 = vmatprep.mubr.msk.f32.mxu0 %vm10900_vm2, %v10897_v1  ;;  %v1368_v42 = vmul.f32 %v10689_v41, %v10675_v13  ;;  %v10691_v47 = vpop.eup %10690 }
 0x483   :  { %9315 = vmatprep.subr.mxu0 %v10897_v1  ;;  %9322 = vmatprep.mubr.msk.f32.mxu1 %vm10900_vm2, %v10897_v1  ;;  %v1366_v58 = vmul.f32 %v10691_v47, %v11535_v12  ;;  %v2228_v47 = vld [vmem:[%s13222_s10 + $0x18] sm:$0xff] }
 0x484   :  { %9323 = vmatmul.mubr.msk.f32.vlgmr.msra.gmra.mrb[22].mxu1 %vm1280_vm4, %v1368_v42  ;;  %9960 = vmatprep.subr.msk.bf16.mxu1 %vm11074_vm1, %v9958_v25 }
 0x485   :  { %9308 = vmatmul.mubr.msk.f32.vlgmr.msra.gmra.mrb[16].mxu0 %vm1280_vm4, %v1362_v44  ;;  %v2227_v44 = vld [vmem:[%s13222_s10 + $0x10] sm:$0xff] }
 0x486   :  { %9316 = vmatpush3.msra.mxu0 %v658_v45  ;;  %9317 = vmatprep.mubr.msk.f32.mxu0 %vm10900_vm2, %v10897_v1  ;;  %v9988_v52 = vpack.c.bf16 %v2228_v47, %v2227_v44 }
 0x487   :  { %9936 = vmatprep.subr.msk.bf16.mxu0 %vm11074_vm1, %v9934_v53 }
 0x488   :  { %9963 = vmatpush3.bf16.xpose.msk.msra.mxu1 %vm11074_vm1, %v9958_v25 }
 0x489   :  { %9318 = vmatmul.mubr.msk.f32.vlgmr.msra.gmra.mrb[18].mxu0 %vm1280_vm4, %v1366_v58  ;;  %9966 = vmatprep.subr.msk.bf16.mxu1 %vm11074_vm1, %v9964_v28 }
 0x48d   :  { %9939 = vmatpush3.bf16.xpose.msk.msra.mxu0 %vm11074_vm1, %v9934_v53  ;;  %v11683_v53 = vadd.f32 %v11501_v49, %v11486_v46  ;;  %v2230_v46 = vld [vmem:[%s13222_s10 + $0x28] sm:$0xff] }
 0x48e   :  { %9942 = vmatprep.subr.msk.bf16.mxu0 %vm11074_vm1, %v9940_v56 }
 0x490   :  { %9969 = vmatpush3.bf16.xpose.msk.msra.mxu1 %vm11074_vm1, %v9964_v28 }
 0x491   :  { %9972 = vmatprep.subr.msk.bf16.mxu1 %vm11074_vm1, %v9970_v31 }
 0x495   :  { %9945 = vmatpush3.bf16.xpose.msk.msra.mxu0 %vm11074_vm1, %v9940_v56  ;;  %v2229_v56 = vld [vmem:[%s13222_s10 + $0x20] sm:$0xff] }
 0x496   :  { %9948 = vmatprep.subr.msk.bf16.mxu0 %vm11074_vm1, %v9946_v62 }
 0x498   :  { %9975 = vmatpush3.bf16.xpose.msk.msra.mxu1 %vm11074_vm1, %v9970_v31 }
 0x499   :  { %9978 = vmatprep.subr.msk.bf16.mxu1 %vm11074_vm1, %v9976_v34 }
 0x49d   :  { %9951 = vmatpush3.bf16.xpose.msk.msra.mxu0 %vm11074_vm1, %v9946_v62  ;;  %v2233_v62 = vld [vmem:[%s13222_s10 + $0x40] sm:$0xff] }
 0x49e   :  { %9954 = vmatprep.subr.msk.bf16.mxu0 %vm11074_vm1, %v9952_v6 }
 0x4a0   :  { %9981 = vmatpush3.bf16.xpose.msk.msra.mxu1 %vm11074_vm1, %v9976_v34 }
 0x4a1   :  { %10030 = vmatprep.subr.bf16.mxu1 %v10896_v0 }
 0x4a5   :  { %9957 = vmatpush3.bf16.xpose.msk.msra.mxu0 %vm11074_vm1, %v9952_v6 }
 0x4a6   :  { %9984 = vmatprep.subr.msk.bf16.mxu0 %vm11074_vm1, %v9982_v11 }
 0x4f2   :  { %v11591_v57 = vpop.f32.mrb[12].mxu0 }
 0x4f3   :  { %v9289_v59 = vpop.f32.mrb[13].mxu0 }
 0x4f4   :  { %v2231_v59 = vld [vmem:[%s13222_s10 + $0x30] sm:$0xff] }
 0x4f5   :  { %v10000_v61 = vpack.c.bf16 %v2232_v60, %v2231_v59 }
 0x547   :  { %v1511_v63 = vpop.f32.mrb[16].mxu1 }
 0x548   :  { %1954 = vrot.lane.b32.xlu0 %v1511_v63, %s13292_s30  ;;  %v9294_v5 = vpop.f32.mrb[17].mxu1  ;;  %v2234_v63 = vld [vmem:[%s13222_s10 + $0x48] sm:$0xff] }
 0x549   :  { %v10006_v2 = vpack.c.bf16 %v2234_v63, %v2233_v62  ;;  %v2236_v5 = vld [vmem:[%s13222_s10 + $0x58] sm:$0xff] }
 0x54a   :  { %v10012_v6 = vpack.c.bf16 %v2236_v5, %v2235_v3 }
 0x54f   :  { %v1657_v7 = vpop.f32.mrb[18].mxu1 }
 0x550   :  { %v9304_v10 = vpop.f32.mrb[19].mxu1 }
 0x551   :  { %v2239_v10 = vld [vmem:[%s13222_s10 + $0x70] sm:$0xff] }
 0x553   :  { %v1803_v12 = vpop.f32.mrb[20].mxu1 }
 0x554   :  { %v1584_v13 = vpop.f32.mrb[14].mxu0  ;;  %1971 = vrot.lane.b32.xlu0 %v1803_v12, %s13292_s30  ;;  %v9314_v14 = vpop.f32.mrb[21].mxu1 }
 0x555   :  { %1958 = vrot.lane.b32.xlu1 %v1584_v13, %s13258_s25  ;;  %v9299_v15 = vpop.f32.mrb[15].mxu0  ;;  %v11758_v13 = vadd.f32 %v11501_v49, %v11497_v43  ;;  %v8470_v14 = vld [vmem:[%s13294_s0] ss:$0 sm:$0xff] }
 0x557   :  { %v1949_v16 = vpop.f32.mrb[22].mxu1 }
 0x558   :  { %v1730_v17 = vpop.f32.mrb[16].mxu0  ;;  %v9324_v18 = vpop.f32.mrb[23].mxu1 }
 0x559   :  { %1962 = vrot.lane.b32.xlu1 %v1657_v7, %s13256_s4  ;;  %v9309_v19 = vpop.f32.mrb[17].mxu0  ;;  %v2237_v7 = vld [vmem:[%s13222_s10 + $0x60] sm:$0xff] }
 0x55a   :  { %v10018_v9 = vpack.c.bf16 %v2238_v8, %v2237_v7 }
 0x55c   :  { %v1876_v20 = vpop.f32.mrb[18].mxu0 }
 0x55d   :  { %1979 = vrot.lane.b32.xlu1 %v1949_v16, %s13256_s4  ;;  %1975 = vrot.lane.b32.xlu0 %v1876_v20, %s13258_s25  ;;  %v9319_v21 = vpop.f32.mrb[19].mxu0  ;;  %s13299_s25 = smov 48   ;;  %s13301_s4 = sld [smem:[#allocation20_spill]] }
 0x5ba   :  { %v1955_v35 = vpop.permute.xlu0 %1954 }
 0x5bb   :  { %v1965_v37 = vsel %vm665_vm3, %v11591_v57, %v1955_v35  ;;  %v9994_v57 = vpack.c.bf16 %v2230_v46, %v2229_v56 }
 0x5c6   :  { %v1972_v38 = vpop.permute.xlu0 %1971 }
 0x5c7   :  { %v1959_v36 = vpop.permute.xlu1 %1958  ;;  %v1982_v45 = vsel %vm665_vm3, %v1730_v17, %v1972_v38  ;;  %v8492_v17 = vld [vmem:[%s13223_s11] ss:$0 sm:$0xff]  ;;  %s13300_s11 = sld [smem:[#allocation18_spill]] }
 0x5c8   :  { %v1967_v39 = vsel %vm1966_vm5, %v1965_v37, %v1959_v36 }
 0x5cb   :  { %v1963_v41 = vpop.permute.xlu1 %1962 }
 0x5cc   :  { %v1969_v42 = vsel %vm1968_vm6, %v1967_v39, %v1963_v41 }
 0x5cd   :  { %9341 = vmatprep.mubr.msk.f32.mxu0 %vm476_vm0, %v1969_v42  ;;  %v8481_v42 = vld [vmem:[#allocation5] ss:$0 sm:$0xff] }
 0x5cf   :  { %v1980_v58 = vpop.permute.xlu1 %1979  ;;  %v1976_v48 = vpop.permute.xlu0 %1975 }
 0x5d0   :  { %v1983_v50 = vsel %vm1966_vm5, %v1982_v45, %v1976_v48 }
 0x5d1   :  { %v1984_v55 = vsel %vm1968_vm6, %v1983_v50, %v1980_v58 }
 0x5d2   :  { %9342 = vmatmul.mubr.msk.f32.vlgmr.msra.gmra.mrb[20].mxu0 %vm476_vm0, %v1984_v55 }
 0x5d3   :  { %9987 = vmatpush3.bf16.xpose.msk.msra.mxu0 %vm11074_vm1, %v9982_v11  ;;  %9395 = vmatprep.mubr.msk.f32.mxu0 %vm476_vm0, %v11683_v53  ;;  %v2240_v11 = vld [vmem:[%s13222_s10 + $0x78] sm:$0xff] }
 0x5d4   :  { %9990 = vmatprep.subr.msk.bf16.mxu0 %vm11074_vm1, %v9988_v52  ;;  %v10024_v12 = vpack.c.bf16 %v2240_v11, %v2239_v10 }
 0x5db   :  { %9993 = vmatpush3.bf16.xpose.msk.msra.mxu0 %vm11074_vm1, %v9988_v52 }
 0x5dc   :  { %9996 = vmatprep.subr.msk.bf16.mxu0 %vm11074_vm1, %v9994_v57 }
 0x5e3   :  { %9999 = vmatpush3.bf16.xpose.msk.msra.mxu0 %vm11074_vm1, %v9994_v57 }
 0x5e4   :  { %10002 = vmatprep.subr.msk.bf16.mxu0 %vm11074_vm1, %v10000_v61 }
 0x5eb   :  { %10005 = vmatpush3.bf16.xpose.msk.msra.mxu0 %vm11074_vm1, %v10000_v61 }
 0x5ec   :  { %10008 = vmatprep.subr.msk.bf16.mxu0 %vm11074_vm1, %v10006_v2 }
 0x5f3   :  { %10011 = vmatpush3.bf16.xpose.msk.msra.mxu0 %vm11074_vm1, %v10006_v2 }
 0x5f4   :  { %10014 = vmatprep.subr.msk.bf16.mxu0 %vm11074_vm1, %v10012_v6 }
 0x5fb   :  { %10017 = vmatpush3.bf16.xpose.msk.msra.mxu0 %vm11074_vm1, %v10012_v6 }
 0x5fc   :  { %10020 = vmatprep.subr.msk.bf16.mxu0 %vm11074_vm1, %v10018_v9 }
 0x603   :  { %10023 = vmatpush3.bf16.xpose.msk.msra.mxu0 %vm11074_vm1, %v10018_v9 }
 0x604   :  { %10026 = vmatprep.subr.msk.bf16.mxu0 %vm11074_vm1, %v10024_v12 }
 0x60b   :  { %10029 = vmatpush3.bf16.xpose.msk.msra.mxu0 %vm11074_vm1, %v10024_v12 }
 0x60c   :  { %10065 = vmatprep.subr.bf16.mxu0 %v10896_v0 }
 0x612   :  { %9396 = vmatmul.mubr.msk.f32.vlgmr.msra.gmra.mrb[22].mxu0 %vm476_vm0, %v11758_v13 }
 0x613   :  { %9398 = vmatprep.mubr.msk.f32.mxu0 %vm476_vm0, %v11504_v51 }
 0x616   :  { %9399 = vmatmul.mubr.msk.f32.gmra.mrb[24].mxu0 %vm476_vm0, %v11507_v54 }
 0x617   :  { %9468 = vmatprep.mubr.msk.f32.mxu0 %vm10900_vm2, %v10897_v1 }
 0x6a5   :  { %v9343_v15 = vpop.f32.mrb[20].mxu0 }
 0x6a6   :  { %v2096_v16 = vpop.f32.mrb[21].mxu0  ;;  %v2102_v49 = vadd.f32 %v9343_v15, %v8470_v14 }
 0x6a7   :  { %v2097_v43 = vadd.f32 %v8470_v14, %v2096_v16 }
 0x6a9   :  { %9360 = vmatprep.mubr.msk.f32.mxu1 %vm476_vm0, %v2097_v43 }
 0x6aa   :  { %9361 = vmatmul.mubr.msk.f32.vlgmr.msra.gmra.mrb[24].mxu1 %vm476_vm0, %v2102_v49 }
 0x6ab   :  { %9405 = vmatprep.mubr.msk.f32.mxu1 %vm10900_vm2, %v10897_v1 }
 0x6e5   :  { %v9397_v18 = vpop.f32.mrb[22].mxu0 }
 0x6e6   :  { %v2380_v19 = vadd.f32 %v9397_v18, %v8492_v17  ;;  %v2374_v20 = vpop.f32.mrb[23].mxu0 }
 0x6e7   :  { %v2375_v21 = vadd.f32 %v8492_v17, %v2374_v20 }
 0x6e9   :  { %v9400_v22 = vpop.f32.mrb[24].mxu0  ;;  %v11778_v23 = vpack.i.bf16 %v2380_v19, %v2375_v21  ;;  %v10031_v24 = vpack.c.bf16 %v2380_v19, %v2375_v21 }
 0x6ea   :  { %v2390_v26 = vadd.f32 %v9400_v22, %v8492_v17  ;;  %v2384_v28 = vpop.f32.mrb[25].mxu0 }
 0x6eb   :  { %v2385_v29 = vadd.f32 %v8492_v17, %v2384_v28  ;;  %10526 = vrot.lane.b32.xlu1 %v11778_v23, %s13290_s9  ;;  %10521 = vrot.lane.b32.xlu0 %v11778_v23, %s13289_s5 }
 0x6ec   :  { %10033 = vmatpush3.bf16.xpose.msk.msra.mxu1 %vm11782_vm7, %v10031_v24 }
 0x6ed   :  { %10034 = vmatprep.subr.bf16.mxu1 %v10896_v0  ;;  %v11793_v30 = vpack.i.bf16 %v2390_v26, %v2385_v29  ;;  %v10047_v31 = vpack.c.bf16 %v2390_v26, %v2385_v29 }
 0x6ef   :  { %10531 = vrot.lane.b32.xlu1 %v11778_v23, %s13288_s8 }
 0x75d   :  { %v11797_v32 = vpop.permute.xlu1 %10526  ;;  %v11799_v33 = vpop.permute.xlu0 %10521 }
 0x75e   :  { %v10529_v34 = vunpack.i.h.bf16 %v11797_v32  ;;  %v10528_v35 = vunpack.i.l.bf16 %v11797_v32  ;;  %v10524_v36 = vunpack.i.h.bf16 %v11799_v33  ;;  %v10523_v37 = vunpack.i.l.bf16 %v11799_v33 }
 0x760   :  { %v10035_v58 = vpack.c.bf16 %v10524_v36, %v10523_v37  ;;  %v10039_v50 = vpack.c.bf16 %v10529_v34, %v10528_v35 }
 0x761   :  { %v11805_v38 = vpop.permute.xlu1 %10531 }
 0x762   :  { %v10534_v39 = vunpack.i.h.bf16 %v11805_v38  ;;  %v10533_v41 = vunpack.i.l.bf16 %v11805_v38 }
 0x764   :  { %v10043_v60 = vpack.c.bf16 %v10534_v39, %v10533_v41 }
 0x77d   :  { %v9362_v44 = vpop.f32.mrb[24].mxu1 }
 0x77e   :  { %v2216_v47 = vpop.f32.mrb[25].mxu1  ;;  %v2222_v48 = vadd.f32 %v9362_v44, %v8481_v42 }
 0x77f   :  { %v2217_v45 = vadd.f32 %v8481_v42, %v2216_v47 }
 0x781   :  { %2398 = vrot.lane.b32.xlu1 %v2217_v45, %s13288_s8  ;;  %2394 = vrot.lane.b32.xlu0 %v2217_v45, %s13289_s5 }
 0x782   :  { %9406 = vmatmul.mubr.msk.f32.vlgmr.msra.gmra.mrb[26].mxu1 %vm665_vm3, %v2217_v45 }
 0x783   :  { %10037 = vmatpush3.bf16.xpose.msk.msra.mxu1 %vm11782_vm7, %v10035_v58  ;;  %9412 = vmatprep.mubr.msk.f32.mxu1 %vm10900_vm2, %v10897_v1 }
 0x784   :  { %10038 = vmatprep.subr.bf16.mxu1 %v10896_v0 }
 0x785   :  { %10541 = vrot.lane.b32.xlu1 %v11793_v30, %s13290_s9  ;;  %2396 = vrot.lane.b32.xlu0 %v2217_v45, %s13290_s9 }
 0x789   :  { %10546 = vrot.lane.b32.xlu1 %v11793_v30, %s13288_s8  ;;  %10536 = vrot.lane.b32.xlu0 %v11793_v30, %s13289_s5 }
 0x78d   :  { %2405 = vrot.lane.b32.xlu1 %v2222_v48, %s13288_s8  ;;  %2401 = vrot.lane.b32.xlu0 %v2222_v48, %s13289_s5 }
 0x791   :  { %2403 = vrot.lane.b32.xlu0 %v2222_v48, %s13290_s9 }
 0x7f3   :  { %v2399_v52 = vpop.permute.xlu1 %2398  ;;  %v2395_v55 = vpop.permute.xlu0 %2394 }
 0x7f4   :  { %9413 = vmatmul.mubr.msk.f32.vlgmr.msra.gmra.mrb[28].mxu1 %vm665_vm3, %v2395_v55 }
 0x7f5   :  { %10041 = vmatpush3.bf16.xpose.msk.msra.mxu1 %vm11782_vm7, %v10039_v50  ;;  %9419 = vmatprep.mubr.msk.f32.mxu1 %vm10900_vm2, %v10897_v1 }
 0x7f6   :  { %10042 = vmatprep.subr.bf16.mxu1 %v10896_v0 }
 0x7f7   :  { %v11833_v56 = vpop.permute.xlu1 %10541  ;;  %v2397_v46 = vpop.permute.xlu0 %2396 }
 0x7f8   :  { %v10544_v57 = vunpack.i.h.bf16 %v11833_v56  ;;  %v10543_v59 = vunpack.i.l.bf16 %v11833_v56 }
 0x7fa   :  { %v10055_v7 = vpack.c.bf16 %v10544_v57, %v10543_v59 }
 0x7fb   :  { %v11837_v61 = vpop.permute.xlu1 %10546  ;;  %v11839_v62 = vpop.permute.xlu0 %10536 }
 0x7fc   :  { %v10549_v63 = vunpack.i.h.bf16 %v11837_v61  ;;  %v10548_v2 = vunpack.i.l.bf16 %v11837_v61  ;;  %v10539_v3 = vunpack.i.h.bf16 %v11839_v62  ;;  %v10538_v5 = vunpack.i.l.bf16 %v11839_v62  ;;  %9420 = vmatmul.mubr.msk.f32.vlgmr.msra.gmra.mrb[30].mxu1 %vm665_vm3, %v2397_v46 }
 0x7fd   :  { %10045 = vmatpush3.bf16.xpose.msk.msra.mxu1 %vm11782_vm7, %v10043_v60  ;;  %9426 = vmatprep.mubr.msk.f32.mxu1 %vm10900_vm2, %v10897_v1 }
 0x7fe   :  { %10046 = vmatprep.subr.bf16.mxu1 %v10896_v0  ;;  %v10051_v6 = vpack.c.bf16 %v10539_v3, %v10538_v5  ;;  %v10059_v9 = vpack.c.bf16 %v10549_v63, %v10548_v2 }
 0x7ff   :  { %v2402_v8 = vpop.permute.xlu0 %2401  ;;  %v2406_v11 = vpop.permute.xlu1 %2405 }
 0x803   :  { %v2404_v10 = vpop.permute.xlu0 %2403 }
 0x804   :  { %9427 = vmatmul.mubr.msk.f32.vlgmr.msra.gmra.mrb[32].mxu1 %vm665_vm3, %v2399_v52 }
 0x805   :  { %10049 = vmatpush3.bf16.xpose.msk.msra.mxu1 %vm11782_vm7, %v10047_v31  ;;  %9433 = vmatprep.mubr.msk.f32.mxu1 %vm10900_vm2, %v10897_v1 }
 0x806   :  { %10050 = vmatprep.subr.bf16.mxu1 %v10896_v0 }
 0x80c   :  { %9434 = vmatmul.mubr.msk.f32.vlgmr.msra.gmra.mrb[34].mxu1 %vm665_vm3, %v2222_v48 }
 0x80d   :  { %10053 = vmatpush3.bf16.xpose.msk.msra.mxu1 %vm11782_vm7, %v10051_v6  ;;  %9440 = vmatprep.mubr.msk.f32.mxu1 %vm10900_vm2, %v10897_v1 }
 0x80e   :  { %10054 = vmatprep.subr.bf16.mxu1 %v10896_v0 }
 0x814   :  { %9441 = vmatmul.mubr.msk.f32.vlgmr.msra.gmra.mrb[36].mxu1 %vm665_vm3, %v2402_v8 }
 0x815   :  { %10057 = vmatpush3.bf16.xpose.msk.msra.mxu1 %vm11782_vm7, %v10055_v7  ;;  %9447 = vmatprep.mubr.msk.f32.mxu1 %vm10900_vm2, %v10897_v1 }
 0x816   :  { %10058 = vmatprep.subr.bf16.mxu1 %v10896_v0 }
 0x81c   :  { %9448 = vmatmul.mubr.msk.f32.vlgmr.msra.gmra.mrb[38].mxu1 %vm665_vm3, %v2404_v10 }
 0x81d   :  { %10061 = vmatpush3.bf16.xpose.msk.msra.mxu1 %vm11782_vm7, %v10059_v9  ;;  %9454 = vmatprep.mubr.msk.f32.mxu1 %vm10900_vm2, %v10897_v1 }
 0x81e   :  { %10062 = vmatprep.subr.bf16.mxu1 %v10896_v0 }
 0x824   :  { %9455 = vmatmul.mubr.msk.f32.vlgmr.msra.gmra.mrb[40].mxu1 %vm665_vm3, %v2406_v11 }
 0x825   :  { %9461 = vmatprep.mubr.msk.f32.mxu1 %vm10900_vm2, %v10897_v1 }
 0x855   :  { %v2507_v12 = vpop.f32.mrb[26].mxu1 }
 0x856   :  { %v3043_v14 = vmul.f32 0.25, %v2507_v12  ;;  %v9407_v15 = vpop.f32.mrb[27].mxu1 }
 0x858   :  { %v3051_v16 = vsel %vm665_vm3, %v3043_v14, -inf }
 0x859   :  { %3052 = vmax.xlane.f32.xlu0 %v3051_v16 }
 0x8c7   :  { %v2583_v43 = vpop.f32.mrb[28].mxu1 }
 0x8c8   :  { %v3044_v49 = vmul.f32 0.25, %v2583_v43  ;;  %v9414_v17 = vpop.f32.mrb[29].mxu1 }
 0x8ca   :  { %v3054_v18 = vsel %vm665_vm3, %v3044_v49, -inf }
 0x8cb   :  { %3055 = vmax.xlane.f32.xlu1 %v3054_v18 }
 0x8cf   :  { %v2659_v19 = vpop.f32.mrb[30].mxu1 }
 0x8d0   :  { %v3045_v20 = vmul.f32 0.25, %v2659_v19  ;;  %v9421_v21 = vpop.f32.mrb[31].mxu1 }
 0x8d2   :  { %v3057_v22 = vsel %vm665_vm3, %v3045_v20, -inf }
 0x8d3   :  { %3058 = vmax.xlane.f32.xlu0 %v3057_v22 }
 0x8d7   :  { %v2735_v24 = vpop.f32.mrb[32].mxu1 }
 0x8d8   :  { %v3046_v26 = vmul.f32 0.25, %v2735_v24  ;;  %v9428_v28 = vpop.f32.mrb[33].mxu1 }
 0x8da   :  { %v3060_v29 = vsel %vm665_vm3, %v3046_v26, -inf }
 0x8db   :  { %3061 = vmax.xlane.f32.xlu0 %v3060_v29 }
 0x8df   :  { %v2811_v31 = vpop.f32.mrb[34].mxu1 }
 0x8e0   :  { %v3047_v34 = vmul.f32 0.25, %v2811_v31  ;;  %v9435_v35 = vpop.f32.mrb[35].mxu1 }
 0x8e2   :  { %v3063_v36 = vsel %vm665_vm3, %v3047_v34, -inf }
 0x8e3   :  { %3064 = vmax.xlane.f32.xlu1 %v3063_v36 }
 0x8e6   :  { %v3053_v37 = vpop.xlane.xlu0 %3052 }
 0x8e7   :  { %v3075_v39 = vsub.f32 %v3043_v14, %v3053_v37  ;;  %v2887_v41 = vpop.f32.mrb[36].mxu1 }
 0x8e8   :  { %v3048_v42 = vmul.f32 0.25, %v2887_v41  ;;  %v9442_v44 = vpop.f32.mrb[37].mxu1 }
 0x8e9   :  { %v3083_v47 = vmul.f32 1.442695, %v3075_v39 }
 0x8ea   :  { %v3066_v45 = vsel %vm665_vm3, %v3048_v42, -inf }
 0x8eb   :  { %10692 = vpow2.f32 %v3083_v47  ;;  %3067 = vmax.xlane.f32.xlu0 %v3066_v45 }
 0x8ef   :  { %v2963_v58 = vpop.f32.mrb[38].mxu1 }
 0x8f0   :  { %v3049_v48 = vmul.f32 0.25, %v2963_v58  ;;  %v9449_v50 = vpop.f32.mrb[39].mxu1 }
 0x8f2   :  { %v3069_v52 = vsel %vm665_vm3, %v3049_v48, -inf }
 0x8f3   :  { %3070 = vmax.xlane.f32.xlu1 %v3069_v52 }
 0x8f5   :  { %v11885_v55 = vpop.eup %10692 }
 0x8f6   :  { %v3099_v46 = vsel %vm665_vm3, %v11885_v55, 0.0 }
 0x8f7   :  { %3100 = vadd.xlane.f32.xlu1 %v3099_v46  ;;  %v3039_v57 = vpop.f32.mrb[40].mxu1 }
 0x8f8   :  { %v3050_v59 = vmul.f32 0.25, %v3039_v57  ;;  %v9456_v60 = vpop.f32.mrb[41].mxu1 }
 0x8fa   :  { %v3072_v63 = vsel %vm665_vm3, %v3050_v59, -inf }
 0x8fb   :  { %3073 = vmax.xlane.f32.xlu0 %v3072_v63 }
 0x908   :  { %10551 = vrot.lane.b32.xlu1 %v11778_v23, %s13297_s28 }
 0x90c   :  { %10561 = vrot.lane.b32.xlu1 %v11797_v32, %s13297_s28 }
 0x910   :  { %10566 = vrot.lane.b32.xlu1 %v11805_v38, %s13297_s28 }
 0x911   :  { %10556 = vrot.lane.b32.xlu0 %v11799_v33, %s13297_s28 }
 0x914   :  { %10576 = vrot.lane.b32.xlu1 %v11839_v62, %s13297_s28 }
 0x915   :  { %10571 = vrot.lane.b32.xlu0 %v11793_v30, %s13297_s28 }
 0x958   :  { %v3056_v2 = vpop.xlane.xlu1 %3055 }
 0x959   :  { %v3076_v3 = vsub.f32 %v3044_v49, %v3056_v2 }
 0x95b   :  { %v3085_v5 = vmul.f32 1.442695, %v3076_v3 }
 0x95d   :  { %10694 = vpow2.f32 %v3085_v5 }
 0x960   :  { %v3059_v23 = vpop.xlane.xlu0 %3058 }
 0x961   :  { %v3077_v6 = vsub.f32 %v3045_v20, %v3059_v23 }
 0x963   :  { %v3087_v7 = vmul.f32 1.442695, %v3077_v6 }
 0x965   :  { %10696 = vpow2.f32 %v3087_v7 }
 0x967   :  { %v11902_v32 = vpop.eup %10694 }
 0x968   :  { %v3062_v38 = vpop.xlane.xlu0 %3061  ;;  %v3102_v33 = vsel %vm665_vm3, %v11902_v32, 0.0 }
 0x969   :  { %v3078_v8 = vsub.f32 %v3046_v26, %v3062_v38  ;;  %3103 = vadd.xlane.f32.xlu0 %v3102_v33 }
 0x96b   :  { %v3089_v62 = vmul.f32 1.442695, %v3078_v8 }
 0x96d   :  { %10698 = vpow2.f32 %v3089_v62 }
 0x96f   :  { %v11906_v9 = vpop.eup %10696 }
 0x970   :  { %v3065_v30 = vpop.xlane.xlu1 %3064  ;;  %v3105_v10 = vsel %vm665_vm3, %v11906_v9, 0.0 }
 0x971   :  { %v3079_v11 = vsub.f32 %v3047_v34, %v3065_v30  ;;  %3106 = vadd.xlane.f32.xlu1 %v3105_v10 }
 0x973   :  { %v3091_v12 = vmul.f32 1.442695, %v3079_v11 }
 0x975   :  { %10700 = vpow2.f32 %v3091_v12 }
 0x977   :  { %v11910_v14 = vpop.eup %10698 }
 0x978   :  { %v3068_v15 = vpop.xlane.xlu0 %3067  ;;  %v3108_v16 = vsel %vm665_vm3, %v11910_v14, 0.0 }
 0x979   :  { %v3080_v43 = vsub.f32 %v3048_v42, %v3068_v15  ;;  %3109 = vadd.xlane.f32.xlu0 %v3108_v16 }
 0x97b   :  { %v3093_v49 = vmul.f32 1.442695, %v3080_v43 }
 0x97d   :  { %10702 = vpow2.f32 %v3093_v49 }
 0x97f   :  { %v11914_v17 = vpop.eup %10700 }
 0x980   :  { %v3071_v18 = vpop.xlane.xlu1 %3070  ;;  %v3111_v19 = vsel %vm665_vm3, %v11914_v17, 0.0 }
 0x981   :  { %v3081_v20 = vsub.f32 %v3049_v48, %v3071_v18  ;;  %3112 = vadd.xlane.f32.xlu1 %v3111_v19 }
 0x983   :  { %v3095_v21 = vmul.f32 1.442695, %v3081_v20 }
 0x984   :  { %v3101_v22 = vpop.xlane.xlu1 %3100 }
 0x985   :  { %10704 = vpow2.f32 %v3095_v21 }
 0x986   :  { %10706 = vrcp.f32 %v3101_v22 }
 0x987   :  { %v11918_v24 = vpop.eup %10702 }
 0x988   :  { %v10552_v26 = vpop.permute.xlu1 %10551  ;;  %v3074_v28 = vpop.xlane.xlu0 %3073  ;;  %v3114_v29 = vsel %vm665_vm3, %v11918_v24, 0.0 }
 0x989   :  { %v10554_v31 = vunpack.i.h.bf16 %v10552_v26  ;;  %v10553_v34 = vunpack.i.l.bf16 %v10552_v26  ;;  %v3082_v35 = vsub.f32 %v3050_v59, %v3074_v28  ;;  %3115 = vadd.xlane.f32.xlu0 %v3114_v29 }
 0x98b   :  { %v10063_v36 = vpack.c.bf16 %v10554_v31, %v10553_v34  ;;  %v3097_v37 = vmul.f32 1.442695, %v3082_v35 }
 0x98c   :  { %v10562_v39 = vpop.permute.xlu1 %10561  ;;  %v10557_v41 = vpop.permute.xlu0 %10556 }
 0x98d   :  { %10708 = vpow2.f32 %v3097_v37  ;;  %v10564_v42 = vunpack.i.h.bf16 %v10562_v39  ;;  %v10563_v44 = vunpack.i.l.bf16 %v10562_v39  ;;  %v10559_v47 = vunpack.i.h.bf16 %v10557_v41  ;;  %10064 = vmatpush3.bf16.msra.mxu1 %v10063_v36 }
 0x98e   :  { %v10558_v45 = vunpack.i.l.bf16 %v10557_v41  ;;  %10068 = vmatprep.subr.bf16.mxu1 %v10896_v0 }
 0x98f   :  { %v11923_v58 = vpop.eup %10704  ;;  %v10069_v46 = vpack.c.bf16 %v10564_v42, %v10563_v44 }
 0x990   :  { %v10707_v48 = vpop.eup %10706  ;;  %v10066_v50 = vpack.c.bf16 %v10559_v47, %v10558_v45  ;;  %v3117_v52 = vsel %vm665_vm3, %v11923_v58, 0.0  ;;  %v10567_v63 = vpop.permute.xlu1 %10566  ;;  %v3801_v45 = vld [vmem:[%s13224_s12] sm:$0xff] }
 0x991   :  { %3118 = vadd.xlane.f32.xlu1 %v3117_v52  ;;  %v3124_v57 = vmul.f32 %v10707_v48, %v11885_v55  ;;  %v10572_v55 = vpop.permute.xlu0 %10571  ;;  %v10569_v23 = vunpack.i.h.bf16 %v10567_v63  ;;  %v10568_v6 = vunpack.i.l.bf16 %v10567_v63  ;;  %v3804_v52 = vld [vmem:[%s13224_s12 + $0x18] sm:$0xff]  ;;  %v3805_v63 = vld [vmem:[%s13224_s12 + $0x20] sm:$0xff] }
 0x992   :  { %10067 = vmatpush3.bf16.msra.mxu0 %v10066_v50  ;;  %v10573_v8 = vunpack.i.l.bf16 %v10572_v55  ;;  %v3803_v50 = vld [vmem:[%s13224_s12 + $0x10] sm:$0xff] }
 0x993   :  { %10071 = vmatprep.subr.bf16.mxu0 %v10896_v0  ;;  %9462 = vmatmul.mubr.msk.f32.vlgmr.msra.gmra.mrb[42].mxu1 %vm665_vm3, %v3124_v57  ;;  %v10072_v33 = vpack.c.bf16 %v10569_v23, %v10568_v6  ;;  %v3808_v23 = vld [vmem:[%s13224_s12 + $0x38] sm:$0xff] }
 0x994   :  { %10070 = vmatpush3.bf16.msra.mxu1 %v10069_v46  ;;  %9475 = vmatprep.mubr.msk.f32.mxu1 %vm10900_vm2, %v10897_v1  ;;  %v10577_v3 = vpop.permute.xlu1 %10576  ;;  %v10092_v46 = vpack.c.bf16 %v3804_v52, %v3803_v50  ;;  %v3970_v52 = vld [vmem:[%s13228_s16 + $0x20] sm:$0xff] }
 0x995   :  { %10074 = vmatprep.subr.bf16.mxu1 %v10896_v0  ;;  %v10579_v11 = vunpack.i.h.bf16 %v10577_v3  ;;  %v10578_v12 = vunpack.i.l.bf16 %v10577_v3  ;;  %v3807_v3 = vld [vmem:[%s13224_s12 + $0x30] sm:$0xff] }
 0x996   :  { %v10104_v6 = vpack.c.bf16 %v3808_v23, %v3807_v3  ;;  %v3990_v3 = vld [vmem:[%s13228_s16 + $0xc0] sm:$0xff] }
 0x997   :  { %v11933_v59 = vpop.eup %10708  ;;  %v10078_v43 = vpack.c.bf16 %v10579_v11, %v10578_v12 }
 0x998   :  { %v3120_v60 = vsel %vm665_vm3, %v11933_v59, 0.0 }
 0x999   :  { %3121 = vadd.xlane.f32.xlu0 %v3120_v60 }
 0x9a2   :  { %10586 = vrot.lane.b32.xlu1 %v11837_v61, %s13297_s28  ;;  %v10574_v61 = vunpack.i.h.bf16 %v10572_v55 }
 0x9a4   :  { %v10075_v10 = vpack.c.bf16 %v10574_v61, %v10573_v8 }
 0x9af   :  { %10581 = vrot.lane.b32.xlu0 %v11833_v56, %s13297_s28 }
 0x9f6   :  { %v3104_v2 = vpop.xlane.xlu0 %3103 }
 0x9f7   :  { %10710 = vrcp.f32 %v3104_v2  ;;  %v3806_v2 = vld [vmem:[%s13224_s12 + $0x28] sm:$0xff] }
 0x9fe   :  { %v3107_v5 = vpop.xlane.xlu1 %3106 }
 0x9ff   :  { %10712 = vrcp.f32 %v3107_v5  ;;  %v10098_v5 = vpack.c.bf16 %v3806_v2, %v3805_v63  ;;  %v3972_v63 = vld [vmem:[%s13228_s16 + $0x30] sm:$0xff]  ;;  %v3973_v2 = vld [vmem:[%s13228_s16 + $0x38] sm:$0xff] }
 0xa00   :  { %v10131_v23 = vpack.c.bf16 %v3973_v2, %v3972_v63 }
 0xa01   :  { %v10711_v7 = vpop.eup %10710 }
 0xa02   :  { %v3126_v38 = vmul.f32 %v10711_v7, %v11902_v32 }
 0xa04   :  { %9469 = vmatmul.mubr.msk.f32.vlgmr.msra.gmra.mrb[26].mxu0 %vm665_vm3, %v3126_v38 }
 0xa05   :  { %10073 = vmatpush3.bf16.msra.mxu0 %v10072_v33  ;;  %9482 = vmatprep.mubr.msk.f32.mxu0 %vm10900_vm2, %v10897_v1 }
 0xa06   :  { %v3110_v56 = vpop.xlane.xlu0 %3109  ;;  %10077 = vmatprep.subr.bf16.mxu0 %v10896_v0 }
 0xa07   :  { %10714 = vrcp.f32 %v3110_v56 }
 0xa09   :  { %v10713_v62 = vpop.eup %10712 }
 0xa0a   :  { %v3128_v30 = vmul.f32 %v10713_v62, %v11906_v9 }
 0xa0c   :  { %9476 = vmatmul.mubr.msk.f32.vlgmr.msra.gmra.mrb[44].mxu1 %vm665_vm3, %v3128_v30 }
 0xa0d   :  { %10076 = vmatpush3.bf16.msra.mxu1 %v10075_v10  ;;  %9489 = vmatprep.mubr.msk.f32.mxu1 %vm10900_vm2, %v10897_v1 }
 0xa0e   :  { %v3113_v32 = vpop.xlane.xlu1 %3112  ;;  %10080 = vmatprep.subr.bf16.mxu1 %v10896_v0 }
 0xa0f   :  { %10716 = vrcp.f32 %v3113_v32 }
 0xa11   :  { %v10715_v15 = vpop.eup %10714 }
 0xa12   :  { %v3130_v16 = vmul.f32 %v10715_v15, %v11910_v14 }
 0xa14   :  { %9483 = vmatmul.mubr.msk.f32.vlgmr.msra.gmra.mrb[28].mxu0 %vm665_vm3, %v3130_v16 }
 0xa15   :  { %10079 = vmatpush3.bf16.msra.mxu0 %v10078_v43  ;;  %9496 = vmatprep.mubr.msk.f32.mxu0 %vm10900_vm2, %v10897_v1 }
 0xa16   :  { %v3116_v9 = vpop.xlane.xlu0 %3115  ;;  %10083 = vmatprep.subr.bf16.mxu0 %v10896_v0 }
 0xa17   :  { %10718 = vrcp.f32 %v3116_v9 }
 0xa19   :  { %v10717_v49 = vpop.eup %10716 }
 0xa1a   :  { %v3132_v18 = vmul.f32 %v10717_v49, %v11914_v17 }
 0xa1c   :  { %9490 = vmatmul.mubr.msk.f32.vlgmr.msra.gmra.mrb[46].mxu1 %vm665_vm3, %v3132_v18 }
 0xa1d   :  { %9503 = vmatprep.mubr.msk.f32.mxu1 %vm10900_vm2, %v10897_v1 }
 0xa1e   :  { %v3119_v14 = vpop.xlane.xlu1 %3118 }
 0xa1f   :  { %10720 = vrcp.f32 %v3119_v14 }
 0xa21   :  { %v10719_v19 = vpop.eup %10718 }
 0xa22   :  { %v10587_v20 = vpop.permute.xlu1 %10586  ;;  %v3134_v21 = vmul.f32 %v10719_v19, %v11918_v24 }
 0xa23   :  { %v10589_v22 = vunpack.i.h.bf16 %v10587_v20  ;;  %v10588_v26 = vunpack.i.l.bf16 %v10587_v20  ;;  %v8545_v20 = vld [vmem:[%s13225_s13] ss:$0 sm:$0xff] }
 0xa24   :  { %9497 = vmatmul.mubr.msk.f32.vlgmr.msra.gmra.mrb[30].mxu0 %vm665_vm3, %v3134_v21 }
 0xa25   :  { %v10084_v28 = vpack.c.bf16 %v10589_v22, %v10588_v26  ;;  %9510 = vmatprep.mubr.msk.f32.mxu0 %vm10900_vm2, %v10897_v1 }
 0xa26   :  { %v3122_v17 = vpop.xlane.xlu0 %3121 }
 0xa27   :  { %10722 = vrcp.f32 %v3122_v17  ;;  %10085 = vmatpush3.bf16.msra.mxu0 %v10084_v28 }
 0xa29   :  { %v10721_v35 = vpop.eup %10720 }
 0xa2a   :  { %v10582_v29 = vpop.permute.xlu0 %10581  ;;  %v3136_v24 = vmul.f32 %v10721_v35, %v11923_v58  ;;  %v3802_v58 = vld [vmem:[%s13224_s12 + $0x8] sm:$0xff]  ;;  %v3966_v35 = vld [vmem:[%s13228_s16] sm:$0xff] }
 0xa2b   :  { %v10584_v31 = vunpack.i.h.bf16 %v10582_v29  ;;  %v10583_v34 = vunpack.i.l.bf16 %v10582_v29  ;;  %v10086_v48 = vpack.c.bf16 %v3802_v58, %v3801_v45  ;;  %v3986_v45 = vld [vmem:[%s13228_s16 + $0xa0] sm:$0xff]  ;;  %v3987_v58 = vld [vmem:[%s13228_s16 + $0xa8] sm:$0xff] }
 0xa2c   :  { %v10122_v50 = vpack.c.bf16 %v3987_v58, %v3986_v45 }
 0xa2d   :  { %v10081_v36 = vpack.c.bf16 %v10584_v31, %v10583_v34  ;;  %v3982_v31 = vld [vmem:[%s13228_s16 + $0x80] sm:$0xff]  ;;  %v3983_v34 = vld [vmem:[%s13228_s16 + $0x88] sm:$0xff] }
 0xa2f   :  { %10082 = vmatpush3.bf16.msra.mxu1 %v10081_v36  ;;  %v10110_v36 = vpack.c.bf16 %v3983_v34, %v3982_v31  ;;  %v3980_v34 = vld [vmem:[%s13228_s16 + $0x70] sm:$0xff] }
 0xa30   :  { %10088 = vmatprep.subr.msk.bf16.mxu1 %vm11074_vm1, %v10086_v48 }
 0xa31   :  { %v10723_v37 = vpop.eup %10722  ;;  %10112 = vmatprep.subr.msk.bf16.mxu0 %vm11074_vm1, %v10110_v36 }
 0xa32   :  { %9504 = vmatmul.mubr.msk.f32.vlgmr.msra.gmra.mrb[48].mxu1 %vm665_vm3, %v3136_v24  ;;  %v3138_v39 = vmul.f32 %v10723_v37, %v11933_v59  ;;  %v3967_v24 = vld [vmem:[%s13228_s16 + $0x8] sm:$0xff]  ;;  %v3984_v37 = vld [vmem:[%s13228_s16 + $0x90] sm:$0xff] }
 0xa34   :  { %9511 = vmatmul.mubr.msk.f32.vlgmr.msra.gmra.mrb[32].mxu0 %vm665_vm3, %v3138_v39  ;;  %v3985_v39 = vld [vmem:[%s13228_s16 + $0x98] sm:$0xff] }
 0xa38   :  { %10091 = vmatpush3.bf16.xpose.msk.msra.mxu1 %vm11074_vm1, %v10086_v48 }
 0xa39   :  { %10094 = vmatprep.subr.msk.bf16.mxu1 %vm11074_vm1, %v10092_v46 }
 0xa40   :  { %10097 = vmatpush3.bf16.xpose.msk.msra.mxu1 %vm11074_vm1, %v10092_v46  ;;  %v3971_v46 = vld [vmem:[%s13228_s16 + $0x28] sm:$0xff] }
 0xa41   :  { %10100 = vmatprep.subr.msk.bf16.mxu1 %vm11074_vm1, %v10098_v5 }
 0xa48   :  { %10103 = vmatpush3.bf16.xpose.msk.msra.mxu1 %vm11074_vm1, %v10098_v5  ;;  %v3991_v5 = vld [vmem:[%s13228_s16 + $0xc8] sm:$0xff] }
 0xa49   :  { %10106 = vmatprep.subr.msk.bf16.mxu1 %vm11074_vm1, %v10104_v6 }
 0xa50   :  { %10109 = vmatpush3.bf16.xpose.msk.msra.mxu1 %vm11074_vm1, %v10104_v6  ;;  %v10134_v6 = vpack.c.bf16 %v3991_v5, %v3990_v3  ;;  %v8556_v3 = vld [vmem:[%s13226_s14] ss:$0 sm:$0xff] }
 0xa66   :  { %v3214_v41 = vpop.f32.mrb[42].mxu1 }
 0xa67   :  { %v9463_v42 = vpop.f32.mrb[43].mxu1 }
 0xa68   :  { %v10116_v42 = vpack.c.bf16 %v3985_v39, %v3984_v37  ;;  %v4212_v37 = vld [vmem:[%s13230_s18 + $0x18] sm:$0xff]  ;;  %v4209_v39 = vld [vmem:[%s13230_s18] sm:$0xff] }
 0xad7   :  { %v3293_v44 = vpop.f32.mrb[26].mxu0 }
 0xad8   :  { %3772 = vrot.lane.b32.xlu0 %v3293_v44, %s13292_s30  ;;  %v9470_v47 = vpop.f32.mrb[27].mxu0  ;;  %v3968_v44 = vld [vmem:[%s13228_s16 + $0x10] sm:$0xff] }
 0xad9   :  { %v3969_v47 = vld [vmem:[%s13228_s16 + $0x18] sm:$0xff] }
 0xada   :  { %v10119_v48 = vpack.c.bf16 %v3969_v47, %v3968_v44  ;;  %v4214_v44 = vld [vmem:[%s13230_s18 + $0x28] sm:$0xff]  ;;  %v4216_v47 = vld [vmem:[%s13230_s18 + $0x38] sm:$0xff] }
 0xadb   :  { %v10162_v58 = vpack.c.bf16 %v4216_v47, %v4214_v44 }
 0xadf   :  { %v3372_v57 = vpop.f32.mrb[44].mxu1 }
 0xae0   :  { %3776 = vrot.lane.b32.xlu1 %v3372_v57, %s13298_s6  ;;  %v9477_v59 = vpop.f32.mrb[45].mxu1  ;;  %v3988_v57 = vld [vmem:[%s13228_s16 + $0xb0] sm:$0xff] }
 0xae1   :  { %v3989_v59 = vld [vmem:[%s13228_s16 + $0xb8] sm:$0xff] }
 0xae7   :  { %v3451_v60 = vpop.f32.mrb[28].mxu0 }
 0xae8   :  { %v9484_v55 = vpop.f32.mrb[29].mxu0  ;;  %3780 = vrot.lane.b32.xlu1 %v3451_v60, %s13299_s25  ;;  %v10125_v60 = vpack.c.bf16 %v3971_v46, %v3970_v52 }
 0xae9   :  { %v10128_v55 = vpack.c.bf16 %v3989_v59, %v3988_v57 }
 0xaef   :  { %v3530_v7 = vpop.f32.mrb[46].mxu1 }
 0xaf0   :  { %v9491_v38 = vpop.f32.mrb[47].mxu1 }
 0xaf1   :  { %v3975_v38 = vld [vmem:[%s13228_s16 + $0x48] sm:$0xff] }
 0xaf7   :  { %v3609_v33 = vpop.f32.mrb[30].mxu0 }
 0xaf8   :  { %3787 = vrot.lane.b32.xlu0 %v3609_v33, %s13292_s30  ;;  %v9498_v56 = vpop.f32.mrb[31].mxu0  ;;  %v3992_v33 = vld [vmem:[%s13228_s16 + $0xd0] sm:$0xff] }
 0xaf9   :  { %v3993_v56 = vld [vmem:[%s13228_s16 + $0xd8] sm:$0xff] }
 0xb05   :  { %v3688_v61 = vpop.f32.mrb[48].mxu1 }
 0xb06   :  { %3791 = vrot.lane.b32.xlu0 %v3688_v61, %s13298_s6  ;;  %v9505_v8 = vpop.f32.mrb[49].mxu1 }
 0xb07   :  { %v3767_v62 = vpop.f32.mrb[32].mxu0  ;;  %v10140_v8 = vpack.c.bf16 %v3993_v56, %v3992_v33 }
 0xb08   :  { %v9512_v30 = vpop.f32.mrb[33].mxu0  ;;  %3795 = vrot.lane.b32.xlu1 %v3767_v62, %s13299_s25  ;;  %v3976_v62 = vld [vmem:[%s13228_s16 + $0x50] sm:$0xff] }
 0xb09   :  { %v3977_v30 = vld [vmem:[%s13228_s16 + $0x58] sm:$0xff] }
 0xb4a   :  { %v3773_v10 = vpop.permute.xlu0 %3772 }
 0xb4b   :  { %v3783_v11 = vsel %vm665_vm3, %v3214_v41, %v3773_v10  ;;  %v10113_v41 = vpack.c.bf16 %v3967_v24, %v3966_v35  ;;  %v10143_v10 = vpack.c.bf16 %v3977_v30, %v3976_v62  ;;  %v3981_v35 = vld [vmem:[%s13228_s16 + $0x78] sm:$0xff]  ;;  %v4210_v24 = vld [vmem:[%s13230_s18 + $0x8] sm:$0xff] }
 0xb4c   :  { %v10155_v36 = vpack.c.bf16 %v3981_v35, %v3980_v34  ;;  %v4220_v62 = vld [vmem:[%s13230_s18 + $0x58] sm:$0xff] }
 0xb4d   :  { %10115 = vmatpush3.bf16.xpose.msk.msra.mxu0 %vm11074_vm1, %v10113_v41  ;;  %v10158_v41 = vpack.c.bf16 %v4212_v37, %v4210_v24 }
 0xb4e   :  { %10118 = vmatprep.subr.msk.bf16.mxu0 %vm11074_vm1, %v10116_v42  ;;  %v4211_v42 = vld [vmem:[%s13230_s18 + $0x10] sm:$0xff] }
 0xb4f   :  { %v10160_v45 = vpack.c.bf16 %v4211_v42, %v4209_v39  ;;  %10159 = vmatprep.subr.bf16.mxu1 %v10158_v41 }
 0xb52   :  { %v3777_v32 = vpop.permute.xlu1 %3776 }
 0xb53   :  { %v3784_v12 = vsel %vm1966_vm5, %v3783_v11, %v3777_v32 }
 0xb55   :  { %10121 = vmatpush3.bf16.xpose.msk.msra.mxu0 %vm11074_vm1, %v10119_v48  ;;  %v4213_v48 = vld [vmem:[%s13230_s18 + $0x20] sm:$0xff] }
 0xb56   :  { %10124 = vmatprep.subr.msk.bf16.mxu0 %vm11074_vm1, %v10122_v50  ;;  %v4215_v50 = vld [vmem:[%s13230_s18 + $0x30] sm:$0xff] }
 0xb57   :  { %v10164_v52 = vpack.c.bf16 %v4215_v50, %v4213_v48 }
 0xb5a   :  { %v3781_v15 = vpop.permute.xlu1 %3780 }
 0xb5b   :  { %v3785_v16 = vsel %vm1968_vm6, %v3784_v12, %v3781_v15 }
 0xb5c   :  { %9529 = vmatprep.mubr.msk.f32.mxu1 %vm476_vm0, %v3785_v16 }
 0xb5d   :  { %10127 = vmatpush3.bf16.xpose.msk.msra.mxu0 %vm11074_vm1, %v10125_v60 }
 0xb5e   :  { %10130 = vmatprep.subr.msk.bf16.mxu0 %vm11074_vm1, %v10128_v55 }
 0xb65   :  { %10133 = vmatpush3.bf16.xpose.msk.msra.mxu0 %vm11074_vm1, %v10131_v23  ;;  %v8557_v23 = vld [vmem:[%s13227_s15] ss:$0 sm:$0xff] }
 0xb66   :  { %10136 = vmatprep.subr.msk.bf16.mxu0 %vm11074_vm1, %v10134_v6 }
 0xb6a   :  { %v3788_v43 = vpop.permute.xlu0 %3787 }
 0xb6b   :  { %v3798_v9 = vsel %vm665_vm3, %v3530_v7, %v3788_v43  ;;  %v3974_v7 = vld [vmem:[%s13228_s16 + $0x40] sm:$0xff] }
 0xb6c   :  { %v10137_v61 = vpack.c.bf16 %v3975_v38, %v3974_v7 }
 0xb6e   :  { %10139 = vmatpush3.bf16.xpose.msk.msra.mxu0 %vm11074_vm1, %v10137_v61 }
 0xb6f   :  { %10142 = vmatprep.subr.msk.bf16.mxu0 %vm11074_vm1, %v10140_v8  ;;  %v4218_v8 = vld [vmem:[%s13230_s18 + $0x48] sm:$0xff] }
 0xb70   :  { %v10166_v30 = vpack.c.bf16 %v4220_v62, %v4218_v8  ;;  %v8597_v62 = vld [vmem:[%s13281_s27 + $0xd0] sm:$0xff] }
 0xb76   :  { %10145 = vmatpush3.bf16.xpose.msk.msra.mxu0 %vm11074_vm1, %v10143_v10  ;;  %v4217_v10 = vld [vmem:[%s13230_s18 + $0x40] sm:$0xff] }
 0xb78   :  { %v3792_v49 = vpop.permute.xlu0 %3791 }
 0xb79   :  { %v3799_v18 = vsel %vm1966_vm5, %v3798_v9, %v3792_v49 }
 0xb7a   :  { %v3796_v14 = vpop.permute.xlu1 %3795 }
 0xb7b   :  { %v3800_v19 = vsel %vm1968_vm6, %v3799_v18, %v3796_v14 }
 0xb7c   :  { %9530 = vmatmul.mubr.msk.f32.vlgmr.msra.gmra.mrb[50].mxu1 %vm476_vm0, %v3800_v19  ;;  %v3994_v19 = vld [vmem:[%s13228_s16 + $0xe0] sm:$0xff] }
 0xb7d   :  { %10161 = vmatpush1.bf16.xpose.msra.mxu1 %v10160_v45 }
 0xb7e   :  { %10163 = vmatprep.subr.bf16.mxu1 %v10162_v58 }
 0xb85   :  { %10165 = vmatpush1.bf16.xpose.msra.mxu1 %v10164_v52 }
 0xb86   :  { %10167 = vmatprep.subr.bf16.mxu1 %v10166_v30  ;;  %v8598_v30 = vld [vmem:[%s13281_s27 + $0xd8] sm:$0xff] }
 0xc4f   :  { %v9531_v21 = vpop.f32.mrb[50].mxu1 }
 0xc50   :  { %v3918_v22 = vadd.f32 %v9531_v21, %v8545_v20  ;;  %v3912_v26 = vpop.f32.mrb[51].mxu1 }
 0xc51   :  { %v3913_v28 = vadd.f32 %v8545_v20, %v3912_v26  ;;  %v3995_v20 = vld [vmem:[%s13228_s16 + $0xe8] sm:$0xff] }
 0xc52   :  { %v3926_v17 = vsel %vm476_vm0, %v3918_v22, 0.0  ;;  %v10146_v21 = vpack.c.bf16 %v3995_v20, %v3994_v19  ;;  %v3979_v26 = vld [vmem:[%s13228_s16 + $0x68] sm:$0xff] }
 0xc53   :  { %3927 = vadd.xlane.f32.xlu1 %v3926_v17  ;;  %v3923_v29 = vsel %vm476_vm0, %v3913_v28, 0.0  ;;  %v3996_v17 = vld [vmem:[%s13228_s16 + $0xf0] sm:$0xff] }
 0xc54   :  { %3924 = vadd.xlane.f32.xlu0 %v3923_v29  ;;  %v3997_v29 = vld [vmem:[%s13228_s16 + $0xf8] sm:$0xff]  ;;  %10148 = vmatprep.subr.msk.bf16.mxu0 %vm11074_vm1, %v10146_v21 }
 0xc55   :  { %v10152_v31 = vpack.c.bf16 %v3997_v29, %v3996_v17 }
 0xce0   :  { %v3928_v32 = vpop.xlane.xlu1 %3927 }
 0xce1   :  { %v3931_v11 = vmul.f32 0.015625, %v3928_v32  ;;  %v3925_v12 = vpop.xlane.xlu0 %3924  ;;  %v4219_v32 = vld [vmem:[%s13230_s18 + $0x50] sm:$0xff] }
 0xce2   :  { %v3930_v15 = vmul.f32 0.015625, %v3925_v12  ;;  %v4222_v12 = vld [vmem:[%s13230_s18 + $0x68] sm:$0xff] }
 0xce3   :  { %v3933_v16 = vsub.f32 %v3918_v22, %v3931_v11  ;;  %v3978_v22 = vld [vmem:[%s13228_s16 + $0x60] sm:$0xff]  ;;  %v10168_v11 = vpack.c.bf16 %v4219_v32, %v4217_v10  ;;  %v10179_v10 = vpack.c.bf16 %v8598_v30, %v8597_v62 }
 0xce4   :  { %v3932_v43 = vsub.f32 %v3913_v28, %v3930_v15  ;;  %v10149_v28 = vpack.c.bf16 %v3979_v26, %v3978_v22  ;;  %v4224_v15 = vld [vmem:[%s13230_s18 + $0x78] sm:$0xff]  ;;  %v8599_v32 = vld [vmem:[%s13281_s27 + $0xe0] sm:$0xff] }
 0xce5   :  { %v3935_v18 = vmul.f32 %v3933_v16, %v3933_v16  ;;  %10169 = vmatpush1.bf16.xpose.msra.mxu1 %v10168_v11  ;;  %v8600_v11 = vld [vmem:[%s13281_s27 + $0xe8] sm:$0xff] }
 0xce6   :  { %v3934_v9 = vmul.f32 %v3932_v43, %v3932_v43  ;;  %10151 = vmatpush3.bf16.xpose.msk.msra.mxu0 %vm11074_vm1, %v10149_v28 }
 0xce7   :  { %v3939_v14 = vsel %vm476_vm0, %v3935_v18, 0.0  ;;  %10154 = vmatprep.subr.msk.bf16.mxu0 %vm11074_vm1, %v10152_v31  ;;  %v3998_v18 = vld [vmem:[%s13229_s17] sm:$0x3] }
 0xce8   :  { %v3936_v49 = vsel %vm476_vm0, %v3934_v9, 0.0  ;;  %v4223_v9 = vld [vmem:[%s13230_s18 + $0x70] sm:$0xff]  ;;  %v4007_v19 = vrot.slane %v3998_v18, %v11309_v40 }
 0xce9   :  { %3937 = vadd.xlane.f32.xlu0 %v3936_v49 }
 0xced   :  { %3940 = vadd.xlane.f32.xlu0 %v3939_v14  ;;  %v4003_v14 = vrot.slane %v3998_v18, %v11282_v27 }
 0xcee   :  { %10157 = vmatpush3.bf16.xpose.msk.msra.mxu0 %vm11074_vm1, %v10155_v36 }
 0xcef   :  { %9532 = vmatprep.subr.mxu0 %v10897_v1 }
 0xd76   :  { %v3938_v46 = vpop.xlane.xlu0 %3937 }
 0xd77   :  { %v3942_v57 = vmul.f32 0.015625, %v3938_v46 }
 0xd79   :  { %v3944_v59 = vadd.f32 1e-05, %v3942_v57 }
 0xd7a   :  { %v3941_v60 = vpop.xlane.xlu0 %3940 }
 0xd7b   :  { %10724 = vrsqrt.f32 %v3944_v59  ;;  %v3943_v55 = vmul.f32 0.015625, %v3941_v60 }
 0xd7d   :  { %v3945_v63 = vadd.f32 1e-05, %v3943_v55 }
 0xd7f   :  { %10726 = vrsqrt.f32 %v3945_v63  ;;  %v8592_v63 = vld [vmem:[%s13231_s19] ss:$0 sm:$0xff] }
 0xd85   :  { %v10725_v2 = vpop.eup %10724 }
 0xd86   :  { %v3948_v5 = vmul.f32 %v10725_v2, %v3932_v43  ;;  %v4221_v43 = vld [vmem:[%s13230_s18 + $0x60] sm:$0xff] }
 0xd87   :  { %v10172_v49 = vpack.c.bf16 %v4223_v9, %v4221_v43  ;;  %v8603_v9 = vld [vmem:[%s13281_s27 + $0x100] sm:$0xff] }
 0xd88   :  { %v3956_v6 = vmul.f32 %v8556_v3, %v3948_v5 }
 0xd89   :  { %v10727_v7 = vpop.eup %10726 }
 0xd8a   :  { %v3964_v38 = vadd.f32 %v8557_v23, %v3956_v6  ;;  %v3949_v33 = vmul.f32 %v10727_v7, %v3933_v16  ;;  %v10170_v16 = vpack.c.bf16 %v4224_v15, %v4222_v12  ;;  %v10183_v12 = vpack.c.bf16 %v8600_v11, %v8599_v32  ;;  %v8601_v15 = vld [vmem:[%s13281_s27 + $0xf0] sm:$0xff] }
 0xd8c   :  { %9065 = vmatprep.mubr.msk.f32.mxu0 %vm476_vm0, %v3964_v38  ;;  %v3957_v56 = vmul.f32 %v8556_v3, %v3949_v33  ;;  %10171 = vmatprep.subr.bf16.mxu1 %v10170_v16  ;;  %v8602_v16 = vld [vmem:[%s13281_s27 + $0xf8] sm:$0xff] }
 0xd8d   :  { %9066 = vmatmul.mubr.msk.f32.vlgmr.msra.gmra.mrb[34].mxu0 %vm476_vm0, %v3964_v38  ;;  %10173 = vmatpush1.bf16.xpose.msra.mxu1 %v10172_v49  ;;  %v10187_v43 = vpack.c.bf16 %v8602_v16, %v8601_v15  ;;  %v8604_v49 = vld [vmem:[%s13281_s27 + $0x108] sm:$0xff] }
 0xd8e   :  { %v3965_v61 = vadd.f32 %v8557_v23, %v3957_v56  ;;  %10174 = vmatprep.subr.bf16.mxu1 %v10896_v0  ;;  %v8595_v56 = vld [vmem:[%s13281_s27 + $0xc0] sm:$0xff]  ;;  %v10191_v18 = vpack.c.bf16 %v8604_v49, %v8603_v9 }
 0xd90   :  { %9067 = vmatprep.mubr.msk.f32.mxu0 %vm476_vm0, %v3965_v61 }
 0xd91   :  { %9068 = vmatmul.mubr.msk.f32.gmra.mrb[36].mxu0 %vm476_vm0, %v3965_v61  ;;  %v8596_v61 = vld [vmem:[%s13281_s27 + $0xc8] sm:$0xff] }
 0xd92   :  { %9534 = vmatprep.mubr.msk.f32.mxu0 %vm10900_vm2, %v10897_v1  ;;  %v10175_v8 = vpack.c.bf16 %v8596_v61, %v8595_v56  ;;  %v8594_v61 = vld [vmem:[%s13233_s21] ss:$0 sm:$0xff] }
 0xe60   :  { %v4178_v20 = vpop.f32.mrb[34].mxu0 }
 0xe61   :  { %v4179_v21 = vadd.f32 %v4178_v20, %v4003_v14  ;;  %v4180_v22 = vpop.f32.mrb[35].mxu0 }
 0xe62   :  { %v4181_v26 = vadd.f32 %v4180_v22, %v4007_v19  ;;  %v8608_v22 = vld [vmem:[%s13281_s27 + $0x128] sm:$0xff] }
 0xe63   :  { %v4193_v28 = vmul.f32 0.70710677, %v4179_v21  ;;  %v4189_v47 = vmul.f32 0.5, %v4179_v21  ;;  %v8607_v21 = vld [vmem:[%s13281_s27 + $0x120] sm:$0xff] }
 0xe64   :  { %v4194_v17 = vmul.f32 0.70710677, %v4181_v26  ;;  %v4184_v29 = vpop.f32.mrb[36].mxu0  ;;  %v4190_v42 = vmul.f32 0.5, %v4181_v26  ;;  %v10199_v26 = vpack.c.bf16 %v8608_v22, %v8607_v21 }
 0xe65   :  { %10728 = verf.f32 %v4193_v28  ;;  %v4185_v31 = vadd.f32 %v4184_v29, %v4003_v14  ;;  %v4186_v34 = vpop.f32.mrb[37].mxu0  ;;  %v8605_v14 = vld [vmem:[%s13281_s27 + $0x110] sm:$0xff] }
 0xe66   :  { %10730 = verf.f32 %v4194_v17  ;;  %v4187_v35 = vadd.f32 %v4186_v34, %v4007_v19  ;;  %v8606_v19 = vld [vmem:[%s13281_s27 + $0x118] sm:$0xff]  ;;  %v8609_v28 = vld [vmem:[%s13281_s27 + $0x130] sm:$0xff]  ;;  %v8612_v34 = vld [vmem:[%s13281_s27 + $0x148] sm:$0xff] }
 0xe67   :  { %v4195_v36 = vmul.f32 0.70710677, %v4185_v31  ;;  %v4191_v59 = vmul.f32 0.5, %v4185_v31  ;;  %v10195_v20 = vpack.c.bf16 %v8606_v19, %v8605_v14  ;;  %v8610_v17 = vld [vmem:[%s13281_s27 + $0x138] sm:$0xff]  ;;  %v8611_v31 = vld [vmem:[%s13281_s27 + $0x140] sm:$0xff] }
 0xe68   :  { %v4196_v24 = vmul.f32 0.70710677, %v4187_v35  ;;  %v4192_v46 = vmul.f32 0.5, %v4187_v35  ;;  %v10203_v29 = vpack.c.bf16 %v8610_v17, %v8609_v28  ;;  %v10207_v35 = vpack.c.bf16 %v8612_v34, %v8611_v31 }
 0xe69   :  { %10732 = verf.f32 %v4195_v36  ;;  %v8613_v36 = vld [vmem:[%s13281_s27 + $0x150] sm:$0xff] }
 0xe6a   :  { %10734 = verf.f32 %v4196_v24  ;;  %v8614_v24 = vld [vmem:[%s13281_s27 + $0x158] sm:$0xff] }
 0xe6f   :  { %v10729_v37 = vpop.eup %10728 }
 0xe70   :  { %v10731_v39 = vpop.eup %10730  ;;  %v4201_v41 = vadd.f32 1.0, %v10729_v37  ;;  %v10211_v37 = vpack.c.bf16 %v8614_v24, %v8613_v36 }
 0xe71   :  { %v4202_v44 = vadd.f32 1.0, %v10731_v39 }
 0xe72   :  { %v4205_v50 = vmul.f32 %v4201_v41, %v4189_v47 }
 0xe73   :  { %v10733_v45 = vpop.eup %10732  ;;  %v4206_v58 = vmul.f32 %v4202_v44, %v4190_v42 }
 0xe74   :  { %v10735_v48 = vpop.eup %10734  ;;  %v4203_v52 = vadd.f32 1.0, %v10733_v45 }
 0xe75   :  { %v4204_v57 = vadd.f32 1.0, %v10735_v48  ;;  %4296 = vmatprep.mubr.f32.mxu1 %v4206_v58 }
 0xe76   :  { %4297 = vmatmul.mubr.f32.vlgmr.msra.gmra.mrb[52].mxu1 %v4205_v50  ;;  %v4207_v55 = vmul.f32 %v4203_v52, %v4191_v59 }
 0xe77   :  { %v4208_v60 = vmul.f32 %v4204_v57, %v4192_v46  ;;  %10177 = vmatpush1.bf16.xpose.msk.msra.mxu1 %vm11074_vm1, %v10175_v8  ;;  %v8615_v46 = vld [vmem:[%s13281_s27 + $0x160] sm:$0xff]  ;;  %v8616_v57 = vld [vmem:[%s13281_s27 + $0x168] sm:$0xff] }
 0xe78   :  { %10178 = vmatprep.subr.bf16.mxu1 %v10896_v0  ;;  %v10215_v59 = vpack.c.bf16 %v8616_v57, %v8615_v46 }
 0xe79   :  { %4301 = vmatprep.mubr.f32.mxu1 %v4208_v60  ;;  %v8617_v60 = vld [vmem:[%s13281_s27 + $0x170] sm:$0xff] }
 0xe7a   :  { %4302 = vmatmul.mubr.f32.gmra.mrb[54].mxu1 %v4207_v55  ;;  %v8618_v55 = vld [vmem:[%s13281_s27 + $0x178] sm:$0xff] }
 0xe7b   :  { %4531 = vmatprep.mubr.f32.mxu1 %v10897_v1 }
 0xe7f   :  { %10181 = vmatpush1.bf16.xpose.msk.msra.mxu1 %vm11074_vm1, %v10179_v10 }
 0xe80   :  { %10182 = vmatprep.subr.bf16.mxu1 %v10896_v0 }
 0xe87   :  { %10185 = vmatpush1.bf16.xpose.msk.msra.mxu1 %vm11074_vm1, %v10183_v12  ;;  %v8619_v12 = vld [vmem:[%s13287_s7 + $0x2] sm:$0x3] }
 0xe88   :  { %10186 = vmatprep.subr.bf16.mxu1 %v10896_v0  ;;  %v4382_v15 = vrot.slane %v8619_v12, %v11282_v27  ;;  %v4386_v49 = vrot.slane %v8619_v12, %v11309_v40 }
 0xe8f   :  { %10189 = vmatpush1.bf16.xpose.msk.msra.mxu1 %vm11074_vm1, %v10187_v43 }
 0xe90   :  { %10190 = vmatprep.subr.bf16.mxu1 %v10896_v0 }
 0xe97   :  { %10193 = vmatpush1.bf16.xpose.msk.msra.mxu1 %vm11074_vm1, %v10191_v18 }
 0xe98   :  { %10194 = vmatprep.subr.bf16.mxu1 %v10896_v0 }
 0xe9f   :  { %10197 = vmatpush1.bf16.xpose.msk.msra.mxu1 %vm11074_vm1, %v10195_v20 }
 0xea0   :  { %10198 = vmatprep.subr.bf16.mxu1 %v10896_v0 }
 0xea7   :  { %10201 = vmatpush1.bf16.xpose.msk.msra.mxu1 %vm11074_vm1, %v10199_v26 }
 0xea8   :  { %10202 = vmatprep.subr.bf16.mxu1 %v10896_v0 }
 0xeaf   :  { %10205 = vmatpush1.bf16.xpose.msk.msra.mxu1 %vm11074_vm1, %v10203_v29 }
 0xeb0   :  { %10206 = vmatprep.subr.bf16.mxu1 %v10896_v0 }
 0xeb7   :  { %10209 = vmatpush1.bf16.xpose.msk.msra.mxu1 %vm11074_vm1, %v10207_v35 }
 0xeb8   :  { %10210 = vmatprep.subr.bf16.mxu1 %v10896_v0 }
 0xebf   :  { %10213 = vmatpush1.bf16.xpose.msk.msra.mxu1 %vm11074_vm1, %v10211_v37 }
 0xec0   :  { %10214 = vmatprep.subr.bf16.mxu1 %v10896_v0 }
 0xec7   :  { %10217 = vmatpush1.bf16.xpose.msk.msra.mxu1 %vm11074_vm1, %v10215_v59 }
 0xec8   :  { %10218 = vmatprep.subr.bf16.mxu1 %v10896_v0 }
 0xf49   :  { %v4298_v2 = vpop.f32.mrb[52].mxu1 }
 0xf4a   :  { %v4299_v3 = vadd.f32 %v8592_v63, %v4298_v2  ;;  %v4300_v5 = vpop.f32.mrb[53].mxu1 }
 0xf4c   :  { %v4309_v23 = vsel %vm476_vm0, %v4299_v3, 0.0 }
 0xf4d   :  { %4310 = vadd.xlane.f32.xlu1 %v4309_v23  ;;  %v4303_v6 = vpop.f32.mrb[54].mxu1 }
 0xf4e   :  { %v4304_v7 = vadd.f32 %v8592_v63, %v4303_v6  ;;  %v4305_v38 = vpop.f32.mrb[55].mxu1  ;;  %v10219_v63 = vpack.c.bf16 %v8618_v55, %v8617_v60 }
 0xf50   :  { %v4312_v33 = vsel %vm476_vm0, %v4304_v7, 0.0  ;;  %10221 = vmatpush1.bf16.xpose.msk.msra.mxu1 %vm11074_vm1, %v10219_v63 }
 0xf51   :  { %4313 = vadd.xlane.f32.xlu0 %v4312_v33  ;;  %v8593_v33 = vld [vmem:[%s13232_s20] ss:$0 sm:$0xff] }
 0xfda   :  { %v4311_v39 = vpop.xlane.xlu1 %4310 }
 0xfdb   :  { %v4315_v41 = vmul.f32 0.015625, %v4311_v39 }
 0xfdd   :  { %v4317_v42 = vsub.f32 %v4299_v3, %v4315_v41 }
 0xfde   :  { %v4314_v44 = vpop.xlane.xlu0 %4313 }
 0xfdf   :  { %v4316_v47 = vmul.f32 0.015625, %v4314_v44  ;;  %v4319_v45 = vmul.f32 %v4317_v42, %v4317_v42 }
 0xfe1   :  { %v4318_v58 = vsub.f32 %v4304_v7, %v4316_v47  ;;  %v4321_v48 = vsel %vm476_vm0, %v4319_v45, 0.0 }
 0xfe2   :  { %4322 = vadd.xlane.f32.xlu1 %v4321_v48 }
 0xfe3   :  { %v4320_v50 = vmul.f32 %v4318_v58, %v4318_v58 }
 0xfe5   :  { %v4324_v52 = vsel %vm476_vm0, %v4320_v50, 0.0 }
 0xfe6   :  { %4325 = vadd.xlane.f32.xlu0 %v4324_v52 }
0x106f   :  { %v4323_v2 = vpop.xlane.xlu1 %4322 }
0x1070   :  { %v4327_v3 = vmul.f32 0.015625, %v4323_v2 }
0x1072   :  { %v4329_v5 = vadd.f32 1e-05, %v4327_v3 }
0x1073   :  { %v4326_v23 = vpop.xlane.xlu0 %4325 }
0x1074   :  { %10736 = vrsqrt.f32 %v4329_v5  ;;  %v4328_v6 = vmul.f32 0.015625, %v4326_v23 }
0x1076   :  { %v4330_v7 = vadd.f32 1e-05, %v4328_v6 }
0x1078   :  { %10738 = vrsqrt.f32 %v4330_v7 }
0x107e   :  { %v10737_v38 = vpop.eup %10736 }
0x107f   :  { %v4333_v56 = vmul.f32 %v10737_v38, %v4317_v42 }
0x1081   :  { %v4341_v8 = vmul.f32 %v8593_v33, %v4333_v56 }
0x1082   :  { %v10739_v62 = vpop.eup %10738 }
0x1083   :  { %v4349_v30 = vadd.f32 %v8594_v61, %v4341_v8  ;;  %v4334_v10 = vmul.f32 %v10739_v62, %v4318_v58 }
0x1085   :  { %8644 = vmatmul.mubr.msk.f32.vlgmr.msra.gmra.mrb[56].mxu1 %vm476_vm0, %v4349_v30  ;;  %v4342_v32 = vmul.f32 %v8593_v33, %v4334_v10 }
0x1086   :  { %4537 = vmatprep.mubr.f32.mxu1 %v10897_v1 }
0x1087   :  { %v4350_v11 = vadd.f32 %v8594_v61, %v4342_v32 }
0x1089   :  { %8645 = vmatmul.mubr.msk.f32.gmra.mrb[58].mxu1 %vm476_vm0, %v4350_v11 }
0x1158   :  { %v4533_v16 = vpop.f32.mrb[56].mxu1 }
0x1159   :  { %v4534_v43 = vadd.f32 %v4533_v16, %v4382_v15  ;;  %v12352_v9 = vpop.f32.mrb[57].mxu1 }
0x115a   :  { %v12409_v42 = vadd.f32 %v12352_v9, %v4386_v49 }
0x115b   :  { %4545 = vrot.lane.b32.xlu1 %v4534_v43, %s13289_s5  ;;  %4547 = vrot.lane.b32.xlu0 %v4534_v43, %s13290_s9 }
0x115c   :  { %v4539_v18 = vpop.f32.mrb[58].mxu1 }
0x115d   :  { %v4540_v14 = vadd.f32 %v4539_v18, %v4382_v15  ;;  %v4541_v19 = vpop.f32.mrb[59].mxu1 }
0x115e   :  { %v12357_v20 = vadd.f32 %v4541_v19, %v4386_v49 }
0x115f   :  { %4549 = vrot.lane.b32.xlu1 %v4534_v43, %s13288_s8  ;;  %4554 = vrot.lane.b32.xlu0 %v4540_v14, %s13290_s9 }
0x1163   :  { %4578 = vrot.lane.b32.xlu0 %v4534_v43, %s13297_s28  ;;  %4552 = vrot.lane.b32.xlu1 %v4540_v14, %s13289_s5 }
0x1167   :  { %4556 = vrot.lane.b32.xlu1 %v4540_v14, %s13288_s8 }
0x11cd   :  { %v4546_v21 = vpop.permute.xlu1 %4545  ;;  %v4548_v22 = vpop.permute.xlu0 %4547 }
0x11ce   :  { %4654 = vrot.lane.b32.xlu1 %v4546_v21, %s13297_s28  ;;  %4730 = vrot.lane.b32.xlu0 %v4548_v22, %s13297_s28 }
0x11d1   :  { %v4550_v26 = vpop.permute.xlu1 %4549  ;;  %v4555_v28 = vpop.permute.xlu0 %4554 }
0x11d2   :  { %4806 = vrot.lane.b32.xlu1 %v4550_v26, %s13297_s28  ;;  %4882 = vrot.lane.b32.xlu0 %v4540_v14, %s13297_s28 }
0x11d5   :  { %v4553_v17 = vpop.permute.xlu1 %4552  ;;  %v4579_v29 = vpop.permute.xlu0 %4578 }
0x11d6   :  { %4958 = vrot.lane.b32.xlu1 %v4553_v17, %s13297_s28  ;;  %5034 = vrot.lane.b32.xlu0 %v4555_v28, %s13297_s28 }
0x11d7   :  { %9533 = vmatpush3.xpose.msk.msra.mxu0 %vm665_vm3, %v4579_v29 }
0x11d8   :  { %9537 = vmatprep.subr.mxu0 %v10897_v1 }
0x11d9   :  { %v4557_v31 = vpop.permute.xlu1 %4556 }
0x11da   :  { %9535 = vmatmul.mubr.msk.f32.vlgmr.msra.gmra.mrb[38].mxu0 %vm665_vm3, %v4534_v43  ;;  %5110 = vrot.lane.b32.xlu1 %v4557_v31, %s13297_s28 }
0x11db   :  { %9539 = vmatprep.mubr.msk.f32.mxu0 %vm10900_vm2, %v10897_v1 }
0x1240   :  { %v4655_v34 = vpop.permute.xlu1 %4654  ;;  %v4731_v35 = vpop.permute.xlu0 %4730 }
0x1241   :  { %9538 = vmatpush3.xpose.msk.msra.mxu0 %vm665_vm3, %v4655_v34 }
0x1242   :  { %9542 = vmatprep.subr.mxu0 %v10897_v1 }
0x1244   :  { %9540 = vmatmul.mubr.msk.f32.vlgmr.msra.gmra.mrb[40].mxu0 %vm665_vm3, %v4546_v21  ;;  %v4807_v36 = vpop.permute.xlu1 %4806  ;;  %v4883_v24 = vpop.permute.xlu0 %4882 }
0x1245   :  { %9543 = vmatpush3.xpose.msk.msra.mxu0 %vm665_vm3, %v4731_v35  ;;  %9544 = vmatprep.mubr.msk.f32.mxu0 %vm10900_vm2, %v10897_v1 }
0x1246   :  { %9547 = vmatprep.subr.mxu0 %v10897_v1 }
0x1248   :  { %9545 = vmatmul.mubr.msk.f32.vlgmr.msra.gmra.mrb[42].mxu0 %vm665_vm3, %v4548_v22  ;;  %v4959_v37 = vpop.permute.xlu1 %4958  ;;  %v5035_v39 = vpop.permute.xlu0 %5034 }
0x1249   :  { %9548 = vmatpush3.xpose.msk.msra.mxu0 %vm665_vm3, %v4807_v36  ;;  %9549 = vmatprep.mubr.msk.f32.mxu0 %vm10900_vm2, %v10897_v1 }
0x124a   :  { %9552 = vmatprep.subr.mxu0 %v10897_v1 }
0x124c   :  { %9550 = vmatmul.mubr.msk.f32.vlgmr.msra.gmra.mrb[44].mxu0 %vm665_vm3, %v4550_v26  ;;  %v5111_v41 = vpop.permute.xlu1 %5110 }
0x124d   :  { %9553 = vmatpush3.xpose.msk.msra.mxu0 %vm665_vm3, %v4883_v24  ;;  %9554 = vmatprep.mubr.msk.f32.mxu0 %vm10900_vm2, %v10897_v1 }
0x124e   :  { %9557 = vmatprep.subr.mxu0 %v10897_v1 }
0x1250   :  { %9555 = vmatmul.mubr.msk.f32.vlgmr.msra.gmra.mrb[46].mxu0 %vm665_vm3, %v4540_v14 }
0x1251   :  { %9558 = vmatpush3.xpose.msk.msra.mxu0 %vm665_vm3, %v4959_v37  ;;  %9559 = vmatprep.mubr.msk.f32.mxu0 %vm10900_vm2, %v10897_v1 }
0x1252   :  { %9562 = vmatprep.subr.mxu0 %v10897_v1 }
0x1254   :  { %9560 = vmatmul.mubr.msk.f32.vlgmr.msra.gmra.mrb[48].mxu0 %vm665_vm3, %v4553_v17 }
0x1255   :  { %9563 = vmatpush3.xpose.msk.msra.mxu0 %vm665_vm3, %v5035_v39  ;;  %9564 = vmatprep.mubr.msk.f32.mxu0 %vm10900_vm2, %v10897_v1 }
0x1256   :  { %9567 = vmatprep.subr.mxu0 %v10897_v1 }
0x1258   :  { %9565 = vmatmul.mubr.msk.f32.vlgmr.msra.gmra.mrb[50].mxu0 %vm665_vm3, %v4555_v28 }
0x1259   :  { %9568 = vmatpush3.xpose.msk.msra.mxu0 %vm665_vm3, %v5111_v41  ;;  %9569 = vmatprep.mubr.msk.f32.mxu0 %vm10900_vm2, %v10897_v1 }
0x125a   :  { %9572 = vmatprep.subr.mxu0 %v10897_v1 }
0x125c   :  { %9570 = vmatmul.mubr.msk.f32.vlgmr.msra.gmra.mrb[52].mxu0 %vm665_vm3, %v4557_v31 }
0x125d   :  { %9573 = vmatpush3.msra.mxu0 %v12409_v42  ;;  %9574 = vmatprep.mubr.msk.f32.mxu0 %vm10900_vm2, %v10897_v1 }
0x125e   :  { %9577 = vmatprep.subr.mxu0 %v10897_v1 }
0x12ad   :  { %v4650_v44 = vpop.f32.mrb[38].mxu0 }
0x12ae   :  { %v5186_v47 = vmul.f32 0.25, %v4650_v44  ;;  %v9536_v45 = vpop.f32.mrb[39].mxu0 }
0x12b0   :  { %v5194_v58 = vsel %vm1280_vm4, %v5186_v47, -inf }
0x12b1   :  { %5195 = vmax.xlane.f32.xlu0 %v5194_v58 }
0x1317   :  { %v4726_v48 = vpop.f32.mrb[40].mxu0 }
0x1318   :  { %v5187_v50 = vmul.f32 0.25, %v4726_v48  ;;  %v9541_v52 = vpop.f32.mrb[41].mxu0 }
0x131a   :  { %v5197_v46 = vsel %vm1280_vm4, %v5187_v50, -inf }
0x131b   :  { %5198 = vmax.xlane.f32.xlu1 %v5197_v46  ;;  %v4802_v57 = vpop.f32.mrb[42].mxu0 }
0x131c   :  { %v5188_v59 = vmul.f32 0.25, %v4802_v57  ;;  %v9546_v60 = vpop.f32.mrb[43].mxu0 }
0x131e   :  { %v5200_v55 = vsel %vm1280_vm4, %v5188_v59, -inf }
0x131f   :  { %5201 = vmax.xlane.f32.xlu0 %v5200_v55  ;;  %v4878_v63 = vpop.f32.mrb[44].mxu0 }
0x1320   :  { %v5189_v2 = vmul.f32 0.25, %v4878_v63  ;;  %v9551_v3 = vpop.f32.mrb[45].mxu0 }
0x1322   :  { %v5203_v5 = vsel %vm1280_vm4, %v5189_v2, -inf }
0x1323   :  { %5204 = vmax.xlane.f32.xlu0 %v5203_v5  ;;  %v4954_v23 = vpop.f32.mrb[46].mxu0 }
0x1324   :  { %v5190_v6 = vmul.f32 0.25, %v4954_v23  ;;  %v9556_v7 = vpop.f32.mrb[47].mxu0 }
0x1326   :  { %v5206_v38 = vsel %vm1280_vm4, %v5190_v6, -inf }
0x1327   :  { %5207 = vmax.xlane.f32.xlu1 %v5206_v38  ;;  %v5030_v33 = vpop.f32.mrb[48].mxu0 }
0x1328   :  { %v5191_v56 = vmul.f32 0.25, %v5030_v33  ;;  %v9561_v61 = vpop.f32.mrb[49].mxu0 }
0x132a   :  { %v5209_v8 = vsel %vm1280_vm4, %v5191_v56, -inf }
0x132b   :  { %5210 = vmax.xlane.f32.xlu0 %v5209_v8  ;;  %v5106_v62 = vpop.f32.mrb[50].mxu0 }
0x132c   :  { %v5192_v30 = vmul.f32 0.25, %v5106_v62  ;;  %v9566_v10 = vpop.f32.mrb[51].mxu0 }
0x132e   :  { %v5212_v32 = vsel %vm1280_vm4, %v5192_v30, -inf }
0x132f   :  { %5213 = vmax.xlane.f32.xlu1 %v5212_v32  ;;  %v5182_v11 = vpop.f32.mrb[52].mxu0 }
0x1330   :  { %v5193_v12 = vmul.f32 0.25, %v5182_v11  ;;  %v9571_v15 = vpop.f32.mrb[53].mxu0 }
0x1332   :  { %v5215_v16 = vsel %vm1280_vm4, %v5193_v12, -inf }
0x1333   :  { %5216 = vmax.xlane.f32.xlu0 %v5215_v16 }
0x133e   :  { %v5196_v43 = vpop.xlane.xlu0 %5195 }
0x133f   :  { %v5218_v9 = vsub.f32 %v5186_v47, %v5196_v43 }
0x1340   :  { %4559 = vrot.lane.b32.xlu1 %v12409_v42, %s13289_s5 }
0x1341   :  { %v5226_v49 = vmul.f32 1.442695, %v5218_v9 }
0x1343   :  { %10740 = vpow2.f32 %v5226_v49 }
0x134d   :  { %v10741_v18 = vpop.eup %10740 }
0x134e   :  { %v5242_v14 = vsel %vm1280_vm4, %v10741_v18, 0.0 }
0x1364   :  { %5243 = vadd.xlane.f32.xlu1 %v5242_v14 }
0x1375   :  { %4565 = vrot.lane.b32.xlu1 %v12409_v42, %s13288_s8 }
0x13a8   :  { %v5199_v19 = vpop.xlane.xlu1 %5198 }
0x13a9   :  { %v5219_v21 = vsub.f32 %v5187_v50, %v5199_v19 }
0x13ab   :  { %v5228_v22 = vmul.f32 1.442695, %v5219_v21 }
0x13ac   :  { %v5202_v26 = vpop.xlane.xlu0 %5201 }
0x13ad   :  { %10742 = vpow2.f32 %v5228_v22  ;;  %v5220_v28 = vsub.f32 %v5188_v59, %v5202_v26 }
0x13af   :  { %v5230_v17 = vmul.f32 1.442695, %v5220_v28 }
0x13b0   :  { %v5205_v36 = vpop.xlane.xlu0 %5204 }
0x13b1   :  { %10744 = vpow2.f32 %v5230_v17  ;;  %v5221_v24 = vsub.f32 %v5189_v2, %v5205_v36 }
0x13b3   :  { %v5232_v44 = vmul.f32 1.442695, %v5221_v24 }
0x13b4   :  { %v5208_v37 = vpop.xlane.xlu1 %5207 }
0x13b5   :  { %v5222_v41 = vsub.f32 %v5190_v6, %v5208_v37  ;;  %10746 = vpow2.f32 %v5232_v44  ;;  %v8672_v44 = vld [vmem:[%s13291_s3 + $0x50] sm:$0xff] }
0x13b7   :  { %v10743_v29 = vpop.eup %10742  ;;  %v5234_v48 = vmul.f32 1.442695, %v5222_v41  ;;  %v8671_v41 = vld [vmem:[%s13291_s3 + $0x48] sm:$0xff] }
0x13b8   :  { %v5245_v31 = vsel %vm1280_vm4, %v10743_v29, 0.0  ;;  %v5211_v39 = vpop.xlane.xlu0 %5210 }
0x13b9   :  { %5246 = vadd.xlane.f32.xlu0 %v5245_v31  ;;  %v5223_v47 = vsub.f32 %v5191_v56, %v5211_v39  ;;  %10748 = vpow2.f32 %v5234_v48  ;;  %v8670_v39 = vld [vmem:[%s13291_s3 + $0x40] sm:$0xff] }
0x13bb   :  { %v12430_v34 = vpop.eup %10744  ;;  %v5236_v52 = vmul.f32 1.442695, %v5223_v47  ;;  %v10222_v47 = vpack.c.bf16 %v8671_v41, %v8670_v39 }
0x13bc   :  { %v5248_v35 = vsel %vm1280_vm4, %v12430_v34, 0.0  ;;  %v5214_v45 = vpop.xlane.xlu1 %5213 }
0x13bd   :  { %5249 = vadd.xlane.f32.xlu1 %v5248_v35  ;;  %v5224_v50 = vsub.f32 %v5192_v30, %v5214_v45  ;;  %10750 = vpow2.f32 %v5236_v52  ;;  %v8673_v45 = vld [vmem:[%s13291_s3 + $0x58] sm:$0xff] }
0x13bf   :  { %v5238_v57 = vmul.f32 1.442695, %v5224_v50 }
0x13c0   :  { %v5217_v58 = vpop.xlane.xlu0 %5216  ;;  %v4560_v55 = vpop.permute.xlu1 %4559 }
0x13c1   :  { %v5225_v46 = vsub.f32 %v5193_v12, %v5217_v58  ;;  %10752 = vpow2.f32 %v5238_v57  ;;  %v10228_v58 = vpack.c.bf16 %v8673_v45, %v8672_v44  ;;  %v8674_v57 = vld [vmem:[%s13291_s3 + $0x60] sm:$0xff] }
0x13c2   :  { %v8713_v44 = vld [vmem:[%s13222_s10 + $0xa0] sm:$0xff] }
0x13c3   :  { %v5240_v59 = vmul.f32 1.442695, %v5225_v46 }
0x13c5   :  { %10754 = vpow2.f32 %v5240_v59  ;;  %v8675_v59 = vld [vmem:[%s13291_s3 + $0x68] sm:$0xff] }
0x13ce   :  { %4569 = vrot.lane.b32.xlu1 %v12357_v20, %s13289_s5 }
0x13cf   :  { %4562 = vrot.lane.b32.xlu0 %v12409_v42, %s13290_s9  ;;  %v10747_v42 = vpop.eup %10746 }
0x13d0   :  { %v10749_v60 = vpop.eup %10748  ;;  %v5251_v63 = vsel %vm1280_vm4, %v10747_v42, 0.0 }
0x13d1   :  { %v12439_v2 = vpop.eup %10750  ;;  %v5254_v23 = vsel %vm1280_vm4, %v10749_v60, 0.0 }
0x13d2   :  { %v12441_v3 = vpop.eup %10752  ;;  %v5257_v6 = vsel %vm1280_vm4, %v12439_v2, 0.0 }
0x13d3   :  { %v12446_v7 = vpop.eup %10754  ;;  %v5260_v38 = vsel %vm1280_vm4, %v12441_v3, 0.0 }
0x13d4   :  { %v5263_v33 = vsel %vm1280_vm4, %v12446_v7, 0.0 }
0x13ee   :  { %5252 = vadd.xlane.f32.xlu0 %v5251_v63 }
0x13f1   :  { %v5244_v5 = vpop.xlane.xlu1 %5243 }
0x13f2   :  { %10756 = vrcp.f32 %v5244_v5  ;;  %5255 = vadd.xlane.f32.xlu1 %v5254_v23  ;;  %5258 = vadd.xlane.f32.xlu0 %v5257_v6  ;;  %v8709_v23 = vld [vmem:[%s13222_s10 + $0x80] sm:$0xff]  ;;  %v8710_v6 = vld [vmem:[%s13222_s10 + $0x88] sm:$0xff] }
0x13f5   :  { %v4566_v8 = vpop.permute.xlu1 %4565 }
0x13f6   :  { %5261 = vadd.xlane.f32.xlu1 %v5260_v38  ;;  %5264 = vadd.xlane.f32.xlu0 %v5263_v33  ;;  %v10270_v38 = vpack.c.bf16 %v8710_v6, %v8709_v23  ;;  %v8679_v23 = vld [vmem:[%s13300_s11 + $0x1] ss:$0 sm:$0xff] }
0x13fc   :  { %v10757_v56 = vpop.eup %10756 }
0x13fd   :  { %v5267_v61 = vmul.f32 %v10757_v56, %v10741_v18 }
0x13ff   :  { %9575 = vmatmul.mubr.msk.f32.vlgmr.msra.gmra.mrb[54].mxu0 %vm1280_vm4, %v5267_v61 }
0x1400   :  { %9578 = vmatpush3.msra.mxu0 %v4560_v55  ;;  %9579 = vmatprep.mubr.msk.f32.mxu0 %vm10900_vm2, %v10897_v1  ;;  %v8677_v55 = vld [vmem:[%s13291_s3 + $0x78] sm:$0xff] }
0x1401   :  { %9582 = vmatprep.subr.mxu0 %v10897_v1 }
0x1407   :  { %4575 = vrot.lane.b32.xlu1 %v12357_v20, %s13288_s8 }
0x140c   :  { %4572 = vrot.lane.b32.xlu0 %v12357_v20, %s13290_s9 }
0x1446   :  { %v5247_v62 = vpop.xlane.xlu0 %5246 }
0x1447   :  { %10758 = vrcp.f32 %v5247_v62 }
0x144a   :  { %v5250_v30 = vpop.xlane.xlu1 %5249  ;;  %v4563_v11 = vpop.permute.xlu0 %4562 }
0x144b   :  { %10760 = vrcp.f32 %v5250_v30 }
0x144e   :  { %v4570_v16 = vpop.permute.xlu1 %4569 }
0x1451   :  { %v10759_v10 = vpop.eup %10758 }
0x1452   :  { %v5269_v32 = vmul.f32 %v10759_v10, %v10743_v29  ;;  %v8690_v10 = vld [vmem:[%s13293_s26 + $0x40] sm:$0xff] }
0x1454   :  { %9580 = vmatmul.mubr.msk.f32.vlgmr.msra.gmra.mrb[56].mxu0 %vm1280_vm4, %v5269_v32  ;;  %v8691_v32 = vld [vmem:[%s13293_s26 + $0x48] sm:$0xff] }
0x1455   :  { %v10761_v12 = vpop.eup %10760  ;;  %9583 = vmatpush3.msra.mxu0 %v4563_v11  ;;  %9584 = vmatprep.mubr.msk.f32.mxu0 %vm10900_vm2, %v10897_v1  ;;  %v8692_v11 = vld [vmem:[%s13293_s26 + $0x50] sm:$0xff] }
0x1456   :  { %v5271_v15 = vmul.f32 %v10761_v12, %v12430_v34  ;;  %9587 = vmatprep.subr.mxu0 %v10897_v1  ;;  %v10246_v12 = vpack.c.bf16 %v8691_v32, %v8690_v10 }
0x1458   :  { %9585 = vmatmul.mubr.msk.f32.vlgmr.msra.gmra.mrb[58].mxu0 %vm1280_vm4, %v5271_v15  ;;  %v8693_v15 = vld [vmem:[%s13293_s26 + $0x58] sm:$0xff]  ;;  %10248 = vmatprep.subr.msk.bf16.mxu1 %vm11074_vm1, %v10246_v12 }
0x1459   :  { %9588 = vmatpush3.msra.mxu0 %v4566_v8  ;;  %9589 = vmatprep.mubr.msk.f32.mxu0 %vm10900_vm2, %v10897_v1 }
0x145a   :  { %9592 = vmatprep.subr.mxu0 %v10897_v1  ;;  %10251 = vmatpush3.bf16.xpose.msk.msra.mxu1 %vm11074_vm1, %v10246_v12 }
0x147b   :  { %v5253_v43 = vpop.xlane.xlu0 %5252 }
0x147c   :  { %10762 = vrcp.f32 %v5253_v43  ;;  %v8694_v43 = vld [vmem:[%s13293_s26 + $0x60] sm:$0xff] }
0x147f   :  { %v5256_v9 = vpop.xlane.xlu1 %5255  ;;  %v5259_v49 = vpop.xlane.xlu0 %5258 }
0x1480   :  { %10764 = vrcp.f32 %v5256_v9  ;;  %v8695_v9 = vld [vmem:[%s13293_s26 + $0x68] sm:$0xff] }
0x1481   :  { %10766 = vrcp.f32 %v5259_v49  ;;  %v10258_v49 = vpack.c.bf16 %v8695_v9, %v8694_v43 }
0x1483   :  { %v5262_v18 = vpop.xlane.xlu1 %5261  ;;  %v5265_v21 = vpop.xlane.xlu0 %5264 }
0x1484   :  { %10768 = vrcp.f32 %v5262_v18  ;;  %v8696_v18 = vld [vmem:[%s13293_s26 + $0x70] sm:$0xff] }
0x1485   :  { %10770 = vrcp.f32 %v5265_v21 }
0x1486   :  { %v10763_v14 = vpop.eup %10762 }
0x1487   :  { %v5273_v19 = vmul.f32 %v10763_v14, %v10747_v42  ;;  %v4573_v31 = vpop.permute.xlu0 %4572  ;;  %v4576_v35 = vpop.permute.xlu1 %4575  ;;  %v10234_v42 = vpack.c.bf16 %v8675_v59, %v8674_v57  ;;  %v8697_v14 = vld [vmem:[%s13293_s26 + $0x78] sm:$0xff]  ;;  %v8719_v57 = vld [vmem:[%s13222_s10 + $0xd0] sm:$0xff] }
0x1488   :  { %v8720_v59 = vld [vmem:[%s13222_s10 + $0xd8] sm:$0xff] }
0x1489   :  { %9590 = vmatmul.mubr.msk.f32.vlgmr.msra.gmra.mrb[60].mxu0 %vm1280_vm4, %v5273_v19  ;;  %v10264_v19 = vpack.c.bf16 %v8697_v14, %v8696_v18 }
0x148a   :  { %v10765_v22 = vpop.eup %10764  ;;  %9593 = vmatpush3.msra.mxu0 %v12357_v20  ;;  %9594 = vmatprep.mubr.msk.f32.mxu0 %vm10900_vm2, %v10897_v1 }
0x148b   :  { %v5275_v26 = vmul.f32 %v10765_v22, %v10749_v60  ;;  %9597 = vmatprep.subr.mxu0 %v10897_v1  ;;  %v10767_v28 = vpop.eup %10766  ;;  %v8676_v60 = vld [vmem:[%s13291_s3 + $0x70] sm:$0xff] }
0x148c   :  { %v5277_v17 = vmul.f32 %v10767_v28, %v12439_v2  ;;  %v10240_v63 = vpack.c.bf16 %v8677_v55, %v8676_v60  ;;  %v8721_v60 = vld [vmem:[%s13222_s10 + $0xe0] sm:$0xff]  ;;  %v8722_v55 = vld [vmem:[%s13222_s10 + $0xe8] sm:$0xff] }
0x148d   :  { %9595 = vmatmul.mubr.msk.f32.vlgmr.msra.gmra.mrb[62].mxu0 %vm1280_vm4, %v5275_v26 }
0x148e   :  { %9598 = vmatpush3.msra.mxu0 %v4570_v16  ;;  %9599 = vmatprep.mubr.msk.f32.mxu0 %vm10900_vm2, %v10897_v1  ;;  %v10769_v29 = vpop.eup %10768  ;;  %v10252_v16 = vpack.c.bf16 %v8693_v15, %v8692_v11 }
0x148f   :  { %9602 = vmatprep.subr.mxu0 %v10897_v1  ;;  %v5279_v20 = vmul.f32 %v10769_v29, %v12441_v3  ;;  %v10771_v34 = vpop.eup %10770 }
0x1490   :  { %v5281_v36 = vmul.f32 %v10771_v34, %v12446_v7  ;;  %10254 = vmatprep.subr.msk.bf16.mxu1 %vm11074_vm1, %v10252_v16  ;;  %v8711_v34 = vld [vmem:[%s13222_s10 + $0x90] sm:$0xff] }
0x1491   :  { %9600 = vmatmul.mubr.msk.f32.vlgmr.msra.gmra.mrb[64].mxu0 %vm1280_vm4, %v5277_v17  ;;  %10257 = vmatpush3.bf16.xpose.msk.msra.mxu1 %vm11074_vm1, %v10252_v16 }
0x1492   :  { %9603 = vmatpush3.msra.mxu0 %v4573_v31  ;;  %9604 = vmatprep.mubr.msk.f32.mxu0 %vm10900_vm2, %v10897_v1 }
0x1493   :  { %9607 = vmatprep.subr.mxu0 %v10897_v1  ;;  %10260 = vmatprep.subr.msk.bf16.mxu1 %vm11074_vm1, %v10258_v49 }
0x1495   :  { %9605 = vmatmul.mubr.msk.f32.vlgmr.msra.gmra.mrb[66].mxu0 %vm1280_vm4, %v5279_v20 }
0x1496   :  { %9608 = vmatpush3.msra.mxu0 %v4576_v35  ;;  %9609 = vmatprep.mubr.msk.f32.mxu0 %vm10900_vm2, %v10897_v1  ;;  %v8712_v35 = vld [vmem:[%s13222_s10 + $0x98] sm:$0xff] }
0x1497   :  { %10224 = vmatprep.subr.msk.bf16.mxu0 %vm11074_vm1, %v10222_v47  ;;  %v10276_v39 = vpack.c.bf16 %v8712_v35, %v8711_v34 }
0x1499   :  { %9610 = vmatmul.mubr.msk.f32.vlgmr.msra.gmra.mrb[68].mxu0 %vm1280_vm4, %v5281_v36  ;;  %10263 = vmatpush3.bf16.xpose.msk.msra.mxu1 %vm11074_vm1, %v10258_v49 }
0x149a   :  { %10266 = vmatprep.subr.msk.bf16.mxu1 %vm11074_vm1, %v10264_v19 }
0x149d   :  { %10227 = vmatpush3.bf16.xpose.msk.msra.mxu0 %vm11074_vm1, %v10222_v47  ;;  %v8714_v47 = vld [vmem:[%s13222_s10 + $0xa8] sm:$0xff] }
0x149e   :  { %10230 = vmatprep.subr.msk.bf16.mxu0 %vm11074_vm1, %v10228_v58  ;;  %v10282_v45 = vpack.c.bf16 %v8714_v47, %v8713_v44 }
0x14a1   :  { %10269 = vmatpush3.bf16.xpose.msk.msra.mxu1 %vm11074_vm1, %v10264_v19 }
0x14a2   :  { %10318 = vmatprep.subr.bf16.mxu1 %v10896_v0 }
0x14a5   :  { %10233 = vmatpush3.bf16.xpose.msk.msra.mxu0 %vm11074_vm1, %v10228_v58  ;;  %v8716_v58 = vld [vmem:[%s13222_s10 + $0xb8] sm:$0xff] }
0x14a6   :  { %10236 = vmatprep.subr.msk.bf16.mxu0 %vm11074_vm1, %v10234_v42 }
0x14ad   :  { %10239 = vmatpush3.bf16.xpose.msk.msra.mxu0 %vm11074_vm1, %v10234_v42  ;;  %v10300_v42 = vpack.c.bf16 %v8720_v59, %v8719_v57 }
0x14ae   :  { %10242 = vmatprep.subr.msk.bf16.mxu0 %vm11074_vm1, %v10240_v63 }
0x14b5   :  { %10245 = vmatpush3.bf16.xpose.msk.msra.mxu0 %vm11074_vm1, %v10240_v63  ;;  %v10306_v63 = vpack.c.bf16 %v8722_v55, %v8721_v60 }
0x14b6   :  { %10272 = vmatprep.subr.msk.bf16.mxu0 %vm11074_vm1, %v10270_v38 }
0x14d2   :  { %v12489_v24 = vpop.f32.mrb[54].mxu0 }
0x14d3   :  { %v9576_v37 = vpop.f32.mrb[55].mxu0 }
0x1527   :  { %v5424_v48 = vpop.f32.mrb[56].mxu0 }
0x1528   :  { %5867 = vrot.lane.b32.xlu0 %v5424_v48, %s13292_s30  ;;  %v9581_v50 = vpop.f32.mrb[57].mxu0 }
0x1529   :  { %v8717_v50 = vld [vmem:[%s13222_s10 + $0xc0] sm:$0xff] }
0x152b   :  { %v5497_v52 = vpop.f32.mrb[58].mxu0 }
0x152c   :  { %5871 = vrot.lane.b32.xlu1 %v5497_v52, %s13298_s6  ;;  %v9586_v46 = vpop.f32.mrb[59].mxu0  ;;  %v8718_v52 = vld [vmem:[%s13222_s10 + $0xc8] sm:$0xff] }
0x152d   :  { %v10294_v46 = vpack.c.bf16 %v8718_v52, %v8717_v50 }
0x155c   :  { %v5570_v2 = vpop.f32.mrb[60].mxu0 }
0x155d   :  { %5875 = vrot.lane.b32.xlu1 %v5570_v2, %s13299_s25  ;;  %v9591_v3 = vpop.f32.mrb[61].mxu0  ;;  %v8723_v2 = vld [vmem:[%s13222_s10 + $0xf0] sm:$0xff] }
0x155e   :  { %v8724_v3 = vld [vmem:[%s13222_s10 + $0xf8] sm:$0xff] }
0x1560   :  { %v5643_v5 = vpop.f32.mrb[62].mxu0 }
0x1561   :  { %v9596_v7 = vpop.f32.mrb[63].mxu0 }
0x1564   :  { %v5716_v33 = vpop.f32.mrb[64].mxu0 }
0x1565   :  { %5882 = vrot.lane.b32.xlu0 %v5716_v33, %s13292_s30  ;;  %v9601_v56 = vpop.f32.mrb[65].mxu0 }
0x1568   :  { %v5789_v61 = vpop.f32.mrb[66].mxu0 }
0x1569   :  { %5886 = vrot.lane.b32.xlu0 %v5789_v61, %s13298_s6  ;;  %v9606_v8 = vpop.f32.mrb[67].mxu0 }
0x156c   :  { %v5862_v62 = vpop.f32.mrb[68].mxu0 }
0x156d   :  { %5890 = vrot.lane.b32.xlu1 %v5862_v62, %s13299_s25  ;;  %v9611_v30 = vpop.f32.mrb[69].mxu0 }
0x159a   :  { %v5868_v21 = vpop.permute.xlu0 %5867 }
0x159b   :  { %v5878_v26 = vsel %vm665_vm3, %v12489_v24, %v5868_v21 }
0x159e   :  { %v5872_v22 = vpop.permute.xlu1 %5871 }
0x159f   :  { %v5879_v28 = vsel %vm1966_vm5, %v5878_v26, %v5872_v22  ;;  %v8698_v26 = vld [vmem:[#allocation5 + $0x1] ss:$0 sm:$0xff] }
0x15cf   :  { %v5876_v17 = vpop.permute.xlu1 %5875 }
0x15d0   :  { %v5880_v29 = vsel %vm1968_vm6, %v5879_v28, %v5876_v17 }
0x15d1   :  { %9628 = vmatprep.mubr.msk.f32.mxu0 %vm476_vm0, %v5880_v29 }
0x15d7   :  { %v5883_v31 = vpop.permute.xlu0 %5882 }
0x15d8   :  { %v5893_v36 = vsel %vm665_vm3, %v5643_v5, %v5883_v31  ;;  %v10312_v5 = vpack.c.bf16 %v8724_v3, %v8723_v2 }
0x15db   :  { %v5887_v20 = vpop.permute.xlu0 %5886 }
0x15dc   :  { %v5894_v24 = vsel %vm1966_vm5, %v5893_v36, %v5887_v20 }
0x15df   :  { %v5891_v37 = vpop.permute.xlu1 %5890 }
0x15e0   :  { %v5895_v41 = vsel %vm1968_vm6, %v5894_v24, %v5891_v37 }
0x15e1   :  { %9629 = vmatmul.mubr.msk.f32.vlgmr.msra.gmra.mrb[70].mxu0 %vm476_vm0, %v5895_v41 }
0x15e2   :  { %10275 = vmatpush3.bf16.xpose.msk.msra.mxu0 %vm11074_vm1, %v10270_v38  ;;  %9682 = vmatprep.mubr.msk.f32.mxu0 %vm476_vm0, %v11683_v53  ;;  %v8715_v53 = vld [vmem:[%s13222_s10 + $0xb0] sm:$0xff] }
0x15e3   :  { %10278 = vmatprep.subr.msk.bf16.mxu0 %vm11074_vm1, %v10276_v39  ;;  %v10288_v48 = vpack.c.bf16 %v8716_v58, %v8715_v53 }
0x15ea   :  { %10281 = vmatpush3.bf16.xpose.msk.msra.mxu0 %vm11074_vm1, %v10276_v39 }
0x15eb   :  { %10284 = vmatprep.subr.msk.bf16.mxu0 %vm11074_vm1, %v10282_v45 }
0x15f2   :  { %10287 = vmatpush3.bf16.xpose.msk.msra.mxu0 %vm11074_vm1, %v10282_v45 }
0x15f3   :  { %10290 = vmatprep.subr.msk.bf16.mxu0 %vm11074_vm1, %v10288_v48 }
0x15fa   :  { %10293 = vmatpush3.bf16.xpose.msk.msra.mxu0 %vm11074_vm1, %v10288_v48 }
0x15fb   :  { %10296 = vmatprep.subr.msk.bf16.mxu0 %vm11074_vm1, %v10294_v46 }
0x1602   :  { %10299 = vmatpush3.bf16.xpose.msk.msra.mxu0 %vm11074_vm1, %v10294_v46 }
0x1603   :  { %10302 = vmatprep.subr.msk.bf16.mxu0 %vm11074_vm1, %v10300_v42 }
0x160a   :  { %10305 = vmatpush3.bf16.xpose.msk.msra.mxu0 %vm11074_vm1, %v10300_v42 }
0x160b   :  { %10308 = vmatprep.subr.msk.bf16.mxu0 %vm11074_vm1, %v10306_v63 }
0x1612   :  { %10311 = vmatpush3.bf16.xpose.msk.msra.mxu0 %vm11074_vm1, %v10306_v63 }
0x1613   :  { %10314 = vmatprep.subr.msk.bf16.mxu0 %vm11074_vm1, %v10312_v5 }
0x161a   :  { %10317 = vmatpush3.bf16.xpose.msk.msra.mxu0 %vm11074_vm1, %v10312_v5 }
0x161b   :  { %10346 = vmatprep.subr.bf16.mxu0 %v10896_v0 }
0x1621   :  { %9683 = vmatmul.mubr.msk.f32.vlgmr.msra.gmra.mrb[72].mxu0 %vm476_vm0, %v11758_v13 }
0x1622   :  { %9685 = vmatprep.mubr.msk.f32.mxu0 %vm476_vm0, %v11504_v51  ;;  %v8726_v51 = vld [vmem:[%s13301_s4 + $0x1] ss:$0 sm:$0xff] }
0x1625   :  { %9686 = vmatmul.mubr.msk.f32.gmra.mrb[74].mxu0 %vm476_vm0, %v11507_v54 }
0x1626   :  { %9741 = vmatprep.mubr.msk.f32.mxu0 %vm10900_vm2, %v10897_v1 }
0x16b4   :  { %v9630_v6 = vpop.f32.mrb[70].mxu0 }
0x16b5   :  { %v6009_v7 = vpop.f32.mrb[71].mxu0  ;;  %v6015_v33 = vadd.f32 %v9630_v6, %v8679_v23 }
0x16b6   :  { %v6010_v38 = vadd.f32 %v8679_v23, %v6009_v7 }
0x16b8   :  { %9647 = vmatprep.mubr.msk.f32.mxu1 %vm476_vm0, %v6010_v38 }
0x16b9   :  { %9648 = vmatmul.mubr.msk.f32.vlgmr.msra.gmra.mrb[60].mxu1 %vm476_vm0, %v6015_v33 }
0x16ba   :  { %9692 = vmatprep.mubr.msk.f32.mxu1 %vm10900_vm2, %v10897_v1 }
0x16f4   :  { %v9684_v54 = vpop.f32.mrb[72].mxu0 }
0x16f5   :  { %v6285_v13 = vadd.f32 %v9684_v54, %v8726_v51  ;;  %v6279_v56 = vpop.f32.mrb[73].mxu0 }
0x16f6   :  { %v6280_v61 = vadd.f32 %v8726_v51, %v6279_v56 }
0x16f8   :  { %v9687_v8 = vpop.f32.mrb[74].mxu0  ;;  %v12688_v62 = vpack.i.bf16 %v6285_v13, %v6280_v61  ;;  %v10319_v30 = vpack.c.bf16 %v6285_v13, %v6280_v61 }
0x16f9   :  { %v12690_v10 = vadd.f32 %v9687_v8, %v8726_v51  ;;  %v6289_v32 = vpop.f32.mrb[75].mxu0 }
0x16fa   :  { %v12692_v11 = vadd.f32 %v8726_v51, %v6289_v32  ;;  %10596 = vrot.lane.b32.xlu1 %v12688_v62, %s13290_s9  ;;  %10591 = vrot.lane.b32.xlu0 %v12688_v62, %s13289_s5 }
0x16fb   :  { %10321 = vmatpush3.bf16.xpose.msk.msra.mxu1 %vm11782_vm7, %v10319_v30 }
0x16fc   :  { %10322 = vmatprep.subr.bf16.mxu1 %v10896_v0  ;;  %v12703_v12 = vpack.i.bf16 %v12690_v10, %v12692_v11  ;;  %v10335_v15 = vpack.c.bf16 %v12690_v10, %v12692_v11 }
0x16fe   :  { %10601 = vrot.lane.b32.xlu1 %v12688_v62, %s13288_s8 }
0x176c   :  { %v12709_v16 = vpop.permute.xlu1 %10596  ;;  %v12711_v43 = vpop.permute.xlu0 %10591 }
0x176d   :  { %v10599_v9 = vunpack.i.h.bf16 %v12709_v16  ;;  %v10598_v49 = vunpack.i.l.bf16 %v12709_v16  ;;  %v10594_v18 = vunpack.i.h.bf16 %v12711_v43  ;;  %v10593_v14 = vunpack.i.l.bf16 %v12711_v43 }
0x176f   :  { %v10323_v31 = vpack.c.bf16 %v10594_v18, %v10593_v14  ;;  %v10327_v34 = vpack.c.bf16 %v10599_v9, %v10598_v49 }
0x1770   :  { %v12717_v19 = vpop.permute.xlu1 %10601 }
0x1771   :  { %v10604_v21 = vunpack.i.h.bf16 %v12717_v19  ;;  %v10603_v22 = vunpack.i.l.bf16 %v12717_v19 }
0x1773   :  { %v10331_v44 = vpack.c.bf16 %v10604_v21, %v10603_v22 }
0x178c   :  { %v9649_v28 = vpop.f32.mrb[60].mxu1 }
0x178d   :  { %v6131_v17 = vpop.f32.mrb[61].mxu1  ;;  %v6137_v20 = vadd.f32 %v9649_v28, %v8698_v26 }
0x178e   :  { %v6132_v29 = vadd.f32 %v8698_v26, %v6131_v17 }
0x1790   :  { %6303 = vrot.lane.b32.xlu1 %v6132_v29, %s13288_s8  ;;  %6299 = vrot.lane.b32.xlu0 %v6132_v29, %s13289_s5 }
0x1791   :  { %9693 = vmatmul.mubr.msk.f32.vlgmr.msra.gmra.mrb[62].mxu1 %vm665_vm3, %v6132_v29 }
0x1792   :  { %10325 = vmatpush3.bf16.xpose.msk.msra.mxu1 %vm11782_vm7, %v10323_v31  ;;  %9699 = vmatprep.mubr.msk.f32.mxu1 %vm10900_vm2, %v10897_v1 }
0x1793   :  { %10326 = vmatprep.subr.bf16.mxu1 %v10896_v0 }
0x1794   :  { %10611 = vrot.lane.b32.xlu1 %v12703_v12, %s13290_s9  ;;  %6301 = vrot.lane.b32.xlu0 %v6132_v29, %s13290_s9 }
0x1798   :  { %6306 = vrot.lane.b32.xlu1 %v6137_v20, %s13289_s5  ;;  %10606 = vrot.lane.b32.xlu0 %v12703_v12, %s13289_s5 }
0x179c   :  { %6310 = vrot.lane.b32.xlu1 %v6137_v20, %s13288_s8  ;;  %10616 = vrot.lane.b32.xlu0 %v12703_v12, %s13288_s8 }
0x17a0   :  { %6308 = vrot.lane.b32.xlu0 %v6137_v20, %s13290_s9  ;;  %s13302_s9 = sld [smem:[#allocation21_spill]] }
0x1802   :  { %v6304_v35 = vpop.permute.xlu1 %6303  ;;  %v6300_v36 = vpop.permute.xlu0 %6299 }
0x1803   :  { %9700 = vmatmul.mubr.msk.f32.vlgmr.msra.gmra.mrb[64].mxu1 %vm665_vm3, %v6300_v36 }
0x1804   :  { %10329 = vmatpush3.bf16.xpose.msk.msra.mxu1 %vm11782_vm7, %v10327_v34  ;;  %9706 = vmatprep.mubr.msk.f32.mxu1 %vm10900_vm2, %v10897_v1 }
0x1805   :  { %10330 = vmatprep.subr.bf16.mxu1 %v10896_v0 }
0x1806   :  { %v12745_v24 = vpop.permute.xlu1 %10611  ;;  %v6302_v37 = vpop.permute.xlu0 %6301 }
0x1807   :  { %v10614_v39 = vunpack.i.h.bf16 %v12745_v24  ;;  %v10613_v41 = vunpack.i.l.bf16 %v12745_v24 }
0x1809   :  { %v10343_v42 = vpack.c.bf16 %v10614_v39, %v10613_v41 }
0x180a   :  { %v12749_v47 = vpop.permute.xlu0 %10606  ;;  %v6307_v46 = vpop.permute.xlu1 %6306 }
0x180b   :  { %v10609_v45 = vunpack.i.h.bf16 %v12749_v47  ;;  %v10608_v53 = vunpack.i.l.bf16 %v12749_v47  ;;  %9707 = vmatmul.mubr.msk.f32.vlgmr.msra.gmra.mrb[66].mxu1 %vm665_vm3, %v6302_v37 }
0x180c   :  { %10333 = vmatpush3.bf16.xpose.msk.msra.mxu1 %vm11782_vm7, %v10331_v44  ;;  %9713 = vmatprep.mubr.msk.f32.mxu1 %vm10900_vm2, %v10897_v1 }
0x180d   :  { %10334 = vmatprep.subr.bf16.mxu1 %v10896_v0  ;;  %v10339_v59 = vpack.c.bf16 %v10609_v45, %v10608_v53 }
0x180e   :  { %v12759_v58 = vpop.permute.xlu0 %10616  ;;  %v6311_v57 = vpop.permute.xlu1 %6310 }
0x180f   :  { %v10619_v48 = vunpack.i.h.bf16 %v12759_v58  ;;  %v10618_v50 = vunpack.i.l.bf16 %v12759_v58 }
0x1811   :  { %v10347_v52 = vpack.c.bf16 %v10619_v48, %v10618_v50 }
0x1812   :  { %v6309_v60 = vpop.permute.xlu0 %6308 }
0x1813   :  { %9714 = vmatmul.mubr.msk.f32.vlgmr.msra.gmra.mrb[68].mxu1 %vm665_vm3, %v6304_v35  ;;  %10349 = vmatpush3.bf16.xpose.msk.msra.mxu0 %vm11782_vm7, %v10347_v52 }
0x1814   :  { %10337 = vmatpush3.bf16.xpose.msk.msra.mxu1 %vm11782_vm7, %v10335_v15  ;;  %9720 = vmatprep.mubr.msk.f32.mxu1 %vm10900_vm2, %v10897_v1 }
0x1815   :  { %10338 = vmatprep.subr.bf16.mxu1 %v10896_v0  ;;  %10356 = vmatprep.subr.bf16.mxu0 %v10896_v0 }
0x181a   :  { %9742 = vmatmul.mubr.msk.f32.vlgmr.msra.gmra.mrb[76].mxu0 %vm665_vm3, %v6311_v57 }
0x181b   :  { %9721 = vmatmul.mubr.msk.f32.vlgmr.msra.gmra.mrb[70].mxu1 %vm665_vm3, %v6137_v20  ;;  %9762 = vmatprep.mubr.msk.f32.mxu0 %vm10900_vm2, %v10897_v1 }
0x181c   :  { %10341 = vmatpush3.bf16.xpose.msk.msra.mxu1 %vm11782_vm7, %v10339_v59  ;;  %9727 = vmatprep.mubr.msk.f32.mxu1 %vm10900_vm2, %v10897_v1 }
0x181d   :  { %10342 = vmatprep.subr.bf16.mxu1 %v10896_v0 }
0x1823   :  { %9728 = vmatmul.mubr.msk.f32.vlgmr.msra.gmra.mrb[72].mxu1 %vm665_vm3, %v6307_v46 }
0x1824   :  { %10345 = vmatpush3.bf16.xpose.msk.msra.mxu1 %vm11782_vm7, %v10343_v42  ;;  %9734 = vmatprep.mubr.msk.f32.mxu1 %vm10900_vm2, %v10897_v1 }
0x1825   :  { %10350 = vmatprep.subr.bf16.mxu1 %v10896_v0 }
0x182b   :  { %9735 = vmatmul.mubr.msk.f32.vlgmr.msra.gmra.mrb[74].mxu1 %vm665_vm3, %v6309_v60 }
0x182c   :  { %9748 = vmatprep.mubr.msk.f32.mxu1 %vm10900_vm2, %v10897_v1 }
0x1864   :  { %v6412_v55 = vpop.f32.mrb[62].mxu1 }
0x1865   :  { %v6948_v63 = vmul.f32 0.25, %v6412_v55  ;;  %v9694_v2 = vpop.f32.mrb[63].mxu1 }
0x1867   :  { %v6956_v3 = vsel %vm665_vm3, %v6948_v63, -inf }
0x1868   :  { %6957 = vmax.xlane.f32.xlu0 %v6956_v3 }
0x18d6   :  { %v6488_v5 = vpop.f32.mrb[64].mxu1 }
0x18d7   :  { %v12791_v25 = vmul.f32 0.25, %v6488_v5  ;;  %v9701_v23 = vpop.f32.mrb[65].mxu1 }
0x18d9   :  { %v6959_v6 = vsel %vm665_vm3, %v12791_v25, -inf }
0x18da   :  { %6960 = vmax.xlane.f32.xlu1 %v6959_v6 }
0x18de   :  { %v6564_v7 = vpop.f32.mrb[66].mxu1 }
0x18df   :  { %v6950_v38 = vmul.f32 0.25, %v6564_v7  ;;  %v9708_v33 = vpop.f32.mrb[67].mxu1 }
0x18e1   :  { %v6962_v51 = vsel %vm665_vm3, %v6950_v38, -inf }
0x18e2   :  { %6963 = vmax.xlane.f32.xlu0 %v6962_v51 }
0x18e6   :  { %v6640_v54 = vpop.f32.mrb[68].mxu1 }
0x18e7   :  { %v12796_v13 = vmul.f32 0.25, %v6640_v54  ;;  %v9715_v56 = vpop.f32.mrb[69].mxu1 }
0x18e9   :  { %v6965_v61 = vsel %vm665_vm3, %v12796_v13, -inf }
0x18ea   :  { %6966 = vmax.xlane.f32.xlu0 %v6965_v61 }
0x18ed   :  { %v6944_v8 = vpop.f32.mrb[76].mxu0 }
0x18ee   :  { %v6716_v30 = vpop.f32.mrb[70].mxu1  ;;  %v9743_v10 = vpop.f32.mrb[77].mxu0  ;;  %v6955_v14 = vmul.f32 0.25, %v6944_v8 }
0x18ef   :  { %v6952_v32 = vmul.f32 0.25, %v6716_v30  ;;  %v9722_v11 = vpop.f32.mrb[71].mxu1 }
0x18f0   :  { %v6977_v22 = vsel %vm665_vm3, %v6955_v14, -inf }
0x18f1   :  { %v6968_v15 = vsel %vm665_vm3, %v6952_v32, -inf }
0x18f2   :  { %6969 = vmax.xlane.f32.xlu1 %v6968_v15 }
0x18f5   :  { %v6958_v31 = vpop.xlane.xlu0 %6957 }
0x18f6   :  { %v6792_v9 = vpop.f32.mrb[72].mxu1  ;;  %v6980_v20 = vsub.f32 %v6948_v63, %v6958_v31 }
0x18f7   :  { %v6953_v49 = vmul.f32 0.25, %v6792_v9  ;;  %v9729_v18 = vpop.f32.mrb[73].mxu1 }
0x18f8   :  { %v6988_v34 = vmul.f32 1.442695, %v6980_v20 }
0x18f9   :  { %v6971_v21 = vsel %vm665_vm3, %v6953_v49, -inf }
0x18fa   :  { %6972 = vmax.xlane.f32.xlu0 %v6971_v21  ;;  %10772 = vpow2.f32 %v6988_v34 }
0x18fe   :  { %6978 = vmax.xlane.f32.xlu0 %v6977_v22  ;;  %v6868_v26 = vpop.f32.mrb[74].mxu1 }
0x18ff   :  { %v6954_v28 = vmul.f32 0.25, %v6868_v26  ;;  %v9736_v17 = vpop.f32.mrb[75].mxu1 }
0x1901   :  { %v6974_v29 = vsel %vm665_vm3, %v6954_v28, -inf }
0x1902   :  { %6975 = vmax.xlane.f32.xlu1 %v6974_v29 }
0x1913   :  { %10621 = vrot.lane.b32.xlu1 %v12688_v62, %s13297_s28  ;;  %v12816_v62 = vpop.eup %10772 }
0x1914   :  { %10626 = vrot.lane.b32.xlu0 %v12711_v43, %s13297_s28  ;;  %v7004_v43 = vsel %vm665_vm3, %v12816_v62, 0.0 }
0x1917   :  { %10631 = vrot.lane.b32.xlu1 %v12709_v16, %s13297_s28 }
0x1918   :  { %10641 = vrot.lane.b32.xlu0 %v12703_v12, %s13297_s28 }
0x191b   :  { %10636 = vrot.lane.b32.xlu1 %v12717_v19, %s13297_s28 }
0x191f   :  { %10646 = vrot.lane.b32.xlu1 %v12749_v47, %s13297_s28 }
0x1943   :  { %7005 = vadd.xlane.f32.xlu1 %v7004_v43 }
0x1967   :  { %v6961_v12 = vpop.xlane.xlu1 %6960 }
0x1968   :  { %v6981_v53 = vsub.f32 %v12791_v25, %v6961_v12 }
0x196a   :  { %v6990_v46 = vmul.f32 1.442695, %v6981_v53 }
0x196f   :  { %v6964_v16 = vpop.xlane.xlu0 %6963 }
0x1970   :  { %v6982_v35 = vsub.f32 %v6950_v38, %v6964_v16 }
0x1972   :  { %v6992_v36 = vmul.f32 1.442695, %v6982_v35 }
0x1974   :  { %10774 = vpow2.f32 %v6992_v36 }
0x1977   :  { %v6967_v47 = vpop.xlane.xlu0 %6966 }
0x1978   :  { %v6983_v57 = vsub.f32 %v12796_v13, %v6967_v47 }
0x197a   :  { %v6994_v63 = vmul.f32 1.442695, %v6983_v57 }
0x197e   :  { %v12820_v37 = vpop.eup %10774 }
0x197f   :  { %v6970_v19 = vpop.xlane.xlu1 %6969  ;;  %v7010_v39 = vsel %vm665_vm3, %v12820_v37, 0.0 }
0x1980   :  { %v6984_v41 = vsub.f32 %v6952_v32, %v6970_v19  ;;  %7011 = vadd.xlane.f32.xlu1 %v7010_v39 }
0x1982   :  { %v6996_v44 = vmul.f32 1.442695, %v6984_v41 }
0x1984   :  { %10776 = vpow2.f32 %v6996_v44 }
0x1987   :  { %v6973_v45 = vpop.xlane.xlu0 %6972 }
0x1988   :  { %v6985_v2 = vsub.f32 %v6953_v49, %v6973_v45 }
0x198a   :  { %v6998_v6 = vmul.f32 1.442695, %v6985_v2 }
0x198b   :  { %v6979_v48 = vpop.xlane.xlu0 %6978 }
0x198c   :  { %v6987_v50 = vsub.f32 %v6955_v14, %v6979_v48 }
0x198e   :  { %v12825_v52 = vpop.eup %10776  ;;  %v7002_v59 = vmul.f32 1.442695, %v6987_v50 }
0x198f   :  { %v6976_v42 = vpop.xlane.xlu1 %6975  ;;  %v7016_v60 = vsel %vm665_vm3, %v12825_v52, 0.0  ;;  %v10627_v21 = vpop.permute.xlu0 %10626 }
0x1990   :  { %10778 = vpow2.f32 %v7002_v59  ;;  %v6986_v55 = vsub.f32 %v6954_v28, %v6976_v42  ;;  %7017 = vadd.xlane.f32.xlu1 %v7016_v60  ;;  %v10629_v22 = vunpack.i.h.bf16 %v10627_v21  ;;  %v10628_v26 = vunpack.i.l.bf16 %v10627_v21  ;;  %v8786_v21 = vld [vmem:[%s13302_s9 + $0x78] sm:$0xff] }
0x1991   :  { %10780 = vpow2.f32 %v6990_v46 }
0x1992   :  { %v7000_v3 = vmul.f32 1.442695, %v6986_v55  ;;  %v10354_v29 = vpack.c.bf16 %v10629_v22, %v10628_v26 }
0x1993   :  { %v10622_v5 = vpop.permute.xlu1 %10621 }
0x1994   :  { %10782 = vpow2.f32 %v7000_v3  ;;  %v10624_v25 = vunpack.i.h.bf16 %v10622_v5  ;;  %v10623_v23 = vunpack.i.l.bf16 %v10622_v5 }
0x1995   :  { %10784 = vpow2.f32 %v6994_v63 }
0x1996   :  { %v10351_v7 = vpack.c.bf16 %v10624_v25, %v10623_v23  ;;  %10786 = vpow2.f32 %v6998_v6 }
0x1997   :  { %v10632_v38 = vpop.permute.xlu1 %10631 }
0x1998   :  { %v10634_v33 = vunpack.i.h.bf16 %v10632_v38  ;;  %v10633_v51 = vunpack.i.l.bf16 %v10632_v38  ;;  %10352 = vmatpush3.bf16.msra.mxu1 %v10351_v7 }
0x1999   :  { %10353 = vmatprep.subr.bf16.mxu1 %v10896_v0 }
0x199a   :  { %v12830_v54 = vpop.eup %10778  ;;  %v10357_v13 = vpack.c.bf16 %v10634_v33, %v10633_v51 }
0x199b   :  { %v7025_v56 = vsel %vm665_vm3, %v12830_v54, 0.0  ;;  %v12835_v61 = vpop.eup %10780  ;;  %v10637_v49 = vpop.permute.xlu1 %10636 }
0x199c   :  { %7026 = vadd.xlane.f32.xlu0 %v7025_v56  ;;  %10358 = vmatpush3.bf16.msra.mxu0 %v10357_v13  ;;  %v7007_v30 = vsel %vm665_vm3, %v12835_v61, 0.0  ;;  %v10639_v41 = vunpack.i.h.bf16 %v10637_v49  ;;  %v10638_v44 = vunpack.i.l.bf16 %v10637_v49 }
0x199d   :  { %10362 = vmatprep.subr.bf16.mxu0 %v10896_v0 }
0x199e   :  { %v12838_v8 = vpop.eup %10782  ;;  %v10360_v53 = vpack.c.bf16 %v10639_v41, %v10638_v44 }
0x199f   :  { %v7022_v10 = vsel %vm665_vm3, %v12838_v8, 0.0  ;;  %v12844_v32 = vpop.eup %10784  ;;  %v10647_v18 = vpop.permute.xlu1 %10646 }
0x19a0   :  { %7008 = vadd.xlane.f32.xlu0 %v7007_v30  ;;  %7023 = vadd.xlane.f32.xlu1 %v7022_v10  ;;  %v7013_v11 = vsel %vm665_vm3, %v12844_v32, 0.0  ;;  %v12848_v15 = vpop.eup %10786  ;;  %v10648_v46 = vunpack.i.l.bf16 %v10647_v18  ;;  %v8783_v10 = vld [vmem:[%s13302_s9 + $0x60] sm:$0xff] }
0x19a1   :  { %v7019_v9 = vsel %vm665_vm3, %v12848_v15, 0.0 }
0x19a4   :  { %7014 = vadd.xlane.f32.xlu0 %v7013_v11 }
0x19a8   :  { %7020 = vadd.xlane.f32.xlu0 %v7019_v9 }
0x19b1   :  { %10656 = vrot.lane.b32.xlu1 %v12759_v58, %s13297_s28  ;;  %v10642_v58 = vpop.permute.xlu0 %10641 }
0x19b2   :  { %v10644_v31 = vunpack.i.h.bf16 %v10642_v58  ;;  %v10643_v20 = vunpack.i.l.bf16 %v10642_v58 }
0x19b4   :  { %v10363_v16 = vpack.c.bf16 %v10644_v31, %v10643_v20 }
0x19be   :  { %10651 = vrot.lane.b32.xlu0 %v12745_v24, %s13297_s28 }
0x19d0   :  { %v7006_v14 = vpop.xlane.xlu1 %7005 }
0x19d1   :  { %10788 = vrcp.f32 %v7006_v14  ;;  %v8785_v14 = vld [vmem:[%s13302_s9 + $0x70] sm:$0xff] }
0x19d2   :  { %v10392_v22 = vpack.c.bf16 %v8786_v21, %v8785_v14  ;;  %v8829_v14 = vld [vmem:[%s13228_s16 + $0x1d0] sm:$0xff]  ;;  %v8830_v21 = vld [vmem:[%s13228_s16 + $0x1d8] sm:$0xff] }
0x19db   :  { %v10789_v28 = vpop.eup %10788 }
0x19dc   :  { %v7029_v17 = vmul.f32 %v10789_v28, %v12816_v62 }
0x19de   :  { %9749 = vmatmul.mubr.msk.f32.vlgmr.msra.gmra.mrb[76].mxu1 %vm665_vm3, %v7029_v17 }
0x19df   :  { %10355 = vmatpush3.bf16.msra.mxu1 %v10354_v29  ;;  %9755 = vmatprep.mubr.msk.f32.mxu1 %vm10900_vm2, %v10897_v1 }
0x19e0   :  { %10359 = vmatprep.subr.bf16.mxu1 %v10896_v0 }
0x1a0d   :  { %v7012_v24 = vpop.xlane.xlu1 %7011 }
0x1a0e   :  { %10790 = vrcp.f32 %v7012_v24 }
0x1a18   :  { %v10791_v34 = vpop.eup %10790 }
0x1a19   :  { %v7033_v43 = vmul.f32 %v10791_v34, %v12820_v37 }
0x1a1b   :  { %9763 = vmatmul.mubr.msk.f32.vlgmr.msra.gmra.mrb[78].mxu0 %vm665_vm3, %v7033_v43 }
0x1a1c   :  { %10364 = vmatpush3.bf16.msra.mxu0 %v10363_v16  ;;  %9776 = vmatprep.mubr.msk.f32.mxu0 %vm10900_vm2, %v10897_v1 }
0x1a1d   :  { %v7018_v62 = vpop.xlane.xlu1 %7017  ;;  %10368 = vmatprep.subr.bf16.mxu0 %v10896_v0 }
0x1a1e   :  { %10792 = vrcp.f32 %v7018_v62 }
0x1a28   :  { %v10793_v35 = vpop.eup %10792 }
0x1a29   :  { %v7037_v36 = vmul.f32 %v10793_v35, %v12825_v52  ;;  %v7027_v12 = vpop.xlane.xlu0 %7026  ;;  %v10649_v52 = vunpack.i.h.bf16 %v10647_v18 }
0x1a2b   :  { %9777 = vmatmul.mubr.msk.f32.vlgmr.msra.gmra.mrb[80].mxu0 %vm665_vm3, %v7037_v36  ;;  %v10366_v3 = vpack.c.bf16 %v10649_v52, %v10648_v46 }
0x1a2c   :  { %9790 = vmatprep.mubr.msk.f32.mxu0 %vm10900_vm2, %v10897_v1 }
0x1a2d   :  { %v7009_v37 = vpop.xlane.xlu0 %7008  ;;  %v7024_v19 = vpop.xlane.xlu1 %7023 }
0x1a2e   :  { %10794 = vrcp.f32 %v7009_v37 }
0x1a2f   :  { %10796 = vrcp.f32 %v7024_v19 }
0x1a31   :  { %v7015_v39 = vpop.xlane.xlu0 %7014  ;;  %v10657_v60 = vpop.permute.xlu1 %10656 }
0x1a32   :  { %10798 = vrcp.f32 %v7015_v39  ;;  %v10659_v5 = vunpack.i.h.bf16 %v10657_v60  ;;  %v10658_v25 = vunpack.i.l.bf16 %v10657_v60  ;;  %v8820_v60 = vld [vmem:[%s13228_s16 + $0x188] sm:$0xff] }
0x1a34   :  { %v10372_v33 = vpack.c.bf16 %v10659_v5, %v10658_v25  ;;  %v8822_v5 = vld [vmem:[%s13228_s16 + $0x198] sm:$0xff] }
0x1a35   :  { %v7021_v47 = vpop.xlane.xlu0 %7020 }
0x1a36   :  { %10800 = vrcp.f32 %v7021_v47 }
0x1a37   :  { %10802 = vrcp.f32 %v7027_v12 }
0x1a38   :  { %v10795_v45 = vpop.eup %10794 }
0x1a39   :  { %v7031_v48 = vmul.f32 %v10795_v45, %v12835_v61  ;;  %v10652_v50 = vpop.permute.xlu0 %10651  ;;  %v10797_v42 = vpop.eup %10796  ;;  %v8779_v61 = vld [vmem:[%s13302_s9 + $0x40] sm:$0xff] }
0x1a3a   :  { %v10654_v57 = vunpack.i.h.bf16 %v10652_v50  ;;  %v10653_v59 = vunpack.i.l.bf16 %v10652_v50  ;;  %v7041_v23 = vmul.f32 %v10797_v42, %v12838_v8  ;;  %v8781_v8 = vld [vmem:[%s13302_s9 + $0x50] sm:$0xff]  ;;  %v8819_v42 = vld [vmem:[%s13228_s16 + $0x180] sm:$0xff] }
0x1a3b   :  { %9756 = vmatmul.mubr.msk.f32.vlgmr.msra.gmra.mrb[78].mxu1 %vm665_vm3, %v7031_v48 }
0x1a3c   :  { %v10799_v55 = vpop.eup %10798  ;;  %v10369_v63 = vpack.c.bf16 %v10654_v57, %v10653_v59  ;;  %10361 = vmatpush3.bf16.msra.mxu1 %v10360_v53  ;;  %9769 = vmatprep.mubr.msk.f32.mxu1 %vm10900_vm2, %v10897_v1 }
0x1a3d   :  { %v7035_v2 = vmul.f32 %v10799_v55, %v12844_v32  ;;  %10365 = vmatprep.subr.bf16.mxu1 %v10896_v0  ;;  %v8784_v32 = vld [vmem:[%s13302_s9 + $0x68] sm:$0xff]  ;;  %v8803_v55 = vld [vmem:[%s13228_s16 + $0x100] sm:$0xff] }
0x1a3e   :  { %10370 = vmatpush3.bf16.msra.mxu0 %v10369_v63  ;;  %v10386_v11 = vpack.c.bf16 %v8784_v32, %v8783_v10  ;;  %v10398_v63 = vpack.c.bf16 %v8820_v60, %v8819_v42  ;;  %v8810_v10 = vld [vmem:[%s13228_s16 + $0x138] sm:$0xff]  ;;  %v8827_v32 = vld [vmem:[%s13228_s16 + $0x1c0] sm:$0xff]  ;;  %v8872_v60 = vld [vmem:[%s13230_s18 + $0x90] sm:$0xff] }
0x1a3f   :  { %9770 = vmatmul.mubr.msk.f32.vlgmr.msra.gmra.mrb[80].mxu1 %vm665_vm3, %v7035_v2  ;;  %v8804_v2 = vld [vmem:[%s13228_s16 + $0x108] sm:$0xff] }
0x1a40   :  { %v10801_v6 = vpop.eup %10800  ;;  %10367 = vmatpush3.bf16.msra.mxu1 %v10366_v3  ;;  %9783 = vmatprep.mubr.msk.f32.mxu1 %vm10900_vm2, %v10897_v1  ;;  %v8821_v3 = vld [vmem:[%s13228_s16 + $0x190] sm:$0xff]  ;;  %v10401_v25 = vpack.c.bf16 %v8804_v2, %v8803_v55  ;;  %v8875_v55 = vld [vmem:[%s13230_s18 + $0xa8] sm:$0xff] }
0x1a41   :  { %v7039_v7 = vmul.f32 %v10801_v6, %v12848_v15  ;;  %9791 = vmatmul.mubr.msk.f32.vlgmr.msra.gmra.mrb[82].mxu0 %vm665_vm3, %v7041_v23  ;;  %10371 = vmatprep.subr.bf16.mxu1 %v10896_v0  ;;  %v10803_v38 = vpop.eup %10802  ;;  %v8780_v0 = vld [vmem:[%s13302_s9 + $0x48] sm:$0xff]  ;;  %v10404_v23 = vpack.c.bf16 %v8822_v5, %v8821_v3  ;;  %v8805_v6 = vld [vmem:[%s13228_s16 + $0x110] sm:$0xff]  ;;  %v8874_v5 = vld [vmem:[%s13230_s18 + $0xa0] sm:$0xff] }
0x1a42   :  { %v7043_v51 = vmul.f32 %v10803_v38, %v12830_v54  ;;  %v10374_v30 = vpack.c.bf16 %v8780_v0, %v8779_v61  ;;  %v8823_v38 = vld [vmem:[%s13228_s16 + $0x1a0] sm:$0xff]  ;;  %v8808_v61 = vld [vmem:[%s13228_s16 + $0x128] sm:$0xff]  ;;  %v8825_v0 = vld [vmem:[%s13228_s16 + $0x1b0] sm:$0xff] }
0x1a43   :  { %9784 = vmatmul.mubr.msk.f32.vlgmr.msra.gmra.mrb[82].mxu1 %vm665_vm3, %v7039_v7  ;;  %v8806_v7 = vld [vmem:[%s13228_s16 + $0x118] sm:$0xff] }
0x1a44   :  { %10373 = vmatpush3.bf16.msra.mxu1 %v10372_v33  ;;  %9797 = vmatprep.mubr.msk.f32.mxu1 %vm10900_vm2, %v10897_v1  ;;  %v8782_v1 = vld [vmem:[%s13302_s9 + $0x58] sm:$0xff]  ;;  %v8824_v33 = vld [vmem:[%s13228_s16 + $0x1a8] sm:$0xff] }
0x1a45   :  { %v10380_v54 = vpack.c.bf16 %v8782_v1, %v8781_v8  ;;  %10376 = vmatprep.subr.msk.bf16.mxu0 %vm11074_vm1, %v10374_v30  ;;  %10400 = vmatprep.subr.msk.bf16.mxu1 %vm11074_vm1, %v10398_v63  ;;  %v8826_v8 = vld [vmem:[%s13228_s16 + $0x1b8] sm:$0xff] }
0x1a46   :  { %v10416_v1 = vpack.c.bf16 %v8826_v8, %v8825_v0  ;;  %v8877_v63 = vld [vmem:[%s13230_s18 + $0xb8] sm:$0xff]  ;;  %v8802_v8 = vld [vmem:[%s13227_s15 + $0x1] ss:$0 sm:$0xff] }
0x1a47   :  { %9798 = vmatmul.mubr.msk.f32.vlgmr.msra.gmra.mrb[84].mxu1 %vm665_vm3, %v7043_v51  ;;  %10379 = vmatpush3.bf16.xpose.msk.msra.mxu0 %vm11074_vm1, %v10374_v30  ;;  %v10407_v51 = vpack.c.bf16 %v8806_v7, %v8805_v6  ;;  %v10450_v3 = vpack.c.bf16 %v8877_v63, %v8875_v55 }
0x1a48   :  { %10382 = vmatprep.subr.msk.bf16.mxu0 %vm11074_vm1, %v10380_v54 }
0x1a4d   :  { %10403 = vmatpush3.bf16.xpose.msk.msra.mxu1 %vm11074_vm1, %v10401_v25  ;;  %v8876_v25 = vld [vmem:[%s13230_s18 + $0xb0] sm:$0xff] }
0x1a4e   :  { %10406 = vmatprep.subr.msk.bf16.mxu1 %vm11074_vm1, %v10404_v23  ;;  %v10452_v23 = vpack.c.bf16 %v8876_v25, %v8874_v5 }
0x1a4f   :  { %10385 = vmatpush3.bf16.xpose.msk.msra.mxu0 %vm11074_vm1, %v10380_v54  ;;  %v8809_v54 = vld [vmem:[%s13228_s16 + $0x130] sm:$0xff] }
0x1a50   :  { %10388 = vmatprep.subr.msk.bf16.mxu0 %vm11074_vm1, %v10386_v11 }
0x1a55   :  { %10409 = vmatpush3.bf16.xpose.msk.msra.mxu1 %vm11074_vm1, %v10407_v51 }
0x1a57   :  { %10391 = vmatpush3.bf16.xpose.msk.msra.mxu0 %vm11074_vm1, %v10386_v11  ;;  %v8828_v11 = vld [vmem:[%s13228_s16 + $0x1c8] sm:$0xff] }
0x1a58   :  { %10394 = vmatprep.subr.msk.bf16.mxu0 %vm11074_vm1, %v10392_v22 }
0x1a5f   :  { %10397 = vmatpush3.bf16.xpose.msk.msra.mxu0 %vm11074_vm1, %v10392_v22 }
0x1ab1   :  { %v7119_v13 = vpop.f32.mrb[76].mxu1 }
0x1ab2   :  { %v9750_v56 = vpop.f32.mrb[77].mxu1 }
0x1ab3   :  { %v8807_v56 = vld [vmem:[%s13228_s16 + $0x120] sm:$0xff] }
0x1ab4   :  { %v10413_v30 = vpack.c.bf16 %v8808_v61, %v8807_v56  ;;  %v8801_v61 = vld [vmem:[%s13226_s14 + $0x1] ss:$0 sm:$0xff] }
0x1aee   :  { %v7277_v15 = vpop.f32.mrb[78].mxu0 }
0x1aef   :  { %7681 = vrot.lane.b32.xlu1 %v7277_v15, %s13298_s6  ;;  %v9764_v9 = vpop.f32.mrb[79].mxu0  ;;  %v10419_v15 = vpack.c.bf16 %v8810_v10, %v8809_v54 }
0x1af0   :  { %v10422_v9 = vpack.c.bf16 %v8828_v11, %v8827_v32 }
0x1afe   :  { %v7435_v49 = vpop.f32.mrb[80].mxu0 }
0x1aff   :  { %v9778_v18 = vpop.f32.mrb[81].mxu0 }
0x1b00   :  { %v8812_v18 = vld [vmem:[%s13228_s16 + $0x148] sm:$0xff] }
0x1b0e   :  { %v7198_v26 = vpop.f32.mrb[78].mxu1 }
0x1b0f   :  { %7677 = vrot.lane.b32.xlu0 %v7198_v26, %s13292_s30  ;;  %v9757_v28 = vpop.f32.mrb[79].mxu1  ;;  %v10428_v26 = vpack.c.bf16 %v8830_v21, %v8829_v14  ;;  %v8880_v14 = vld [vmem:[%s13230_s18 + $0xd0] sm:$0xff] }
0x1b10   :  { %v8813_v28 = vld [vmem:[%s13228_s16 + $0x150] sm:$0xff] }
0x1b12   :  { %v7356_v17 = vpop.f32.mrb[80].mxu1 }
0x1b13   :  { %7685 = vrot.lane.b32.xlu1 %v7356_v17, %s13299_s25  ;;  %v9771_v29 = vpop.f32.mrb[81].mxu1  ;;  %v8814_v17 = vld [vmem:[%s13228_s16 + $0x158] sm:$0xff] }
0x1b14   :  { %v7593_v24 = vpop.f32.mrb[82].mxu0  ;;  %v10431_v29 = vpack.c.bf16 %v8814_v17, %v8813_v28  ;;  %v8882_v17 = vld [vmem:[%s13230_s18 + $0xe0] sm:$0xff] }
0x1b15   :  { %v9792_v58 = vpop.f32.mrb[83].mxu0 }
0x1b16   :  { %v7514_v31 = vpop.f32.mrb[82].mxu1 }
0x1b17   :  { %7692 = vrot.lane.b32.xlu0 %v7514_v31, %s13292_s30  ;;  %v9785_v20 = vpop.f32.mrb[83].mxu1 }
0x1b1a   :  { %v7672_v34 = vpop.f32.mrb[84].mxu1 }
0x1b1b   :  { %7696 = vrot.lane.b32.xlu0 %v7593_v24, %s13298_s6  ;;  %7700 = vrot.lane.b32.xlu1 %v7672_v34, %s13299_s25  ;;  %v9799_v43 = vpop.f32.mrb[85].mxu1  ;;  %s13303_s25 = sld [smem:[#allocation22_spill]] }
0x1b21   :  { %v8788_v53 = vld [vmem:[%s13303_s25 + $0x1] ss:$0 sm:$0xff] }
0x1b61   :  { %v7682_v16 = vpop.permute.xlu1 %7681 }
0x1b81   :  { %v7678_v62 = vpop.permute.xlu0 %7677 }
0x1b82   :  { %v7688_v35 = vsel %vm665_vm3, %v7119_v13, %v7678_v62  ;;  %v10410_v13 = vpack.c.bf16 %v8824_v33, %v8823_v38 }
0x1b83   :  { %v7689_v36 = vsel %vm1966_vm5, %v7688_v35, %v7682_v16 }
0x1b84   :  { %10412 = vmatprep.subr.msk.bf16.mxu1 %vm11074_vm1, %v10410_v13 }
0x1b85   :  { %v7686_v12 = vpop.permute.xlu1 %7685  ;;  %10415 = vmatpush3.bf16.xpose.msk.msra.mxu1 %vm11074_vm1, %v10413_v30 }
0x1b86   :  { %v7690_v37 = vsel %vm1968_vm6, %v7689_v36, %v7686_v12  ;;  %10418 = vmatprep.subr.msk.bf16.mxu1 %vm11074_vm1, %v10416_v1  ;;  %v8831_v12 = vld [vmem:[%s13228_s16 + $0x1e0] sm:$0xff] }
0x1b87   :  { %9816 = vmatprep.mubr.msk.f32.mxu0 %vm476_vm0, %v7690_v37  ;;  %v8832_v37 = vld [vmem:[%s13228_s16 + $0x1e8] sm:$0xff] }
0x1b89   :  { %v7693_v19 = vpop.permute.xlu0 %7692 }
0x1b8a   :  { %v7703_v39 = vsel %vm665_vm3, %v7435_v49, %v7693_v19  ;;  %v8811_v49 = vld [vmem:[%s13228_s16 + $0x140] sm:$0xff]  ;;  %v10434_v19 = vpack.c.bf16 %v8832_v37, %v8831_v12 }
0x1b8b   :  { %v10425_v22 = vpack.c.bf16 %v8812_v18, %v8811_v49  ;;  %v8878_v18 = vld [vmem:[%s13230_s18 + $0xc0] sm:$0xff] }
0x1b8c   :  { %v10456_v21 = vpack.c.bf16 %v8880_v14, %v8878_v18  ;;  %v8268_v18 = vld [vmem:[%s13304_s24 + $0x18] sm:$0xff] }
0x1b8d   :  { %v7697_v41 = vpop.permute.xlu0 %7696  ;;  %v7701_v44 = vpop.permute.xlu1 %7700  ;;  %10421 = vmatpush3.bf16.xpose.msk.msra.mxu1 %vm11074_vm1, %v10419_v15  ;;  %v8879_v15 = vld [vmem:[%s13230_s18 + $0xc8] sm:$0xff] }
0x1b8e   :  { %v7704_v47 = vsel %vm1966_vm5, %v7703_v39, %v7697_v41  ;;  %10424 = vmatprep.subr.msk.bf16.mxu1 %vm11074_vm1, %v10422_v9  ;;  %v8815_v39 = vld [vmem:[%s13228_s16 + $0x160] sm:$0xff]  ;;  %v8816_v41 = vld [vmem:[%s13228_s16 + $0x168] sm:$0xff]  ;;  %v8881_v9 = vld [vmem:[%s13230_s18 + $0xd8] sm:$0xff] }
0x1b8f   :  { %v7705_v45 = vsel %vm1968_vm6, %v7704_v47, %v7701_v44  ;;  %v10437_v44 = vpack.c.bf16 %v8816_v41, %v8815_v39  ;;  %v8833_v47 = vld [vmem:[%s13228_s16 + $0x1f0] sm:$0xff]  ;;  %v10454_v49 = vpack.c.bf16 %v8881_v9, %v8879_v15 }
0x1b90   :  { %9817 = vmatmul.mubr.msk.f32.vlgmr.msra.gmra.mrb[84].mxu0 %vm476_vm0, %v7705_v45  ;;  %v8834_v45 = vld [vmem:[%s13228_s16 + $0x1f8] sm:$0xff] }
0x1b95   :  { %10427 = vmatpush3.bf16.xpose.msk.msra.mxu1 %vm11074_vm1, %v10425_v22  ;;  %v8883_v22 = vld [vmem:[%s13230_s18 + $0xe8] sm:$0xff] }
0x1b96   :  { %10430 = vmatprep.subr.msk.bf16.mxu1 %vm11074_vm1, %v10428_v26  ;;  %v8885_v26 = vld [vmem:[%s13230_s18 + $0xf8] sm:$0xff] }
0x1b97   :  { %v10458_v28 = vpack.c.bf16 %v8885_v26, %v8883_v22  ;;  %v8270_v22 = vld [vmem:[%s13304_s24 + $0x28] sm:$0xff] }
0x1b9d   :  { %10433 = vmatpush3.bf16.xpose.msk.msra.mxu1 %vm11074_vm1, %v10431_v29  ;;  %v8884_v29 = vld [vmem:[%s13230_s18 + $0xf0] sm:$0xff] }
0x1b9e   :  { %10436 = vmatprep.subr.msk.bf16.mxu1 %vm11074_vm1, %v10434_v19 }
0x1ba5   :  { %10439 = vmatpush3.bf16.xpose.msk.msra.mxu1 %vm11074_vm1, %v10437_v44 }
0x1c63   :  { %v9818_v48 = vpop.f32.mrb[84].mxu0 }
0x1c64   :  { %v7825_v50 = vadd.f32 %v9818_v48, %v8788_v53  ;;  %v7819_v52 = vpop.f32.mrb[85].mxu0  ;;  %v8817_v48 = vld [vmem:[%s13228_s16 + $0x170] sm:$0xff] }
0x1c65   :  { %v7820_v46 = vadd.f32 %v8788_v53, %v7819_v52  ;;  %v10440_v53 = vpack.c.bf16 %v8834_v45, %v8833_v47 }
0x1c66   :  { %v7835_v57 = vsel %vm476_vm0, %v7825_v50, 0.0 }
0x1c67   :  { %7836 = vadd.xlane.f32.xlu1 %v7835_v57  ;;  %v7832_v59 = vsel %vm476_vm0, %v7820_v46, 0.0  ;;  %10442 = vmatprep.subr.msk.bf16.mxu1 %vm11074_vm1, %v10440_v53  ;;  %v8873_v57 = vld [vmem:[%s13230_s18 + $0x98] sm:$0xff] }
0x1c68   :  { %7833 = vadd.xlane.f32.xlu0 %v7832_v59  ;;  %v8870_v59 = vld [vmem:[%s13230_s18 + $0x80] sm:$0xff] }
0x1c69   :  { %v10448_v2 = vpack.c.bf16 %v8872_v60, %v8870_v59 }
0x1cf4   :  { %v7837_v24 = vpop.xlane.xlu1 %7836 }
0x1cf5   :  { %v7839_v58 = vmul.f32 0.015625, %v7837_v24  ;;  %v7834_v31 = vpop.xlane.xlu0 %7833  ;;  %v10460_v24 = vpack.c.bf16 %v8884_v29, %v8882_v17  ;;  %v8272_v17 = vld [vmem:[%s13304_s24 + $0x38] sm:$0xff] }
0x1cf6   :  { %v7838_v20 = vmul.f32 0.015625, %v7834_v31 }
0x1cf7   :  { %v7841_v34 = vsub.f32 %v7825_v50, %v7839_v58  ;;  %v8818_v50 = vld [vmem:[%s13228_s16 + $0x178] sm:$0xff]  ;;  %v8835_v58 = vld [vmem:[%s13229_s17 + $0x2] sm:$0x3] }
0x1cf8   :  { %v7840_v43 = vsub.f32 %v7820_v46, %v7838_v20  ;;  %v10443_v52 = vpack.c.bf16 %v8818_v50, %v8817_v48  ;;  %v8871_v46 = vld [vmem:[%s13230_s18 + $0x88] sm:$0xff]  ;;  %v7913_v31 = vrot.slane %v8835_v58, %v11282_v27  ;;  %v7917_v20 = vrot.slane %v8835_v58, %v11309_v40 }
0x1cf9   :  { %v7843_v35 = vmul.f32 %v7841_v34, %v7841_v34  ;;  %v10446_v42 = vpack.c.bf16 %v8873_v57, %v8871_v46 }
0x1cfa   :  { %v7842_v16 = vmul.f32 %v7840_v43, %v7840_v43  ;;  %10445 = vmatpush3.bf16.xpose.msk.msra.mxu1 %vm11074_vm1, %v10443_v52 }
0x1cfb   :  { %v7847_v36 = vsel %vm476_vm0, %v7843_v35, 0.0  ;;  %10447 = vmatprep.subr.bf16.mxu0 %v10446_v42 }
0x1cfc   :  { %v7844_v62 = vsel %vm476_vm0, %v7842_v16, 0.0  ;;  %10449 = vmatpush1.bf16.xpose.msra.mxu0 %v10448_v2 }
0x1cfd   :  { %7845 = vadd.xlane.f32.xlu0 %v7844_v62  ;;  %10451 = vmatprep.subr.bf16.mxu0 %v10450_v3  ;;  %v8887_v3 = vld [vmem:[%s13231_s19 + $0x1] ss:$0 sm:$0xff] }
0x1d01   :  { %7848 = vadd.xlane.f32.xlu0 %v7847_v36 }
0x1d04   :  { %10453 = vmatpush1.bf16.xpose.msra.mxu0 %v10452_v23 }
0x1d05   :  { %10455 = vmatprep.subr.bf16.mxu0 %v10454_v49  ;;  %v8267_v49 = vld [vmem:[%s13304_s24 + $0x10] sm:$0xff] }
0x1d06   :  { %v10468_v14 = vpack.c.bf16 %v8268_v18, %v8267_v49 }
0x1d0c   :  { %10457 = vmatpush1.bf16.xpose.msra.mxu0 %v10456_v21  ;;  %v8269_v21 = vld [vmem:[%s13304_s24 + $0x20] sm:$0xff] }
0x1d0d   :  { %10459 = vmatprep.subr.bf16.mxu0 %v10458_v28  ;;  %v10474_v26 = vpack.c.bf16 %v8270_v22, %v8269_v21  ;;  %v8271_v28 = vld [vmem:[%s13304_s24 + $0x30] sm:$0xff] }
0x1d0e   :  { %v10480_v29 = vpack.c.bf16 %v8272_v17, %v8271_v28 }
0x1d14   :  { %10461 = vmatpush1.bf16.xpose.msra.mxu0 %v10460_v24 }
0x1d8a   :  { %v7846_v6 = vpop.xlane.xlu0 %7845 }
0x1d8b   :  { %v7850_v7 = vmul.f32 0.015625, %v7846_v6 }
0x1d8d   :  { %v7852_v38 = vadd.f32 1e-05, %v7850_v7 }
0x1d8e   :  { %v7849_v33 = vpop.xlane.xlu0 %7848 }
0x1d8f   :  { %10804 = vrsqrt.f32 %v7852_v38  ;;  %v7851_v51 = vmul.f32 0.015625, %v7849_v33 }
0x1d91   :  { %v7853_v13 = vadd.f32 1e-05, %v7851_v51 }
0x1d93   :  { %10806 = vrsqrt.f32 %v7853_v13  ;;  %v8265_v13 = vld [vmem:[%s13304_s24] sm:$0xff] }
0x1d99   :  { %v10805_v56 = vpop.eup %10804 }
0x1d9a   :  { %v7856_v0 = vmul.f32 %v10805_v56, %v7840_v43  ;;  %v8266_v56 = vld [vmem:[%s13304_s24 + $0x8] sm:$0xff] }
0x1d9c   :  { %v7864_v30 = vmul.f32 %v8801_v61, %v7856_v0 }
0x1d9d   :  { %v10807_v1 = vpop.eup %10806 }
0x1d9e   :  { %v7872_v54 = vadd.f32 %v8802_v8, %v7864_v30  ;;  %v7857_v10 = vmul.f32 %v10807_v1, %v7841_v34 }
0x1da0   :  { %9231 = vmatprep.mubr.msk.f32.mxu1 %vm476_vm0, %v7872_v54  ;;  %v7865_v32 = vmul.f32 %v8801_v61, %v7857_v10  ;;  %v10462_v61 = vpack.c.bf16 %v8266_v56, %v8265_v13 }
0x1da1   :  { %9232 = vmatmul.mubr.msk.f32.vlgmr.msra.gmra.mrb[86].mxu1 %vm476_vm0, %v7872_v54 }
0x1da2   :  { %v7873_v11 = vadd.f32 %v8802_v8, %v7865_v32  ;;  %10464 = vmatprep.subr.msk.bf16.mxu0 %vm11074_vm1, %v10462_v61 }
0x1da4   :  { %9233 = vmatprep.mubr.msk.f32.mxu1 %vm476_vm0, %v7873_v11 }
0x1da5   :  { %9234 = vmatmul.mubr.msk.f32.gmra.mrb[88].mxu1 %vm476_vm0, %v7873_v11 }
0x1e74   :  { %v8088_v34 = vpop.f32.mrb[86].mxu1 }
0x1e75   :  { %v8089_v43 = vadd.f32 %v8088_v34, %v7913_v31  ;;  %v8090_v16 = vpop.f32.mrb[87].mxu1 }
0x1e76   :  { %v8091_v62 = vadd.f32 %v8090_v16, %v7917_v20 }
0x1e77   :  { %v8103_v35 = vmul.f32 0.70710677, %v8089_v43  ;;  %v8099_v48 = vmul.f32 0.5, %v8089_v43 }
0x1e78   :  { %v8104_v36 = vmul.f32 0.70710677, %v8091_v62  ;;  %v8094_v12 = vpop.f32.mrb[88].mxu1  ;;  %v8100_v40 = vmul.f32 0.5, %v8091_v62  ;;  %v8890_v62 = vld [vmem:[%s13232_s20 + $0x1] ss:$0 sm:$0xff] }
0x1e79   :  { %10808 = verf.f32 %v8103_v35  ;;  %v8095_v37 = vadd.f32 %v8094_v12, %v7913_v31  ;;  %v8096_v19 = vpop.f32.mrb[89].mxu1  ;;  %s10905_s20 = smov [#allocation7]  }
0x1e7a   :  { %10810 = verf.f32 %v8104_v36  ;;  %v8097_v39 = vadd.f32 %v8096_v19, %v7917_v20  ;;  %v8891_v36 = vld [vmem:[%s13233_s21 + $0x1] ss:$0 sm:$0xff]  ;;  %s8397_s21 = sshll.u32 %s10905_s20, 4  ;;  %s8398_s21 = int_to_ptr.vmem [resolvable:$true] %s8397_s21 }
0x1e7b   :  { %v8105_v41 = vmul.f32 0.70710677, %v8095_v37  ;;  %v8101_v55 = vmul.f32 0.5, %v8095_v37  ;;  %s10864_s7 = scalar_lea.vmem %s8398_s21, 128  ;;  %p10869_p3 = scmp.lt.s32.totalorder %s8398_s21, %s8398_s21 }
0x1e7c   :  { %v8106_v44 = vmul.f32 0.70710677, %v8097_v39  ;;  %v8102_v42 = vmul.f32 0.5, %v8097_v39  ;;  %p10865_p2 = scmp.ne.s32.totalorder %s8398_s21, %s10864_s7  ;;  %p10870_p4 = scmp.lt.s32.totalorder %s10864_s7, %s10864_s7 }
0x1e7d   :  { %10812 = verf.f32 %v8105_v41 }
0x1e7e   :  { %10814 = verf.f32 %v8106_v44  ;;  %v8892_v44 = vld [vmem:[%s13305_s23] ss:$0 sm:$0xff]  ;;  %p10871_p5 = por %p10870_p4, %p10869_p3 }
0x1e80   :  { %p10872_p6 = pnand %p10871_p5, %p10865_p2 }
0x1e83   :  { %v10809_v47 = vpop.eup %10808 }
0x1e84   :  { %v10811_v27 = vpop.eup %10810  ;;  %v8111_v45 = vadd.f32 1.0, %v10809_v47 }
0x1e85   :  { %v8112_v53 = vadd.f32 1.0, %v10811_v27 }
0x1e86   :  { %v8115_v57 = vmul.f32 %v8111_v45, %v8099_v48 }
0x1e87   :  { %v10813_v50 = vpop.eup %10812  ;;  %v8116_v52 = vmul.f32 %v8112_v53, %v8100_v40 }
0x1e88   :  { %v10815_v46 = vpop.eup %10814  ;;  %v8113_v59 = vadd.f32 1.0, %v10813_v50 }
0x1e89   :  { %v8114_v60 = vadd.f32 1.0, %v10815_v46  ;;  %8208 = vmatprep.mubr.f32.mxu0 %v8116_v52 }
0x1e8a   :  { %8209 = vmatmul.mubr.f32.vlgmr.msra.gmra.mrb[86].mxu0 %v8115_v57  ;;  %v8117_v2 = vmul.f32 %v8113_v59, %v8101_v55 }
0x1e8b   :  { %v8118_v63 = vmul.f32 %v8114_v60, %v8102_v42  ;;  %10467 = vmatpush3.bf16.xpose.msk.msra.mxu0 %vm11074_vm1, %v10462_v61 }
0x1e8c   :  { %10470 = vmatprep.subr.msk.bf16.mxu0 %vm11074_vm1, %v10468_v14 }
0x1e8d   :  { %8213 = vmatprep.mubr.f32.mxu0 %v8118_v63 }
0x1e8e   :  { %8214 = vmatmul.mubr.f32.gmra.mrb[88].mxu0 %v8117_v2 }
0x1e93   :  { %10473 = vmatpush3.bf16.xpose.msk.msra.mxu0 %vm11074_vm1, %v10468_v14 }
0x1e94   :  { %10476 = vmatprep.subr.msk.bf16.mxu0 %vm11074_vm1, %v10474_v26 }
0x1e9b   :  { %10479 = vmatpush3.bf16.xpose.msk.msra.mxu0 %vm11074_vm1, %v10474_v26 }
0x1e9c   :  { %10482 = vmatprep.subr.msk.bf16.mxu0 %vm11074_vm1, %v10480_v29 }
0x1ea3   :  { %10485 = vmatpush3.bf16.xpose.msk.msra.mxu0 %vm11074_vm1, %v10480_v29 }
0x1f5d   :  { %v8210_v5 = vpop.f32.mrb[86].mxu0 }
0x1f5e   :  { %v8211_v25 = vadd.f32 %v8887_v3, %v8210_v5  ;;  %v8212_v23 = vpop.f32.mrb[87].mxu0 }
0x1f60   :  { %v8223_v6 = vsel %vm476_vm0, %v8211_v25, 0.0 }
0x1f61   :  { %v8215_v7 = vpop.f32.mrb[88].mxu0  ;;  %8224 = vadd.xlane.f32.xlu1 %v8223_v6 }
0x1f62   :  { %v8216_v38 = vadd.f32 %v8887_v3, %v8215_v7  ;;  %v8217_v33 = vpop.f32.mrb[89].mxu0 }
0x1f64   :  { %v8226_v51 = vsel %vm476_vm0, %v8216_v38, 0.0 }
0x1f65   :  { %8227 = vadd.xlane.f32.xlu0 %v8226_v51 }
0x1fee   :  { %v8225_v0 = vpop.xlane.xlu1 %8224 }
0x1fef   :  { %v8229_v8 = vmul.f32 0.015625, %v8225_v0 }
0x1ff1   :  { %v8231_v30 = vsub.f32 %v8211_v25, %v8229_v8 }
0x1ff2   :  { %v8228_v1 = vpop.xlane.xlu0 %8227 }
0x1ff3   :  { %v8230_v54 = vmul.f32 0.015625, %v8228_v1  ;;  %v8233_v10 = vmul.f32 %v8231_v30, %v8231_v30 }
0x1ff5   :  { %v8232_v32 = vsub.f32 %v8216_v38, %v8230_v54  ;;  %v8235_v11 = vsel %vm476_vm0, %v8233_v10, 0.0 }
0x1ff6   :  { %8236 = vadd.xlane.f32.xlu1 %v8235_v11 }
0x1ff7   :  { %v8234_v15 = vmul.f32 %v8232_v32, %v8232_v32 }
0x1ff9   :  { %v8238_v9 = vsel %vm476_vm0, %v8234_v15, 0.0 }
0x1ffa   :  { %8239 = vadd.xlane.f32.xlu0 %v8238_v9 }
0x2083   :  { %v8237_v24 = vpop.xlane.xlu1 %8236 }
0x2084   :  { %v8241_v58 = vmul.f32 0.015625, %v8237_v24 }
0x2086   :  { %v8243_v31 = vadd.f32 1e-05, %v8241_v58 }
0x2087   :  { %v8240_v20 = vpop.xlane.xlu0 %8239 }
0x2088   :  { %10816 = vrsqrt.f32 %v8243_v31  ;;  %v8242_v34 = vmul.f32 0.015625, %v8240_v20 }
0x208a   :  { %v8244_v43 = vadd.f32 1e-05, %v8242_v34 }
0x208c   :  { %10818 = vrsqrt.f32 %v8244_v43 }
0x2092   :  { %v10817_v16 = vpop.eup %10816 }
0x2093   :  { %v8247_v35 = vmul.f32 %v10817_v16, %v8231_v30 }
0x2095   :  { %v8255_v4 = vmul.f32 %v8890_v62, %v8247_v35 }
0x2096   :  { %v10819_v12 = vpop.eup %10818 }
0x2097   :  { %v8248_v37 = vmul.f32 %v10819_v12, %v8232_v32  ;;  %v8263_v19 = vadd.f32 %v8891_v36, %v8255_v4 }
0x2099   :  { %v8256_v39 = vmul.f32 %v8890_v62, %v8248_v37  ;;  %9835 = vmatprep.mubr.msk.f32.mxu0 %vm476_vm0, %v8263_v19 }
0x209b   :  { %v8264_v41 = vadd.f32 %v8891_v36, %v8256_v39 }
0x209d   :  { %9836 = vmatmul.mubr.msk.f32.vlgmr.msra.gmra.mrb[90].mxu0 %vm476_vm0, %v8264_v41 }
0x2170   :  { %v9837_v47 = vpop.f32.mrb[90].mxu0 }
0x2171   :  { %v8382_v27 = vadd.f32 %v9837_v47, %v8892_v44  ;;  %v8376_v45 = vpop.f32.mrb[91].mxu0 }
0x2172   :  { %v8377_v40 = vadd.f32 %v8892_v44, %v8376_v45 }
0x2173   :  { %8386 = vrot.lane.b32.xlu1 %v8382_v27, %s13297_s28 }
0x21e5   :  { %v8387_v53 = vpop.permute.xlu1 %8386 }
0x21e6   :  { %v8389_v48 = vsel %vm476_vm0, %v8377_v40, %v8387_v53 }
0x21e7   :  { %8390 = vst [vmem:[#allocation7] sm:$0xff] %v8389_v48 }
0x21e8   :  { %10875 = shalt.err (!%p10872_p6)
}
0x21e9   :  { %s13306_s18 = sld [smem:[#allocation25_spill]] }
0x21ef   :  { %s10876_s13 = scalar_lea.hbm %s13306_s18, 128 }
0x21f0   :  { %p10877_p7 = scmp.ne.s32.totalorder %s13306_s18, %s10876_s13  ;;  %p10880_p8 = scmp.lt.u32.totalorder %s10876_s13, %s13306_s18 }
0x21f2   :  { %p10882_p9 = pnand %p10880_p8, %p10877_p7 }
0x21f4   :  { %10885 = shalt.err (!%p10882_p9)
}
0x21f5   :  { %8400 = dma.vmem_to_hbm [thread:$0]  %s8398_s21, 128, %s13306_s18, [#allocation4]  }
0x21f6   :  { %10890 = dma.done.wait [#allocation4], 128  }
0x21f7   :  { %10891 = vsyncadd [#allocation4], 4294967168 }
0x21f8   :  { %8404 = vsyncpa [#allocation3], 1 }
0x21f9   :  { %8405 = vsyncpa [#allocation6], 1 }
0x21fa   :  { %8406 = vsyncpa [#allocation4], 1 }

</bundles_post_ra>
